<compile_context>
chip_gen: v7x
topology: tpu7x:2x2x1
jax: 0.10.0
libtpu: 0.0.40
codegen_flags: <defaults>
</compile_context>

<pallas_src>
import functools

import jax
import jax.numpy as jnp
from jax.experimental import pallas as pl
from jax.experimental.pallas import tpu as pltpu


def _round_up(x, m):
    return ((x + m - 1) // m) * m


def _cdiv(a, b):
    return -(-a // b)


_VREG_BUDGET = 40.0      # target per-row-tile working set (out of 64 vregs)


# ------------------------------ Pallas kernel --------------------------------

def _conv_tap_kernel(x_ref, w_ref, b_ref, o_ref, *, offsets, tile_m, m_pad,
                     activation, negative_slope, cout_is_one):
    """Shift-matmul conv over a flattened, VMEM-resident activation matrix.

    For each static row-tile:
        out[r, :] = act( sum_t X[r + off_t, :] @ W[t] + b )
    Accumulation is value-chained (no VMEM scratch RMW); each output tile is
    stored exactly once.
    """
    num_tiles = m_pad // tile_m
    for ti in range(num_tiles):                              # static unroll
        base = ti * tile_m
        if cout_is_one:
            # Cout == 1 head: accumulate x*w products in (tile_m, K) f32 across
            # all taps, ONE cross-lane reduction at the end.
            acc_k = (x_ref[pl.ds(base + offsets[0], tile_m), :].astype(jnp.float32)
                     * w_ref[0].astype(jnp.float32))
            for t in range(1, len(offsets)):
                acc_k = acc_k + (
                    x_ref[pl.ds(base + offsets[t], tile_m), :].astype(jnp.float32)
                    * w_ref[t].astype(jnp.float32))
            acc = jnp.sum(acc_k, axis=-1, keepdims=True)     # single XLU reduce
        else:
            # MXU matmuls, value-chained f32 accumulation (no scratch).
            acc = jnp.dot(x_ref[pl.ds(base + offsets[0], tile_m), :], w_ref[0],
                          preferred_element_type=jnp.float32)
            for t in range(1, len(offsets)):
                acc = acc + jnp.dot(
                    x_ref[pl.ds(base + offsets[t], tile_m), :], w_ref[t],
                    preferred_element_type=jnp.float32)
        acc = acc + b_ref[...]
        if activation == "leaky_relu":
            acc = jnp.maximum(acc, negative_slope * acc)     # single VPU op
        else:                                                # sigmoid
            acc = pl.reciprocal(1.0 + jnp.exp(-acc))         # EUP exp + recip
        o_ref[pl.ds(base, tile_m), :] = acc.astype(o_ref.dtype)


def _conv_layer(x_flat, w_taps, bias2d, offsets, tile_m, m_pad, out_dtype,
                activation, cout_is_one, negative_slope=0.2):
    """x_flat: (N, R_pad, K), w_taps: (T, K, Cout) [(T, 1, K) when Cout==1]."""
    n, r_pad, k = x_flat.shape
    cout = bias2d.shape[1]

    kernel = functools.partial(
        _conv_tap_kernel, offsets=tuple(int(o) for o in offsets),
        tile_m=int(tile_m), m_pad=int(m_pad), activation=activation,
        negative_slope=negative_slope, cout_is_one=cout_is_one)

    return pl.pallas_call(
        kernel,
        out_shape=jax.ShapeDtypeStruct((n, m_pad, cout), out_dtype),
        grid=(n,),
        in_specs=[
            pl.BlockSpec((None, r_pad, k), lambda i: (i, 0, 0)),   # whole image
            pl.BlockSpec(w_taps.shape, lambda i: (0, 0, 0)),       # all taps
            pl.BlockSpec(bias2d.shape, lambda i: (0, 0)),
        ],
        out_specs=pl.BlockSpec((None, m_pad, cout), lambda i: (i, 0, 0)),
        compiler_params=pltpu.CompilerParams(
            dimension_semantics=("parallel",),
            vmem_limit_bytes=48 * 1024 * 1024),
    )(x_flat, w_taps, bias2d)


# --------------------------- tiling / fusion policy ---------------------------

def _fuse_host(cin):
    """Pre-gather the 4 taps host-side when the per-tap K is lane-sparse."""
    return 4 * cin < 128


def _vregs_per_row(k, cout, n_taps, cout_is_one):
    lt = lambda c: _cdiv(c, 128)                 # lane tiles
    if cout_is_one:
        return lt(k) / 16.0 + lt(k) / 8.0 + 1.0 / 8.0
    n_live = 1 if n_taps == 1 else 2             # slices live at once (bf16)
    return n_live * lt(k) / 16.0 + lt(cout) / 8.0   # + f32 accumulator


def _pick_tile(m_out, vregs_per_row, max_off):
    """Row-tile sized so the value-chained working set fits ~_VREG_BUDGET vregs."""
    t = int(_VREG_BUDGET / max(vregs_per_row, 1e-6))
    t = max(16, (t // 16) * 16)                  # bf16 sublane packing: x16
    num_tiles = _cdiv(m_out, t)
    tile_m = _round_up(_cdiv(m_out, num_tiles), 16)
    m_pad = num_tiles * tile_m
    r_pad = _round_up(m_pad + max_off, 16)
    return tile_m, m_pad, r_pad


# ------------------------------ host-side glue -------------------------------

def _prep_stride2_input(x_nhwc, fuse_host):
    """Reflect pad + 2x2 space-to-depth (+ optional host tap-gather) + flatten."""
    n, h, w, c = x_nhwc.shape
    assert h % 2 == 0 and w % 2 == 0
    ho, wo = h // 2, w // 2

    # xs[n, u, v, (ph, pw, c)] = xpad[n, 2u+ph, 2v+pw, c]
    xp = jnp.pad(x_nhwc, ((0, 0), (1, 1), (1, 1), (0, 0)), mode="reflect")
    xs = xp.reshape(n, ho + 1, 2, wo + 1, 2, c)
    xs = xs.transpose(0, 1, 3, 2, 4, 5).reshape(n, (ho + 1) * (wo + 1), 4 * c)

    offsets = (0, 1, wo + 1, wo + 2)             # taps (a, b) in {0,1}^2
    m_out = ho * (wo + 1)                        # one junk column per out row
    if fuse_host:
        # Pre-gather the 4 taps along channels -> one lane-dense K = 16*Cin.
        xs = jnp.pad(xs, ((0, 0), (0, m_out + offsets[-1] - xs.shape[1]), (0, 0)))
        xs = jnp.concatenate([xs[:, off:off + m_out, :] for off in offsets],
                             axis=-1)
        offsets = (0,)
    return xs, offsets, m_out, ho, wo


def _prep_final_input(x_nhwc):
    """Reflect pad + flatten for the final k=4/s=1/p=1 conv (Cout == 1)."""
    n, h, w, c = x_nhwc.shape
    hp, wp = h + 2, w + 2
    ho, wo = h - 1, w - 1
    xp = jnp.pad(x_nhwc, ((0, 0), (1, 1), (1, 1), (0, 0)), mode="reflect")
    xs = xp.reshape(n, hp * wp, c)
    offsets = tuple(ki * wp + kj for ki in range(4) for kj in range(4))
    m_out = ho * wp                              # wp-wide rows, junk cols >= wo
    return xs, offsets, m_out, ho, wo, wp


# ----------------------------- parameter handling -----------------------------

def init_discriminator_params(key, in_channels=3, features=(8, 16, 32, 64)):
    """Deterministic init mirroring PyTorch Conv2d default U(-1/sqrt(fan_in), +)."""
    params = []
    cin = in_channels
    for feat in list(features) + [1]:
        key, kw_, kb_ = jax.random.split(key, 3)
        fan_in = cin * 4 * 4
        bound = 1.0 / (fan_in ** 0.5)
        w = jax.random.uniform(kw_, (feat, cin, 4, 4), jnp.float32, -bound, bound)
        b = jax.random.uniform(kb_, (feat,), jnp.float32, -bound, bound)
        params.append((w, b))
        cin = feat
    return params


def pack_discriminator_params(params, compute_dtype=jnp.bfloat16):
    """One-time repack of (O,I,kh,kw) weights into kernel tap layout.

    Hoisted out of the jitted forward (pure per-call overhead otherwise).
    """
    packed = []
    n_layers = len(params)
    for idx, (w, b) in enumerate(params):
        cout, cin = int(w.shape[0]), int(w.shape[1])
        if idx < n_layers - 1:
            # stride-2 layer: tap t = 2a+b over the 2x2 s2d grid; per-tap K
            # ordered (ph, pw, c) to match the s2d channel layout.
            wt = jnp.transpose(w, (2, 3, 1, 0)).reshape(2, 2, 2, 2, cin, cout)
            wt = wt.transpose(0, 2, 1, 3, 4, 5).reshape(4, 4 * cin, cout)
            if _fuse_host(cin):
                wt = wt.reshape(1, 16 * cin, cout)     # single fused tap
            packed.append((wt.astype(compute_dtype),
                           b.reshape(1, cout).astype(jnp.float32)))
        else:
            # final stride-1 / Cout=1 layer: 16 taps, row layout for VPU path.
            wt = jnp.transpose(w, (2, 3, 0, 1)).reshape(16, 1, cin)
            packed.append((wt.astype(compute_dtype),
                           b.reshape(1, 1).astype(jnp.float32)))
    return packed


# ------------------------------- forward pass --------------------------------

def discriminator_forward(packed_params, x_nchw, compute_dtype=jnp.bfloat16):
    x = jnp.transpose(x_nchw, (0, 2, 3, 1)).astype(jnp.float32)   # NCHW -> NHWC
    n = x.shape[0]

    # hidden layers: Conv(k4, s2, p1, reflect) + LeakyReLU(0.2)
    for (wt, b2d) in packed_params[:-1]:
        cin, cout = x.shape[-1], b2d.shape[1]
        fuse = _fuse_host(cin)
        xs, offs, m_out, ho, wo = _prep_stride2_input(x, fuse)
        k = xs.shape[-1]
        vpr = _vregs_per_row(k, cout, len(offs), cout_is_one=False)
        tile_m, m_pad, r_pad = _pick_tile(m_out, vpr, max(offs))
        xs = jnp.pad(xs, ((0, 0), (0, r_pad - xs.shape[1]), (0, 0)))
        out_flat = _conv_layer(
            xs.astype(compute_dtype), wt, b2d, offs, tile_m, m_pad,
            jnp.bfloat16, "leaky_relu", cout_is_one=False)
        x = out_flat[:, :m_out, :].reshape(n, ho, wo + 1, cout)[:, :, :wo, :]

    # final layer: Conv(k4, s1, p1, reflect) + Sigmoid, Cout = 1
    wt, b2d = packed_params[-1]
    xs, offs, m_out, ho, wo, wp = _prep_final_input(x)
    k = xs.shape[-1]
    vpr = _vregs_per_row(k, 1, len(offs), cout_is_one=True)
    tile_m, m_pad, r_pad = _pick_tile(m_out, vpr, max(offs))
    xs = jnp.pad(xs, ((0, 0), (0, r_pad - xs.shape[1]), (0, 0)))
    out_flat = _conv_layer(
        xs.astype(compute_dtype), wt, b2d, offs, tile_m, m_pad,
        jnp.float32, "sigmoid", cout_is_one=True)
    y = out_flat[:, :m_out, :].reshape(n, ho, wp, 1)[:, :, :wo, :]
    return jnp.transpose(y, (0, 3, 1, 2))                         # NHWC -> NCHW


# ------------------------- pure-JAX reference (check) -------------------------

def reference_forward(params, x_nchw, compute_dtype=jnp.bfloat16):
    x = x_nchw.astype(jnp.float32)
    n_layers = len(params)
    for idx, (w, b) in enumerate(params):
        stride = 2 if idx < n_layers - 1 else 1
        xp = jnp.pad(x, ((0, 0), (0, 0), (1, 1), (1, 1)), mode="reflect")
        y = jax.lax.conv_general_dilated(
            xp.astype(compute_dtype), w.astype(compute_dtype),
            (stride, stride), "VALID",
            dimension_numbers=("NCHW", "OIHW", "NCHW"),
            preferred_element_type=jnp.float32)
        y = y + b[None, :, None, None]
        if idx < n_layers - 1:
            y = jnp.maximum(y, 0.2 * y)
            x = y.astype(compute_dtype).astype(jnp.float32)  # match bf16 storage
        else:
            x = jax.nn.sigmoid(y)
    return x


# ----------------------------------- main -------------------------------------

if __name__ == "__main__":
    key = jax.random.PRNGKey(0)
    k_params, k_x = jax.random.split(key)

    in_channels = 3
    features = (8, 16, 32, 64)          # small stand-in for [64, 128, 256, 512]
    batch, spatial = 2, 64              # 64 -> 32 -> 16 -> 8 -> 4 -> final 3x3

    params = init_discriminator_params(k_params, in_channels, features)
    packed = pack_discriminator_params(params)        # one-time weight repack
    x = jax.random.normal(k_x, (batch, in_channels, spatial, spatial), jnp.float32)

    fwd = jax.jit(discriminator_forward)
    ref_fwd = jax.jit(reference_forward)

    out = jax.block_until_ready(fwd(packed, x))
    ref = jax.block_until_ready(ref_fwd(params, x))

    assert out.shape == ref.shape == (batch, 1, 3, 3), out.shape
    max_err = float(jnp.max(jnp.abs(out - ref)))
    assert max_err < 1e-2, f"max_err={max_err}"

    print("KERNEL_OK")
</pallas_src>

<mosaic_0001>
module attributes {stable_mosaic.version = 11 : i64} {
  func.func @_conv_tap_kernel(%arg0: i32, %arg1: memref<1x1056x48xbf16, #tpu.memory_space<vmem>>, %arg2: memref<1x48x8xbf16, #tpu.memory_space<vmem>>, %arg3: memref<1x8xf32, #tpu.memory_space<vmem>>, %arg4: memref<1x1056x8xbf16, #tpu.memory_space<vmem>>) attributes {dimension_semantics = [#tpu.dimension_semantics<parallel>], iteration_bounds = array<i64: 2>, scalar_prefetch = 0 : i64, scratch_operands = 0 : i64, tpu.core_type = #tpu.core_type<tc>, window_params = [{transform_indices = @transform_0, window_bounds = array<i64: 1, 1056, 48>}, {pipeline_mode = #tpu.pipeline_mode<synchronous>, transform_indices = @transform_1, window_bounds = array<i64: 1, 48, 8>}, {pipeline_mode = #tpu.pipeline_mode<synchronous>, transform_indices = @transform_2, window_bounds = array<i64: 1, 8>}, {transform_indices = @transform_3, window_bounds = array<i64: 1, 1056, 8>}]} {
    %c0 = arith.constant 0 : index
    %c0_0 = arith.constant 0 : index
    %c0_1 = arith.constant 0 : index
    %0 = vector.load %arg1[%c0, %c0_0, %c0_1] : memref<1x1056x48xbf16, #tpu.memory_space<vmem>>, vector<1x176x48xbf16>
    %1 = vector.shape_cast %0 : vector<1x176x48xbf16> to vector<176x48xbf16>
    %c0_2 = arith.constant 0 : index
    %c0_3 = arith.constant 0 : index
    %c0_4 = arith.constant 0 : index
    %2 = vector.load %arg2[%c0_2, %c0_3, %c0_4] : memref<1x48x8xbf16, #tpu.memory_space<vmem>>, vector<1x48x8xbf16>
    %3 = vector.shape_cast %2 : vector<1x48x8xbf16> to vector<48x8xbf16>
    %cst = arith.constant dense<0.000000e+00> : vector<176x8xf32>
    %4 = tpu.matmul %1, %3, %cst {dimension_numbers = #tpu.dot_dimension_numbers<[1], [0], [0], [1], [0, 0, 1, 1], [], []>} : vector<176x48xbf16>, vector<48x8xbf16>, vector<176x8xf32> -> vector<176x8xf32>
    %c0_5 = arith.constant 0 : index
    %c0_6 = arith.constant 0 : index
    %5 = vector.load %arg3[%c0_5, %c0_6] : memref<1x8xf32, #tpu.memory_space<vmem>>, vector<1x8xf32>
    %6 = vector.broadcast %5 : vector<1x8xf32> to vector<176x8xf32>
    %7 = arith.addf %4, %6 : vector<176x8xf32>
    %cst_7 = arith.constant 2.000000e-01 : f32
    %8 = vector.broadcast %cst_7 : f32 to vector<176x8xf32>
    %9 = arith.mulf %8, %7 : vector<176x8xf32>
    %10 = arith.maximumf %7, %9 : vector<176x8xf32>
    %11 = arith.truncf %10 : vector<176x8xf32> to vector<176x8xbf16>
    %c0_8 = arith.constant 0 : index
    %c0_9 = arith.constant 0 : index
    %c0_10 = arith.constant 0 : index
    %12 = vector.load %arg4[%c0_8, %c0_9, %c0_10] : memref<1x1056x8xbf16, #tpu.memory_space<vmem>>, vector<1x176x8xbf16>
    %13 = vector.shape_cast %12 : vector<1x176x8xbf16> to vector<176x8xbf16>
    %14 = vector.shape_cast %11 : vector<176x8xbf16> to vector<1x176x8xbf16>
    tpu.vector_store %arg4[%c0_8, %c0_9, %c0_10], %14 {strides = array<i32>} : memref<1x1056x8xbf16, #tpu.memory_space<vmem>>, vector<1x176x8xbf16>,
    %c0_11 = arith.constant 0 : index
    %c176 = arith.constant 176 : index
    %c0_12 = arith.constant 0 : index
    %15 = vector.load %arg1[%c0_11, %c176, %c0_12] : memref<1x1056x48xbf16, #tpu.memory_space<vmem>>, vector<1x176x48xbf16>
    %16 = vector.shape_cast %15 : vector<1x176x48xbf16> to vector<176x48xbf16>
    %c0_13 = arith.constant 0 : index
    %c0_14 = arith.constant 0 : index
    %c0_15 = arith.constant 0 : index
    %17 = vector.load %arg2[%c0_13, %c0_14, %c0_15] : memref<1x48x8xbf16, #tpu.memory_space<vmem>>, vector<1x48x8xbf16>
    %18 = vector.shape_cast %17 : vector<1x48x8xbf16> to vector<48x8xbf16>
    %cst_16 = arith.constant dense<0.000000e+00> : vector<176x8xf32>
    %19 = tpu.matmul %16, %18, %cst_16 {dimension_numbers = #tpu.dot_dimension_numbers<[1], [0], [0], [1], [0, 0, 1, 1], [], []>} : vector<176x48xbf16>, vector<48x8xbf16>, vector<176x8xf32> -> vector<176x8xf32>
    %c0_17 = arith.constant 0 : index
    %c0_18 = arith.constant 0 : index
    %20 = vector.load %arg3[%c0_17, %c0_18] : memref<1x8xf32, #tpu.memory_space<vmem>>, vector<1x8xf32>
    %21 = vector.broadcast %20 : vector<1x8xf32> to vector<176x8xf32>
    %22 = arith.addf %19, %21 : vector<176x8xf32>
    %cst_19 = arith.constant 2.000000e-01 : f32
    %23 = vector.broadcast %cst_19 : f32 to vector<176x8xf32>
    %24 = arith.mulf %23, %22 : vector<176x8xf32>
    %25 = arith.maximumf %22, %24 : vector<176x8xf32>
    %26 = arith.truncf %25 : vector<176x8xf32> to vector<176x8xbf16>
    %c0_20 = arith.constant 0 : index
    %c176_21 = arith.constant 176 : index
    %c0_22 = arith.constant 0 : index
    %27 = vector.load %arg4[%c0_20, %c176_21, %c0_22] : memref<1x1056x8xbf16, #tpu.memory_space<vmem>>, vector<1x176x8xbf16>
    %28 = vector.shape_cast %27 : vector<1x176x8xbf16> to vector<176x8xbf16>
    %29 = vector.shape_cast %26 : vector<176x8xbf16> to vector<1x176x8xbf16>
    tpu.vector_store %arg4[%c0_20, %c176_21, %c0_22], %29 {strides = array<i32>} : memref<1x1056x8xbf16, #tpu.memory_space<vmem>>, vector<1x176x8xbf16>,
    %c0_23 = arith.constant 0 : index
    %c352 = arith.constant 352 : index
    %c0_24 = arith.constant 0 : index
    %30 = vector.load %arg1[%c0_23, %c352, %c0_24] : memref<1x1056x48xbf16, #tpu.memory_space<vmem>>, vector<1x176x48xbf16>
    %31 = vector.shape_cast %30 : vector<1x176x48xbf16> to vector<176x48xbf16>
    %c0_25 = arith.constant 0 : index
    %c0_26 = arith.constant 0 : index
    %c0_27 = arith.constant 0 : index
    %32 = vector.load %arg2[%c0_25, %c0_26, %c0_27] : memref<1x48x8xbf16, #tpu.memory_space<vmem>>, vector<1x48x8xbf16>
    %33 = vector.shape_cast %32 : vector<1x48x8xbf16> to vector<48x8xbf16>
    %cst_28 = arith.constant dense<0.000000e+00> : vector<176x8xf32>
    %34 = tpu.matmul %31, %33, %cst_28 {dimension_numbers = #tpu.dot_dimension_numbers<[1], [0], [0], [1], [0, 0, 1, 1], [], []>} : vector<176x48xbf16>, vector<48x8xbf16>, vector<176x8xf32> -> vector<176x8xf32>
    %c0_29 = arith.constant 0 : index
    %c0_30 = arith.constant 0 : index
    %35 = vector.load %arg3[%c0_29, %c0_30] : memref<1x8xf32, #tpu.memory_space<vmem>>, vector<1x8xf32>
    %36 = vector.broadcast %35 : vector<1x8xf32> to vector<176x8xf32>
    %37 = arith.addf %34, %36 : vector<176x8xf32>
    %cst_31 = arith.constant 2.000000e-01 : f32
    %38 = vector.broadcast %cst_31 : f32 to vector<176x8xf32>
    %39 = arith.mulf %38, %37 : vector<176x8xf32>
    %40 = arith.maximumf %37, %39 : vector<176x8xf32>
    %41 = arith.truncf %40 : vector<176x8xf32> to vector<176x8xbf16>
    %c0_32 = arith.constant 0 : index
    %c352_33 = arith.constant 352 : index
    %c0_34 = arith.constant 0 : index
    %42 = vector.load %arg4[%c0_32, %c352_33, %c0_34] : memref<1x1056x8xbf16, #tpu.memory_space<vmem>>, vector<1x176x8xbf16>
    %43 = vector.shape_cast %42 : vector<1x176x8xbf16> to vector<176x8xbf16>
    %44 = vector.shape_cast %41 : vector<176x8xbf16> to vector<1x176x8xbf16>
    tpu.vector_store %arg4[%c0_32, %c352_33, %c0_34], %44 {strides = array<i32>} : memref<1x1056x8xbf16, #tpu.memory_space<vmem>>, vector<1x176x8xbf16>,
    %c0_35 = arith.constant 0 : index
    %c528 = arith.constant 528 : index
    %c0_36 = arith.constant 0 : index
    %45 = vector.load %arg1[%c0_35, %c528, %c0_36] : memref<1x1056x48xbf16, #tpu.memory_space<vmem>>, vector<1x176x48xbf16>
    %46 = vector.shape_cast %45 : vector<1x176x48xbf16> to vector<176x48xbf16>
    %c0_37 = arith.constant 0 : index
    %c0_38 = arith.constant 0 : index
    %c0_39 = arith.constant 0 : index
    %47 = vector.load %arg2[%c0_37, %c0_38, %c0_39] : memref<1x48x8xbf16, #tpu.memory_space<vmem>>, vector<1x48x8xbf16>
    %48 = vector.shape_cast %47 : vector<1x48x8xbf16> to vector<48x8xbf16>
    %cst_40 = arith.constant dense<0.000000e+00> : vector<176x8xf32>
    %49 = tpu.matmul %46, %48, %cst_40 {dimension_numbers = #tpu.dot_dimension_numbers<[1], [0], [0], [1], [0, 0, 1, 1], [], []>} : vector<176x48xbf16>, vector<48x8xbf16>, vector<176x8xf32> -> vector<176x8xf32>
    %c0_41 = arith.constant 0 : index
    %c0_42 = arith.constant 0 : index
    %50 = vector.load %arg3[%c0_41, %c0_42] : memref<1x8xf32, #tpu.memory_space<vmem>>, vector<1x8xf32>
    %51 = vector.broadcast %50 : vector<1x8xf32> to vector<176x8xf32>
    %52 = arith.addf %49, %51 : vector<176x8xf32>
    %cst_43 = arith.constant 2.000000e-01 : f32
    %53 = vector.broadcast %cst_43 : f32 to vector<176x8xf32>
    %54 = arith.mulf %53, %52 : vector<176x8xf32>
    %55 = arith.maximumf %52, %54 : vector<176x8xf32>
    %56 = arith.truncf %55 : vector<176x8xf32> to vector<176x8xbf16>
    %c0_44 = arith.constant 0 : index
    %c528_45 = arith.constant 528 : index
    %c0_46 = arith.constant 0 : index
    %57 = vector.load %arg4[%c0_44, %c528_45, %c0_46] : memref<1x1056x8xbf16, #tpu.memory_space<vmem>>, vector<1x176x8xbf16>
    %58 = vector.shape_cast %57 : vector<1x176x8xbf16> to vector<176x8xbf16>
    %59 = vector.shape_cast %56 : vector<176x8xbf16> to vector<1x176x8xbf16>
    tpu.vector_store %arg4[%c0_44, %c528_45, %c0_46], %59 {strides = array<i32>} : memref<1x1056x8xbf16, #tpu.memory_space<vmem>>, vector<1x176x8xbf16>,
    %c0_47 = arith.constant 0 : index
    %c704 = arith.constant 704 : index
    %c0_48 = arith.constant 0 : index
    %60 = vector.load %arg1[%c0_47, %c704, %c0_48] : memref<1x1056x48xbf16, #tpu.memory_space<vmem>>, vector<1x176x48xbf16>
    %61 = vector.shape_cast %60 : vector<1x176x48xbf16> to vector<176x48xbf16>
    %c0_49 = arith.constant 0 : index
    %c0_50 = arith.constant 0 : index
    %c0_51 = arith.constant 0 : index
    %62 = vector.load %arg2[%c0_49, %c0_50, %c0_51] : memref<1x48x8xbf16, #tpu.memory_space<vmem>>, vector<1x48x8xbf16>
    %63 = vector.shape_cast %62 : vector<1x48x8xbf16> to vector<48x8xbf16>
    %cst_52 = arith.constant dense<0.000000e+00> : vector<176x8xf32>
    %64 = tpu.matmul %61, %63, %cst_52 {dimension_numbers = #tpu.dot_dimension_numbers<[1], [0], [0], [1], [0, 0, 1, 1], [], []>} : vector<176x48xbf16>, vector<48x8xbf16>, vector<176x8xf32> -> vector<176x8xf32>
    %c0_53 = arith.constant 0 : index
    %c0_54 = arith.constant 0 : index
    %65 = vector.load %arg3[%c0_53, %c0_54] : memref<1x8xf32, #tpu.memory_space<vmem>>, vector<1x8xf32>
    %66 = vector.broadcast %65 : vector<1x8xf32> to vector<176x8xf32>
    %67 = arith.addf %64, %66 : vector<176x8xf32>
    %cst_55 = arith.constant 2.000000e-01 : f32
    %68 = vector.broadcast %cst_55 : f32 to vector<176x8xf32>
    %69 = arith.mulf %68, %67 : vector<176x8xf32>
    %70 = arith.maximumf %67, %69 : vector<176x8xf32>
    %71 = arith.truncf %70 : vector<176x8xf32> to vector<176x8xbf16>
    %c0_56 = arith.constant 0 : index
    %c704_57 = arith.constant 704 : index
    %c0_58 = arith.constant 0 : index
    %72 = vector.load %arg4[%c0_56, %c704_57, %c0_58] : memref<1x1056x8xbf16, #tpu.memory_space<vmem>>, vector<1x176x8xbf16>
    %73 = vector.shape_cast %72 : vector<1x176x8xbf16> to vector<176x8xbf16>
    %74 = vector.shape_cast %71 : vector<176x8xbf16> to vector<1x176x8xbf16>
    tpu.vector_store %arg4[%c0_56, %c704_57, %c0_58], %74 {strides = array<i32>} : memref<1x1056x8xbf16, #tpu.memory_space<vmem>>, vector<1x176x8xbf16>,
    %c0_59 = arith.constant 0 : index
    %c880 = arith.constant 880 : index
    %c0_60 = arith.constant 0 : index
    %75 = vector.load %arg1[%c0_59, %c880, %c0_60] : memref<1x1056x48xbf16, #tpu.memory_space<vmem>>, vector<1x176x48xbf16>
    %76 = vector.shape_cast %75 : vector<1x176x48xbf16> to vector<176x48xbf16>
    %c0_61 = arith.constant 0 : index
    %c0_62 = arith.constant 0 : index
    %c0_63 = arith.constant 0 : index
    %77 = vector.load %arg2[%c0_61, %c0_62, %c0_63] : memref<1x48x8xbf16, #tpu.memory_space<vmem>>, vector<1x48x8xbf16>
    %78 = vector.shape_cast %77 : vector<1x48x8xbf16> to vector<48x8xbf16>
    %cst_64 = arith.constant dense<0.000000e+00> : vector<176x8xf32>
    %79 = tpu.matmul %76, %78, %cst_64 {dimension_numbers = #tpu.dot_dimension_numbers<[1], [0], [0], [1], [0, 0, 1, 1], [], []>} : vector<176x48xbf16>, vector<48x8xbf16>, vector<176x8xf32> -> vector<176x8xf32>
    %c0_65 = arith.constant 0 : index
    %c0_66 = arith.constant 0 : index
    %80 = vector.load %arg3[%c0_65, %c0_66] : memref<1x8xf32, #tpu.memory_space<vmem>>, vector<1x8xf32>
    %81 = vector.broadcast %80 : vector<1x8xf32> to vector<176x8xf32>
    %82 = arith.addf %79, %81 : vector<176x8xf32>
    %cst_67 = arith.constant 2.000000e-01 : f32
    %83 = vector.broadcast %cst_67 : f32 to vector<176x8xf32>
    %84 = arith.mulf %83, %82 : vector<176x8xf32>
    %85 = arith.maximumf %82, %84 : vector<176x8xf32>
    %86 = arith.truncf %85 : vector<176x8xf32> to vector<176x8xbf16>
    %c0_68 = arith.constant 0 : index
    %c880_69 = arith.constant 880 : index
    %c0_70 = arith.constant 0 : index
    %87 = vector.load %arg4[%c0_68, %c880_69, %c0_70] : memref<1x1056x8xbf16, #tpu.memory_space<vmem>>, vector<1x176x8xbf16>
    %88 = vector.shape_cast %87 : vector<1x176x8xbf16> to vector<176x8xbf16>
    %89 = vector.shape_cast %86 : vector<176x8xbf16> to vector<1x176x8xbf16>
    tpu.vector_store %arg4[%c0_68, %c880_69, %c0_70], %89 {strides = array<i32>} : memref<1x1056x8xbf16, #tpu.memory_space<vmem>>, vector<1x176x8xbf16>,
    return
  }
  func.func @transform_0(%arg0: i32) -> (i32, i32, i32) {
    %c0_i32 = arith.constant 0 : i32
    %c0_i32_0 = arith.constant 0 : i32
    %c0_i32_1 = arith.constant 0 : i32
    return %arg0, %c0_i32, %c0_i32_0 : i32, i32, i32
  }
  func.func @transform_1(%arg0: i32) -> (i32, i32, i32) {
    %c0_i32 = arith.constant 0 : i32
    %c0_i32_0 = arith.constant 0 : i32
    %c0_i32_1 = arith.constant 0 : i32
    %c0_i32_2 = arith.constant 0 : i32
    return %c0_i32, %c0_i32_0, %c0_i32_1 : i32, i32, i32
  }
  func.func @transform_2(%arg0: i32) -> (i32, i32) {
    %c0_i32 = arith.constant 0 : i32
    %c0_i32_0 = arith.constant 0 : i32
    %c0_i32_1 = arith.constant 0 : i32
    return %c0_i32, %c0_i32_0 : i32, i32
  }
  func.func @transform_3(%arg0: i32) -> (i32, i32, i32) {
    %c0_i32 = arith.constant 0 : i32
    %c0_i32_0 = arith.constant 0 : i32
    %c0_i32_1 = arith.constant 0 : i32
    return %arg0, %c0_i32, %c0_i32_0 : i32, i32, i32
  }
}

module attributes {stable_mosaic.version = 11 : i64} {
  func.func @_conv_tap_kernel(%arg0: i32, %arg1: memref<1x288x128xbf16, #tpu.memory_space<vmem>>, %arg2: memref<1x128x16xbf16, #tpu.memory_space<vmem>>, %arg3: memref<1x16xf32, #tpu.memory_space<vmem>>, %arg4: memref<1x288x16xbf16, #tpu.memory_space<vmem>>) attributes {dimension_semantics = [#tpu.dimension_semantics<parallel>], iteration_bounds = array<i64: 2>, scalar_prefetch = 0 : i64, scratch_operands = 0 : i64, tpu.core_type = #tpu.core_type<tc>, window_params = [{transform_indices = @transform_0, window_bounds = array<i64: 1, 288, 128>}, {pipeline_mode = #tpu.pipeline_mode<synchronous>, transform_indices = @transform_1, window_bounds = array<i64: 1, 128, 16>}, {pipeline_mode = #tpu.pipeline_mode<synchronous>, transform_indices = @transform_2, window_bounds = array<i64: 1, 16>}, {transform_indices = @transform_3, window_bounds = array<i64: 1, 288, 16>}]} {
    %c0 = arith.constant 0 : index
    %c0_0 = arith.constant 0 : index
    %c0_1 = arith.constant 0 : index
    %0 = vector.load %arg1[%c0, %c0_0, %c0_1] : memref<1x288x128xbf16, #tpu.memory_space<vmem>>, vector<1x144x128xbf16>
    %1 = vector.shape_cast %0 : vector<1x144x128xbf16> to vector<144x128xbf16>
    %c0_2 = arith.constant 0 : index
    %c0_3 = arith.constant 0 : index
    %c0_4 = arith.constant 0 : index
    %2 = vector.load %arg2[%c0_2, %c0_3, %c0_4] : memref<1x128x16xbf16, #tpu.memory_space<vmem>>, vector<1x128x16xbf16>
    %3 = vector.shape_cast %2 : vector<1x128x16xbf16> to vector<128x16xbf16>
    %cst = arith.constant dense<0.000000e+00> : vector<144x16xf32>
    %4 = tpu.matmul %1, %3, %cst {dimension_numbers = #tpu.dot_dimension_numbers<[1], [0], [0], [1], [0, 0, 1, 1], [], []>} : vector<144x128xbf16>, vector<128x16xbf16>, vector<144x16xf32> -> vector<144x16xf32>
    %c0_5 = arith.constant 0 : index
    %c0_6 = arith.constant 0 : index
    %5 = vector.load %arg3[%c0_5, %c0_6] : memref<1x16xf32, #tpu.memory_space<vmem>>, vector<1x16xf32>
    %6 = vector.broadcast %5 : vector<1x16xf32> to vector<144x16xf32>
    %7 = arith.addf %4, %6 : vector<144x16xf32>
    %cst_7 = arith.constant 2.000000e-01 : f32
    %8 = vector.broadcast %cst_7 : f32 to vector<144x16xf32>
    %9 = arith.mulf %8, %7 : vector<144x16xf32>
    %10 = arith.maximumf %7, %9 : vector<144x16xf32>
    %11 = arith.truncf %10 : vector<144x16xf32> to vector<144x16xbf16>
    %c0_8 = arith.constant 0 : index
    %c0_9 = arith.constant 0 : index
    %c0_10 = arith.constant 0 : index
    %12 = vector.load %arg4[%c0_8, %c0_9, %c0_10] : memref<1x288x16xbf16, #tpu.memory_space<vmem>>, vector<1x144x16xbf16>
    %13 = vector.shape_cast %12 : vector<1x144x16xbf16> to vector<144x16xbf16>
    %14 = vector.shape_cast %11 : vector<144x16xbf16> to vector<1x144x16xbf16>
    tpu.vector_store %arg4[%c0_8, %c0_9, %c0_10], %14 {strides = array<i32>} : memref<1x288x16xbf16, #tpu.memory_space<vmem>>, vector<1x144x16xbf16>,
    %c0_11 = arith.constant 0 : index
    %c144 = arith.constant 144 : index
    %c0_12 = arith.constant 0 : index
    %15 = vector.load %arg1[%c0_11, %c144, %c0_12] : memref<1x288x128xbf16, #tpu.memory_space<vmem>>, vector<1x144x128xbf16>
    %16 = vector.shape_cast %15 : vector<1x144x128xbf16> to vector<144x128xbf16>
    %c0_13 = arith.constant 0 : index
    %c0_14 = arith.constant 0 : index
    %c0_15 = arith.constant 0 : index
    %17 = vector.load %arg2[%c0_13, %c0_14, %c0_15] : memref<1x128x16xbf16, #tpu.memory_space<vmem>>, vector<1x128x16xbf16>
    %18 = vector.shape_cast %17 : vector<1x128x16xbf16> to vector<128x16xbf16>
    %cst_16 = arith.constant dense<0.000000e+00> : vector<144x16xf32>
    %19 = tpu.matmul %16, %18, %cst_16 {dimension_numbers = #tpu.dot_dimension_numbers<[1], [0], [0], [1], [0, 0, 1, 1], [], []>} : vector<144x128xbf16>, vector<128x16xbf16>, vector<144x16xf32> -> vector<144x16xf32>
    %c0_17 = arith.constant 0 : index
    %c0_18 = arith.constant 0 : index
    %20 = vector.load %arg3[%c0_17, %c0_18] : memref<1x16xf32, #tpu.memory_space<vmem>>, vector<1x16xf32>
    %21 = vector.broadcast %20 : vector<1x16xf32> to vector<144x16xf32>
    %22 = arith.addf %19, %21 : vector<144x16xf32>
    %cst_19 = arith.constant 2.000000e-01 : f32
    %23 = vector.broadcast %cst_19 : f32 to vector<144x16xf32>
    %24 = arith.mulf %23, %22 : vector<144x16xf32>
    %25 = arith.maximumf %22, %24 : vector<144x16xf32>
    %26 = arith.truncf %25 : vector<144x16xf32> to vector<144x16xbf16>
    %c0_20 = arith.constant 0 : index
    %c144_21 = arith.constant 144 : index
    %c0_22 = arith.constant 0 : index
    %27 = vector.load %arg4[%c0_20, %c144_21, %c0_22] : memref<1x288x16xbf16, #tpu.memory_space<vmem>>, vector<1x144x16xbf16>
    %28 = vector.shape_cast %27 : vector<1x144x16xbf16> to vector<144x16xbf16>
    %29 = vector.shape_cast %26 : vector<144x16xbf16> to vector<1x144x16xbf16>
    tpu.vector_store %arg4[%c0_20, %c144_21, %c0_22], %29 {strides = array<i32>} : memref<1x288x16xbf16, #tpu.memory_space<vmem>>, vector<1x144x16xbf16>,
    return
  }
  func.func @transform_0(%arg0: i32) -> (i32, i32, i32) {
    %c0_i32 = arith.constant 0 : i32
    %c0_i32_0 = arith.constant 0 : i32
    %c0_i32_1 = arith.constant 0 : i32
    return %arg0, %c0_i32, %c0_i32_0 : i32, i32, i32
  }
  func.func @transform_1(%arg0: i32) -> (i32, i32, i32) {
    %c0_i32 = arith.constant 0 : i32
    %c0_i32_0 = arith.constant 0 : i32
    %c0_i32_1 = arith.constant 0 : i32
    %c0_i32_2 = arith.constant 0 : i32
    return %c0_i32, %c0_i32_0, %c0_i32_1 : i32, i32, i32
  }
  func.func @transform_2(%arg0: i32) -> (i32, i32) {
    %c0_i32 = arith.constant 0 : i32
    %c0_i32_0 = arith.constant 0 : i32
    %c0_i32_1 = arith.constant 0 : i32
    return %c0_i32, %c0_i32_0 : i32, i32
  }
  func.func @transform_3(%arg0: i32) -> (i32, i32, i32) {
    %c0_i32 = arith.constant 0 : i32
    %c0_i32_0 = arith.constant 0 : i32
    %c0_i32_1 = arith.constant 0 : i32
    return %arg0, %c0_i32, %c0_i32_0 : i32, i32, i32
  }
}

module attributes {stable_mosaic.version = 11 : i64} {
  func.func @_conv_tap_kernel(%arg0: i32, %arg1: memref<1x80x256xbf16, #tpu.memory_space<vmem>>, %arg2: memref<1x256x32xbf16, #tpu.memory_space<vmem>>, %arg3: memref<1x32xf32, #tpu.memory_space<vmem>>, %arg4: memref<1x80x32xbf16, #tpu.memory_space<vmem>>) attributes {dimension_semantics = [#tpu.dimension_semantics<parallel>], iteration_bounds = array<i64: 2>, scalar_prefetch = 0 : i64, scratch_operands = 0 : i64, tpu.core_type = #tpu.core_type<tc>, window_params = [{transform_indices = @transform_0, window_bounds = array<i64: 1, 80, 256>}, {pipeline_mode = #tpu.pipeline_mode<synchronous>, transform_indices = @transform_1, window_bounds = array<i64: 1, 256, 32>}, {pipeline_mode = #tpu.pipeline_mode<synchronous>, transform_indices = @transform_2, window_bounds = array<i64: 1, 32>}, {transform_indices = @transform_3, window_bounds = array<i64: 1, 80, 32>}]} {
    %c0 = arith.constant 0 : index
    %c0_0 = arith.constant 0 : index
    %c0_1 = arith.constant 0 : index
    %0 = vector.load %arg1[%c0, %c0_0, %c0_1] : memref<1x80x256xbf16, #tpu.memory_space<vmem>>, vector<1x80x256xbf16>
    %1 = vector.shape_cast %0 : vector<1x80x256xbf16> to vector<80x256xbf16>
    %c0_2 = arith.constant 0 : index
    %c0_3 = arith.constant 0 : index
    %c0_4 = arith.constant 0 : index
    %2 = vector.load %arg2[%c0_2, %c0_3, %c0_4] : memref<1x256x32xbf16, #tpu.memory_space<vmem>>, vector<1x256x32xbf16>
    %3 = vector.shape_cast %2 : vector<1x256x32xbf16> to vector<256x32xbf16>
    %cst = arith.constant dense<0.000000e+00> : vector<80x32xf32>
    %4 = tpu.matmul %1, %3, %cst {dimension_numbers = #tpu.dot_dimension_numbers<[1], [0], [0], [1], [0, 0, 1, 1], [], []>} : vector<80x256xbf16>, vector<256x32xbf16>, vector<80x32xf32> -> vector<80x32xf32>
    %c0_5 = arith.constant 0 : index
    %c0_6 = arith.constant 0 : index
    %5 = vector.load %arg3[%c0_5, %c0_6] : memref<1x32xf32, #tpu.memory_space<vmem>>, vector<1x32xf32>
    %6 = vector.broadcast %5 : vector<1x32xf32> to vector<80x32xf32>
    %7 = arith.addf %4, %6 : vector<80x32xf32>
    %cst_7 = arith.constant 2.000000e-01 : f32
    %8 = vector.broadcast %cst_7 : f32 to vector<80x32xf32>
    %9 = arith.mulf %8, %7 : vector<80x32xf32>
    %10 = arith.maximumf %7, %9 : vector<80x32xf32>
    %11 = arith.truncf %10 : vector<80x32xf32> to vector<80x32xbf16>
    %c0_8 = arith.constant 0 : index
    %c0_9 = arith.constant 0 : index
    %c0_10 = arith.constant 0 : index
    %12 = vector.load %arg4[%c0_8, %c0_9, %c0_10] : memref<1x80x32xbf16, #tpu.memory_space<vmem>>, vector<1x80x32xbf16>
    %13 = vector.shape_cast %12 : vector<1x80x32xbf16> to vector<80x32xbf16>
    %14 = vector.shape_cast %11 : vector<80x32xbf16> to vector<1x80x32xbf16>
    tpu.vector_store %arg4[%c0_8, %c0_9, %c0_10], %14 {strides = array<i32>} : memref<1x80x32xbf16, #tpu.memory_space<vmem>>, vector<1x80x32xbf16>,
    return
  }
  func.func @transform_0(%arg0: i32) -> (i32, i32, i32) {
    %c0_i32 = arith.constant 0 : i32
    %c0_i32_0 = arith.constant 0 : i32
    %c0_i32_1 = arith.constant 0 : i32
    return %arg0, %c0_i32, %c0_i32_0 : i32, i32, i32
  }
  func.func @transform_1(%arg0: i32) -> (i32, i32, i32) {
    %c0_i32 = arith.constant 0 : i32
    %c0_i32_0 = arith.constant 0 : i32
    %c0_i32_1 = arith.constant 0 : i32
    %c0_i32_2 = arith.constant 0 : i32
    return %c0_i32, %c0_i32_0, %c0_i32_1 : i32, i32, i32
  }
  func.func @transform_2(%arg0: i32) -> (i32, i32) {
    %c0_i32 = arith.constant 0 : i32
    %c0_i32_0 = arith.constant 0 : i32
    %c0_i32_1 = arith.constant 0 : i32
    return %c0_i32, %c0_i32_0 : i32, i32
  }
  func.func @transform_3(%arg0: i32) -> (i32, i32, i32) {
    %c0_i32 = arith.constant 0 : i32
    %c0_i32_0 = arith.constant 0 : i32
    %c0_i32_1 = arith.constant 0 : i32
    return %arg0, %c0_i32, %c0_i32_0 : i32, i32, i32
  }
}

module attributes {stable_mosaic.version = 11 : i64} {
  func.func @_conv_tap_kernel(%arg0: i32, %arg1: memref<1x48x128xbf16, #tpu.memory_space<vmem>>, %arg2: memref<4x128x64xbf16, #tpu.memory_space<vmem>>, %arg3: memref<1x64xf32, #tpu.memory_space<vmem>>, %arg4: memref<1x32x64xbf16, #tpu.memory_space<vmem>>) attributes {dimension_semantics = [#tpu.dimension_semantics<parallel>], iteration_bounds = array<i64: 2>, scalar_prefetch = 0 : i64, scratch_operands = 0 : i64, tpu.core_type = #tpu.core_type<tc>, window_params = [{transform_indices = @transform_0, window_bounds = array<i64: 1, 48, 128>}, {pipeline_mode = #tpu.pipeline_mode<synchronous>, transform_indices = @transform_1, window_bounds = array<i64: 4, 128, 64>}, {pipeline_mode = #tpu.pipeline_mode<synchronous>, transform_indices = @transform_2, window_bounds = array<i64: 1, 64>}, {transform_indices = @transform_3, window_bounds = array<i64: 1, 32, 64>}]} {
    %c0 = arith.constant 0 : index
    %c0_0 = arith.constant 0 : index
    %c0_1 = arith.constant 0 : index
    %0 = vector.load %arg1[%c0, %c0_0, %c0_1] : memref<1x48x128xbf16, #tpu.memory_space<vmem>>, vector<1x32x128xbf16>
    %1 = vector.shape_cast %0 : vector<1x32x128xbf16> to vector<32x128xbf16>
    %c0_2 = arith.constant 0 : index
    %c0_3 = arith.constant 0 : index
    %c0_4 = arith.constant 0 : index
    %2 = vector.load %arg2[%c0_2, %c0_3, %c0_4] : memref<4x128x64xbf16, #tpu.memory_space<vmem>>, vector<1x128x64xbf16>
    %3 = vector.shape_cast %2 : vector<1x128x64xbf16> to vector<128x64xbf16>
    %cst = arith.constant dense<0.000000e+00> : vector<32x64xf32>
    %4 = tpu.matmul %1, %3, %cst {dimension_numbers = #tpu.dot_dimension_numbers<[1], [0], [0], [1], [0, 0, 1, 1], [], []>} : vector<32x128xbf16>, vector<128x64xbf16>, vector<32x64xf32> -> vector<32x64xf32>
    %c0_5 = arith.constant 0 : index
    %c1 = arith.constant 1 : index
    %c0_6 = arith.constant 0 : index
    %5 = vector.load %arg1[%c0_5, %c1, %c0_6] : memref<1x48x128xbf16, #tpu.memory_space<vmem>>, vector<1x32x128xbf16>
    %6 = vector.shape_cast %5 : vector<1x32x128xbf16> to vector<32x128xbf16>
    %c1_7 = arith.constant 1 : index
    %c0_8 = arith.constant 0 : index
    %c0_9 = arith.constant 0 : index
    %7 = vector.load %arg2[%c1_7, %c0_8, %c0_9] : memref<4x128x64xbf16, #tpu.memory_space<vmem>>, vector<1x128x64xbf16>
    %8 = vector.shape_cast %7 : vector<1x128x64xbf16> to vector<128x64xbf16>
    %cst_10 = arith.constant dense<0.000000e+00> : vector<32x64xf32>
    %9 = tpu.matmul %6, %8, %cst_10 {dimension_numbers = #tpu.dot_dimension_numbers<[1], [0], [0], [1], [0, 0, 1, 1], [], []>} : vector<32x128xbf16>, vector<128x64xbf16>, vector<32x64xf32> -> vector<32x64xf32>
    %10 = arith.addf %4, %9 : vector<32x64xf32>
    %c0_11 = arith.constant 0 : index
    %c5 = arith.constant 5 : index
    %c0_12 = arith.constant 0 : index
    %11 = vector.load %arg1[%c0_11, %c5, %c0_12] : memref<1x48x128xbf16, #tpu.memory_space<vmem>>, vector<1x32x128xbf16>
    %12 = vector.shape_cast %11 : vector<1x32x128xbf16> to vector<32x128xbf16>
    %c2 = arith.constant 2 : index
    %c0_13 = arith.constant 0 : index
    %c0_14 = arith.constant 0 : index
    %13 = vector.load %arg2[%c2, %c0_13, %c0_14] : memref<4x128x64xbf16, #tpu.memory_space<vmem>>, vector<1x128x64xbf16>
    %14 = vector.shape_cast %13 : vector<1x128x64xbf16> to vector<128x64xbf16>
    %cst_15 = arith.constant dense<0.000000e+00> : vector<32x64xf32>
    %15 = tpu.matmul %12, %14, %cst_15 {dimension_numbers = #tpu.dot_dimension_numbers<[1], [0], [0], [1], [0, 0, 1, 1], [], []>} : vector<32x128xbf16>, vector<128x64xbf16>, vector<32x64xf32> -> vector<32x64xf32>
    %16 = arith.addf %10, %15 : vector<32x64xf32>
    %c0_16 = arith.constant 0 : index
    %c6 = arith.constant 6 : index
    %c0_17 = arith.constant 0 : index
    %17 = vector.load %arg1[%c0_16, %c6, %c0_17] : memref<1x48x128xbf16, #tpu.memory_space<vmem>>, vector<1x32x128xbf16>
    %18 = vector.shape_cast %17 : vector<1x32x128xbf16> to vector<32x128xbf16>
    %c3 = arith.constant 3 : index
    %c0_18 = arith.constant 0 : index
    %c0_19 = arith.constant 0 : index
    %19 = vector.load %arg2[%c3, %c0_18, %c0_19] : memref<4x128x64xbf16, #tpu.memory_space<vmem>>, vector<1x128x64xbf16>
    %20 = vector.shape_cast %19 : vector<1x128x64xbf16> to vector<128x64xbf16>
    %cst_20 = arith.constant dense<0.000000e+00> : vector<32x64xf32>
    %21 = tpu.matmul %18, %20, %cst_20 {dimension_numbers = #tpu.dot_dimension_numbers<[1], [0], [0], [1], [0, 0, 1, 1], [], []>} : vector<32x128xbf16>, vector<128x64xbf16>, vector<32x64xf32> -> vector<32x64xf32>
    %22 = arith.addf %16, %21 : vector<32x64xf32>
    %c0_21 = arith.constant 0 : index
    %c0_22 = arith.constant 0 : index
    %23 = vector.load %arg3[%c0_21, %c0_22] : memref<1x64xf32, #tpu.memory_space<vmem>>, vector<1x64xf32>
    %24 = vector.broadcast %23 : vector<1x64xf32> to vector<32x64xf32>
    %25 = arith.addf %22, %24 : vector<32x64xf32>
    %cst_23 = arith.constant 2.000000e-01 : f32
    %26 = vector.broadcast %cst_23 : f32 to vector<32x64xf32>
    %27 = arith.mulf %26, %25 : vector<32x64xf32>
    %28 = arith.maximumf %25, %27 : vector<32x64xf32>
    %29 = arith.truncf %28 : vector<32x64xf32> to vector<32x64xbf16>
    %c0_24 = arith.constant 0 : index
    %c0_25 = arith.constant 0 : index
    %c0_26 = arith.constant 0 : index
    %30 = vector.load %arg4[%c0_24, %c0_25, %c0_26] : memref<1x32x64xbf16, #tpu.memory_space<vmem>>, vector<1x32x64xbf16>
    %31 = vector.shape_cast %30 : vector<1x32x64xbf16> to vector<32x64xbf16>
    %32 = vector.shape_cast %29 : vector<32x64xbf16> to vector<1x32x64xbf16>
    tpu.vector_store %arg4[%c0_24, %c0_25, %c0_26], %32 {strides = array<i32>} : memref<1x32x64xbf16, #tpu.memory_space<vmem>>, vector<1x32x64xbf16>,
    return
  }
  func.func @transform_0(%arg0: i32) -> (i32, i32, i32) {
    %c0_i32 = arith.constant 0 : i32
    %c0_i32_0 = arith.constant 0 : i32
    %c0_i32_1 = arith.constant 0 : i32
    return %arg0, %c0_i32, %c0_i32_0 : i32, i32, i32
  }
  func.func @transform_1(%arg0: i32) -> (i32, i32, i32) {
    %c0_i32 = arith.constant 0 : i32
    %c0_i32_0 = arith.constant 0 : i32
    %c0_i32_1 = arith.constant 0 : i32
    %c0_i32_2 = arith.constant 0 : i32
    return %c0_i32, %c0_i32_0, %c0_i32_1 : i32, i32, i32
  }
  func.func @transform_2(%arg0: i32) -> (i32, i32) {
    %c0_i32 = arith.constant 0 : i32
    %c0_i32_0 = arith.constant 0 : i32
    %c0_i32_1 = arith.constant 0 : i32
    return %c0_i32, %c0_i32_0 : i32, i32
  }
  func.func @transform_3(%arg0: i32) -> (i32, i32, i32) {
    %c0_i32 = arith.constant 0 : i32
    %c0_i32_0 = arith.constant 0 : i32
    %c0_i32_1 = arith.constant 0 : i32
    return %arg0, %c0_i32, %c0_i32_0 : i32, i32, i32
  }
}

module attributes {stable_mosaic.version = 11 : i64} {
  func.func @_conv_tap_kernel(%arg0: i32, %arg1: memref<1x64x64xbf16, #tpu.memory_space<vmem>>, %arg2: memref<16x1x64xbf16, #tpu.memory_space<vmem>>, %arg3: memref<1x1xf32, #tpu.memory_space<vmem>>, %arg4: memref<1x32x1xf32, #tpu.memory_space<vmem>>) attributes {dimension_semantics = [#tpu.dimension_semantics<parallel>], iteration_bounds = array<i64: 2>, scalar_prefetch = 0 : i64, scratch_operands = 0 : i64, tpu.core_type = #tpu.core_type<tc>, window_params = [{transform_indices = @transform_0, window_bounds = array<i64: 1, 64, 64>}, {pipeline_mode = #tpu.pipeline_mode<synchronous>, transform_indices = @transform_1, window_bounds = array<i64: 16, 1, 64>}, {pipeline_mode = #tpu.pipeline_mode<synchronous>, transform_indices = @transform_2, window_bounds = array<i64: 1, 1>}, {transform_indices = @transform_3, window_bounds = array<i64: 1, 32, 1>}]} {
    %c0 = arith.constant 0 : index
    %c0_0 = arith.constant 0 : index
    %c0_1 = arith.constant 0 : index
    %0 = vector.load %arg1[%c0, %c0_0, %c0_1] : memref<1x64x64xbf16, #tpu.memory_space<vmem>>, vector<1x32x64xbf16>
    %1 = vector.shape_cast %0 : vector<1x32x64xbf16> to vector<32x64xbf16>
    %2 = arith.extf %1 : vector<32x64xbf16> to vector<32x64xf32>
    %c0_2 = arith.constant 0 : index
    %c0_3 = arith.constant 0 : index
    %c0_4 = arith.constant 0 : index
    %3 = vector.load %arg2[%c0_2, %c0_3, %c0_4] : memref<16x1x64xbf16, #tpu.memory_space<vmem>>, vector<1x1x64xbf16>
    %4 = vector.shape_cast %3 : vector<1x1x64xbf16> to vector<1x64xbf16>
    %5 = arith.extf %4 : vector<1x64xbf16> to vector<1x64xf32>
    %6 = vector.broadcast %5 : vector<1x64xf32> to vector<32x64xf32>
    %7 = arith.mulf %2, %6 : vector<32x64xf32>
    %c0_5 = arith.constant 0 : index
    %c1 = arith.constant 1 : index
    %c0_6 = arith.constant 0 : index
    %8 = vector.load %arg1[%c0_5, %c1, %c0_6] : memref<1x64x64xbf16, #tpu.memory_space<vmem>>, vector<1x32x64xbf16>
    %9 = vector.shape_cast %8 : vector<1x32x64xbf16> to vector<32x64xbf16>
    %10 = arith.extf %9 : vector<32x64xbf16> to vector<32x64xf32>
    %c1_7 = arith.constant 1 : index
    %c0_8 = arith.constant 0 : index
    %c0_9 = arith.constant 0 : index
    %11 = vector.load %arg2[%c1_7, %c0_8, %c0_9] : memref<16x1x64xbf16, #tpu.memory_space<vmem>>, vector<1x1x64xbf16>
    %12 = vector.shape_cast %11 : vector<1x1x64xbf16> to vector<1x64xbf16>
    %13 = arith.extf %12 : vector<1x64xbf16> to vector<1x64xf32>
    %14 = vector.broadcast %13 : vector<1x64xf32> to vector<32x64xf32>
    %15 = arith.mulf %10, %14 : vector<32x64xf32>
    %16 = arith.addf %7, %15 : vector<32x64xf32>
    %c0_10 = arith.constant 0 : index
    %c2 = arith.constant 2 : index
    %c0_11 = arith.constant 0 : index
    %17 = vector.load %arg1[%c0_10, %c2, %c0_11] : memref<1x64x64xbf16, #tpu.memory_space<vmem>>, vector<1x32x64xbf16>
    %18 = vector.shape_cast %17 : vector<1x32x64xbf16> to vector<32x64xbf16>
    %19 = arith.extf %18 : vector<32x64xbf16> to vector<32x64xf32>
    %c2_12 = arith.constant 2 : index
    %c0_13 = arith.constant 0 : index
    %c0_14 = arith.constant 0 : index
    %20 = vector.load %arg2[%c2_12, %c0_13, %c0_14] : memref<16x1x64xbf16, #tpu.memory_space<vmem>>, vector<1x1x64xbf16>
    %21 = vector.shape_cast %20 : vector<1x1x64xbf16> to vector<1x64xbf16>
    %22 = arith.extf %21 : vector<1x64xbf16> to vector<1x64xf32>
    %23 = vector.broadcast %22 : vector<1x64xf32> to vector<32x64xf32>
    %24 = arith.mulf %19, %23 : vector<32x64xf32>
    %25 = arith.addf %16, %24 : vector<32x64xf32>
    %c0_15 = arith.constant 0 : index
    %c3 = arith.constant 3 : index
    %c0_16 = arith.constant 0 : index
    %26 = vector.load %arg1[%c0_15, %c3, %c0_16] : memref<1x64x64xbf16, #tpu.memory_space<vmem>>, vector<1x32x64xbf16>
    %27 = vector.shape_cast %26 : vector<1x32x64xbf16> to vector<32x64xbf16>
    %28 = arith.extf %27 : vector<32x64xbf16> to vector<32x64xf32>
    %c3_17 = arith.constant 3 : index
    %c0_18 = arith.constant 0 : index
    %c0_19 = arith.constant 0 : index
    %29 = vector.load %arg2[%c3_17, %c0_18, %c0_19] : memref<16x1x64xbf16, #tpu.memory_space<vmem>>, vector<1x1x64xbf16>
    %30 = vector.shape_cast %29 : vector<1x1x64xbf16> to vector<1x64xbf16>
    %31 = arith.extf %30 : vector<1x64xbf16> to vector<1x64xf32>
    %32 = vector.broadcast %31 : vector<1x64xf32> to vector<32x64xf32>
    %33 = arith.mulf %28, %32 : vector<32x64xf32>
    %34 = arith.addf %25, %33 : vector<32x64xf32>
    %c0_20 = arith.constant 0 : index
    %c6 = arith.constant 6 : index
    %c0_21 = arith.constant 0 : index
    %35 = vector.load %arg1[%c0_20, %c6, %c0_21] : memref<1x64x64xbf16, #tpu.memory_space<vmem>>, vector<1x32x64xbf16>
    %36 = vector.shape_cast %35 : vector<1x32x64xbf16> to vector<32x64xbf16>
    %37 = arith.extf %36 : vector<32x64xbf16> to vector<32x64xf32>
    %c4 = arith.constant 4 : index
    %c0_22 = arith.constant 0 : index
    %c0_23 = arith.constant 0 : index
    %38 = vector.load %arg2[%c4, %c0_22, %c0_23] : memref<16x1x64xbf16, #tpu.memory_space<vmem>>, vector<1x1x64xbf16>
    %39 = vector.shape_cast %38 : vector<1x1x64xbf16> to vector<1x64xbf16>
    %40 = arith.extf %39 : vector<1x64xbf16> to vector<1x64xf32>
    %41 = vector.broadcast %40 : vector<1x64xf32> to vector<32x64xf32>
    %42 = arith.mulf %37, %41 : vector<32x64xf32>
    %43 = arith.addf %34, %42 : vector<32x64xf32>
    %c0_24 = arith.constant 0 : index
    %c7 = arith.constant 7 : index
    %c0_25 = arith.constant 0 : index
    %44 = vector.load %arg1[%c0_24, %c7, %c0_25] : memref<1x64x64xbf16, #tpu.memory_space<vmem>>, vector<1x32x64xbf16>
    %45 = vector.shape_cast %44 : vector<1x32x64xbf16> to vector<32x64xbf16>
    %46 = arith.extf %45 : vector<32x64xbf16> to vector<32x64xf32>
    %c5 = arith.constant 5 : index
    %c0_26 = arith.constant 0 : index
    %c0_27 = arith.constant 0 : index
    %47 = vector.load %arg2[%c5, %c0_26, %c0_27] : memref<16x1x64xbf16, #tpu.memory_space<vmem>>, vector<1x1x64xbf16>
    %48 = vector.shape_cast %47 : vector<1x1x64xbf16> to vector<1x64xbf16>
    %49 = arith.extf %48 : vector<1x64xbf16> to vector<1x64xf32>
    %50 = vector.broadcast %49 : vector<1x64xf32> to vector<32x64xf32>
    %51 = arith.mulf %46, %50 : vector<32x64xf32>
    %52 = arith.addf %43, %51 : vector<32x64xf32>
    %c0_28 = arith.constant 0 : index
    %c8 = arith.constant 8 : index
    %c0_29 = arith.constant 0 : index
    %53 = vector.load %arg1[%c0_28, %c8, %c0_29] : memref<1x64x64xbf16, #tpu.memory_space<vmem>>, vector<1x32x64xbf16>
    %54 = vector.shape_cast %53 : vector<1x32x64xbf16> to vector<32x64xbf16>
    %55 = arith.extf %54 : vector<32x64xbf16> to vector<32x64xf32>
    %c6_30 = arith.constant 6 : index
    %c0_31 = arith.constant 0 : index
    %c0_32 = arith.constant 0 : index
    %56 = vector.load %arg2[%c6_30, %c0_31, %c0_32] : memref<16x1x64xbf16, #tpu.memory_space<vmem>>, vector<1x1x64xbf16>
    %57 = vector.shape_cast %56 : vector<1x1x64xbf16> to vector<1x64xbf16>
    %58 = arith.extf %57 : vector<1x64xbf16> to vector<1x64xf32>
    %59 = vector.broadcast %58 : vector<1x64xf32> to vector<32x64xf32>
    %60 = arith.mulf %55, %59 : vector<32x64xf32>
    %61 = arith.addf %52, %60 : vector<32x64xf32>
    %c0_33 = arith.constant 0 : index
    %c9 = arith.constant 9 : index
    %c0_34 = arith.constant 0 : index
    %62 = vector.load %arg1[%c0_33, %c9, %c0_34] : memref<1x64x64xbf16, #tpu.memory_space<vmem>>, vector<1x32x64xbf16>
    %63 = vector.shape_cast %62 : vector<1x32x64xbf16> to vector<32x64xbf16>
    %64 = arith.extf %63 : vector<32x64xbf16> to vector<32x64xf32>
    %c7_35 = arith.constant 7 : index
    %c0_36 = arith.constant 0 : index
    %c0_37 = arith.constant 0 : index
    %65 = vector.load %arg2[%c7_35, %c0_36, %c0_37] : memref<16x1x64xbf16, #tpu.memory_space<vmem>>, vector<1x1x64xbf16>
    %66 = vector.shape_cast %65 : vector<1x1x64xbf16> to vector<1x64xbf16>
    %67 = arith.extf %66 : vector<1x64xbf16> to vector<1x64xf32>
    %68 = vector.broadcast %67 : vector<1x64xf32> to vector<32x64xf32>
    %69 = arith.mulf %64, %68 : vector<32x64xf32>
    %70 = arith.addf %61, %69 : vector<32x64xf32>
    %c0_38 = arith.constant 0 : index
    %c12 = arith.constant 12 : index
    %c0_39 = arith.constant 0 : index
    %71 = vector.load %arg1[%c0_38, %c12, %c0_39] : memref<1x64x64xbf16, #tpu.memory_space<vmem>>, vector<1x32x64xbf16>
    %72 = vector.shape_cast %71 : vector<1x32x64xbf16> to vector<32x64xbf16>
    %73 = arith.extf %72 : vector<32x64xbf16> to vector<32x64xf32>
    %c8_40 = arith.constant 8 : index
    %c0_41 = arith.constant 0 : index
    %c0_42 = arith.constant 0 : index
    %74 = vector.load %arg2[%c8_40, %c0_41, %c0_42] : memref<16x1x64xbf16, #tpu.memory_space<vmem>>, vector<1x1x64xbf16>
    %75 = vector.shape_cast %74 : vector<1x1x64xbf16> to vector<1x64xbf16>
    %76 = arith.extf %75 : vector<1x64xbf16> to vector<1x64xf32>
    %77 = vector.broadcast %76 : vector<1x64xf32> to vector<32x64xf32>
    %78 = arith.mulf %73, %77 : vector<32x64xf32>
    %79 = arith.addf %70, %78 : vector<32x64xf32>
    %c0_43 = arith.constant 0 : index
    %c13 = arith.constant 13 : index
    %c0_44 = arith.constant 0 : index
    %80 = vector.load %arg1[%c0_43, %c13, %c0_44] : memref<1x64x64xbf16, #tpu.memory_space<vmem>>, vector<1x32x64xbf16>
    %81 = vector.shape_cast %80 : vector<1x32x64xbf16> to vector<32x64xbf16>
    %82 = arith.extf %81 : vector<32x64xbf16> to vector<32x64xf32>
    %c9_45 = arith.constant 9 : index
    %c0_46 = arith.constant 0 : index
    %c0_47 = arith.constant 0 : index
    %83 = vector.load %arg2[%c9_45, %c0_46, %c0_47] : memref<16x1x64xbf16, #tpu.memory_space<vmem>>, vector<1x1x64xbf16>
    %84 = vector.shape_cast %83 : vector<1x1x64xbf16> to vector<1x64xbf16>
    %85 = arith.extf %84 : vector<1x64xbf16> to vector<1x64xf32>
    %86 = vector.broadcast %85 : vector<1x64xf32> to vector<32x64xf32>
    %87 = arith.mulf %82, %86 : vector<32x64xf32>
    %88 = arith.addf %79, %87 : vector<32x64xf32>
    %c0_48 = arith.constant 0 : index
    %c14 = arith.constant 14 : index
    %c0_49 = arith.constant 0 : index
    %89 = vector.load %arg1[%c0_48, %c14, %c0_49] : memref<1x64x64xbf16, #tpu.memory_space<vmem>>, vector<1x32x64xbf16>
    %90 = vector.shape_cast %89 : vector<1x32x64xbf16> to vector<32x64xbf16>
    %91 = arith.extf %90 : vector<32x64xbf16> to vector<32x64xf32>
    %c10 = arith.constant 10 : index
    %c0_50 = arith.constant 0 : index
    %c0_51 = arith.constant 0 : index
    %92 = vector.load %arg2[%c10, %c0_50, %c0_51] : memref<16x1x64xbf16, #tpu.memory_space<vmem>>, vector<1x1x64xbf16>
    %93 = vector.shape_cast %92 : vector<1x1x64xbf16> to vector<1x64xbf16>
    %94 = arith.extf %93 : vector<1x64xbf16> to vector<1x64xf32>
    %95 = vector.broadcast %94 : vector<1x64xf32> to vector<32x64xf32>
    %96 = arith.mulf %91, %95 : vector<32x64xf32>
    %97 = arith.addf %88, %96 : vector<32x64xf32>
    %c0_52 = arith.constant 0 : index
    %c15 = arith.constant 15 : index
    %c0_53 = arith.constant 0 : index
    %98 = vector.load %arg1[%c0_52, %c15, %c0_53] : memref<1x64x64xbf16, #tpu.memory_space<vmem>>, vector<1x32x64xbf16>
    %99 = vector.shape_cast %98 : vector<1x32x64xbf16> to vector<32x64xbf16>
    %100 = arith.extf %99 : vector<32x64xbf16> to vector<32x64xf32>
    %c11 = arith.constant 11 : index
    %c0_54 = arith.constant 0 : index
    %c0_55 = arith.constant 0 : index
    %101 = vector.load %arg2[%c11, %c0_54, %c0_55] : memref<16x1x64xbf16, #tpu.memory_space<vmem>>, vector<1x1x64xbf16>
    %102 = vector.shape_cast %101 : vector<1x1x64xbf16> to vector<1x64xbf16>
    %103 = arith.extf %102 : vector<1x64xbf16> to vector<1x64xf32>
    %104 = vector.broadcast %103 : vector<1x64xf32> to vector<32x64xf32>
    %105 = arith.mulf %100, %104 : vector<32x64xf32>
    %106 = arith.addf %97, %105 : vector<32x64xf32>
    %c0_56 = arith.constant 0 : index
    %c18 = arith.constant 18 : index
    %c0_57 = arith.constant 0 : index
    %107 = vector.load %arg1[%c0_56, %c18, %c0_57] : memref<1x64x64xbf16, #tpu.memory_space<vmem>>, vector<1x32x64xbf16>
    %108 = vector.shape_cast %107 : vector<1x32x64xbf16> to vector<32x64xbf16>
    %109 = arith.extf %108 : vector<32x64xbf16> to vector<32x64xf32>
    %c12_58 = arith.constant 12 : index
    %c0_59 = arith.constant 0 : index
    %c0_60 = arith.constant 0 : index
    %110 = vector.load %arg2[%c12_58, %c0_59, %c0_60] : memref<16x1x64xbf16, #tpu.memory_space<vmem>>, vector<1x1x64xbf16>
    %111 = vector.shape_cast %110 : vector<1x1x64xbf16> to vector<1x64xbf16>
    %112 = arith.extf %111 : vector<1x64xbf16> to vector<1x64xf32>
    %113 = vector.broadcast %112 : vector<1x64xf32> to vector<32x64xf32>
    %114 = arith.mulf %109, %113 : vector<32x64xf32>
    %115 = arith.addf %106, %114 : vector<32x64xf32>
    %c0_61 = arith.constant 0 : index
    %c19 = arith.constant 19 : index
    %c0_62 = arith.constant 0 : index
    %116 = vector.load %arg1[%c0_61, %c19, %c0_62] : memref<1x64x64xbf16, #tpu.memory_space<vmem>>, vector<1x32x64xbf16>
    %117 = vector.shape_cast %116 : vector<1x32x64xbf16> to vector<32x64xbf16>
    %118 = arith.extf %117 : vector<32x64xbf16> to vector<32x64xf32>
    %c13_63 = arith.constant 13 : index
    %c0_64 = arith.constant 0 : index
    %c0_65 = arith.constant 0 : index
    %119 = vector.load %arg2[%c13_63, %c0_64, %c0_65] : memref<16x1x64xbf16, #tpu.memory_space<vmem>>, vector<1x1x64xbf16>
    %120 = vector.shape_cast %119 : vector<1x1x64xbf16> to vector<1x64xbf16>
    %121 = arith.extf %120 : vector<1x64xbf16> to vector<1x64xf32>
    %122 = vector.broadcast %121 : vector<1x64xf32> to vector<32x64xf32>
    %123 = arith.mulf %118, %122 : vector<32x64xf32>
    %124 = arith.addf %115, %123 : vector<32x64xf32>
    %c0_66 = arith.constant 0 : index
    %c20 = arith.constant 20 : index
    %c0_67 = arith.constant 0 : index
    %125 = vector.load %arg1[%c0_66, %c20, %c0_67] : memref<1x64x64xbf16, #tpu.memory_space<vmem>>, vector<1x32x64xbf16>
    %126 = vector.shape_cast %125 : vector<1x32x64xbf16> to vector<32x64xbf16>
    %127 = arith.extf %126 : vector<32x64xbf16> to vector<32x64xf32>
    %c14_68 = arith.constant 14 : index
    %c0_69 = arith.constant 0 : index
    %c0_70 = arith.constant 0 : index
    %128 = vector.load %arg2[%c14_68, %c0_69, %c0_70] : memref<16x1x64xbf16, #tpu.memory_space<vmem>>, vector<1x1x64xbf16>
    %129 = vector.shape_cast %128 : vector<1x1x64xbf16> to vector<1x64xbf16>
    %130 = arith.extf %129 : vector<1x64xbf16> to vector<1x64xf32>
    %131 = vector.broadcast %130 : vector<1x64xf32> to vector<32x64xf32>
    %132 = arith.mulf %127, %131 : vector<32x64xf32>
    %133 = arith.addf %124, %132 : vector<32x64xf32>
    %c0_71 = arith.constant 0 : index
    %c21 = arith.constant 21 : index
    %c0_72 = arith.constant 0 : index
    %134 = vector.load %arg1[%c0_71, %c21, %c0_72] : memref<1x64x64xbf16, #tpu.memory_space<vmem>>, vector<1x32x64xbf16>
    %135 = vector.shape_cast %134 : vector<1x32x64xbf16> to vector<32x64xbf16>
    %136 = arith.extf %135 : vector<32x64xbf16> to vector<32x64xf32>
    %c15_73 = arith.constant 15 : index
    %c0_74 = arith.constant 0 : index
    %c0_75 = arith.constant 0 : index
    %137 = vector.load %arg2[%c15_73, %c0_74, %c0_75] : memref<16x1x64xbf16, #tpu.memory_space<vmem>>, vector<1x1x64xbf16>
    %138 = vector.shape_cast %137 : vector<1x1x64xbf16> to vector<1x64xbf16>
    %139 = arith.extf %138 : vector<1x64xbf16> to vector<1x64xf32>
    %140 = vector.broadcast %139 : vector<1x64xf32> to vector<32x64xf32>
    %141 = arith.mulf %136, %140 : vector<32x64xf32>
    %142 = arith.addf %133, %141 : vector<32x64xf32>
    %cst = arith.constant dense<0.000000e+00> : vector<32xf32>
    %143 = vector.multi_reduction <add>, %142, %cst [1] : vector<32x64xf32> to vector<32xf32>
    %144 = vector.shape_cast %143 : vector<32xf32> to vector<32x1xf32>
    %c0_76 = arith.constant 0 : index
    %c0_77 = arith.constant 0 : index
    %145 = vector.load %arg3[%c0_76, %c0_77] : memref<1x1xf32, #tpu.memory_space<vmem>>, vector<1x1xf32>
    %146 = vector.broadcast %145 : vector<1x1xf32> to vector<32x1xf32>
    %147 = arith.addf %144, %146 : vector<32x1xf32>
    %cst_78 = arith.constant 0.000000e+00 : f32
    %148 = vector.broadcast %cst_78 : f32 to vector<32x1xf32>
    %149 = arith.subf %148, %147 : vector<32x1xf32>
    %150 = math.exp %149 : vector<32x1xf32>
    %cst_79 = arith.constant 1.000000e+00 : f32
    %151 = vector.broadcast %cst_79 : f32 to vector<32x1xf32>
    %152 = arith.addf %151, %150 : vector<32x1xf32>
    %153 = tpu.reciprocal %152 : vector<32x1xf32> -> vector<32x1xf32>
    %c0_80 = arith.constant 0 : index
    %c0_81 = arith.constant 0 : index
    %c0_82 = arith.constant 0 : index
    %154 = vector.load %arg4[%c0_80, %c0_81, %c0_82] : memref<1x32x1xf32, #tpu.memory_space<vmem>>, vector<1x32x1xf32>
    %155 = vector.shape_cast %154 : vector<1x32x1xf32> to vector<32x1xf32>
    %156 = vector.shape_cast %153 : vector<32x1xf32> to vector<1x32x1xf32>
    tpu.vector_store %arg4[%c0_80, %c0_81, %c0_82], %156 {strides = array<i32>} : memref<1x32x1xf32, #tpu.memory_space<vmem>>, vector<1x32x1xf32>,
    return
  }
  func.func @transform_0(%arg0: i32) -> (i32, i32, i32) {
    %c0_i32 = arith.constant 0 : i32
    %c0_i32_0 = arith.constant 0 : i32
    %c0_i32_1 = arith.constant 0 : i32
    return %arg0, %c0_i32, %c0_i32_0 : i32, i32, i32
  }
  func.func @transform_1(%arg0: i32) -> (i32, i32, i32) {
    %c0_i32 = arith.constant 0 : i32
    %c0_i32_0 = arith.constant 0 : i32
    %c0_i32_1 = arith.constant 0 : i32
    %c0_i32_2 = arith.constant 0 : i32
    return %c0_i32, %c0_i32_0, %c0_i32_1 : i32, i32, i32
  }
  func.func @transform_2(%arg0: i32) -> (i32, i32) {
    %c0_i32 = arith.constant 0 : i32
    %c0_i32_0 = arith.constant 0 : i32
    %c0_i32_1 = arith.constant 0 : i32
    return %c0_i32, %c0_i32_0 : i32, i32
  }
  func.func @transform_3(%arg0: i32) -> (i32, i32, i32) {
    %c0_i32 = arith.constant 0 : i32
    %c0_i32_0 = arith.constant 0 : i32
    %c0_i32_1 = arith.constant 0 : i32
    return %arg0, %c0_i32, %c0_i32_0 : i32, i32, i32
  }
}

</mosaic_0001>

<bundles_post_ra>
// kernel: discriminator_forward.5
= control target key start
LH: loop header
LB: loop body
LE: loop exit
PB: predicated region body
PF: predicated region fallthrough
CT: control target
= control target key end

     0   :  { %s3664_s12 = smov 0   ;;  %s4439_s0 = inlined_call_operand.vmem [shape: bf16[2,1056,48], index: 0, kind: input, shape index: {}]   ;;  %s4440_s1 = inlined_call_operand.vmem [shape: bf16[1,48,8], index: 1, kind: input, shape index: {}]   ;;  %s4441_s2 = inlined_call_operand.vmem [shape: f32[1,8], index: 2, kind: input, shape index: {}]   ;;  %s4442_s3 = inlined_call_operand.vmem [shape: bf16[2,1056,8], index: 3, kind: output, shape index: {}]  }
   0x1 LB: > { %s2725_s13 = sadd.s32 4294967295, %s3640_s12   ;;  %p2729_p0 = scmp.ge.s32.totalorder %s3640_s12, 1  ;;  %s3640_s12 = sphi %s3664_s12, %s13_s12  }
   0x2   : > { %p137_p1 = scmp.lt.s32.totalorder %s3640_s12, 3 }
   0x4   : > { %p138_p2 = pnand %p2729_p0, %p137_p1 }
   0x5   : > { %v3549_v0 = vld [vmem:[%s4440_s1] sm:$0xff] (!%p138_p2)   ;;  %v3642_v1 = vmov (!%p138_p2), 0.0   ;;  %v3551_v3 = vld [vmem:[%s4440_s1 + $0x8] sm:$0xff] (!%p138_p2)   ;;  %vm3643_vm0 = vmmov (!%p138_p2), 0   ;;  %p161_p3 = scmp.lt.s32.totalorder (!%p138_p2), %s2725_s13, 1  ;;  %v3553_v5 = vld [vmem:[%s4440_s1 + $0x10] sm:$0xff] (!%p138_p2)  }
   0x6   : > { %141 = sbr.rel (%p138_p2) target bundleno = 498 (0x1f2), region = 32  ;;  %3238 = vmatprep.subr.bf16.mxu0 (!%p138_p2), %v3642_v1  ;;  %3288 = vmatprep.subr.bf16.mxu1 (!%p138_p2), %v3642_v1  ;;  %v3550_v2 = vld [vmem:[%s4440_s1] sm:$0xff] (!%p138_p2)   ;;  %v3552_v4 = vld [vmem:[%s4440_s1 + $0x8] sm:$0xff] (!%p138_p2)   ;;  %v3554_v6 = vld [vmem:[%s4440_s1 + $0x10] sm:$0xff] (!%p138_p2)   ;;  %vm280_vm1 = vcmask (!%p138_p2), 392192   ;;  %vm567_vm2 = vcmask (!%p138_p2), 60416  }
   0x7   : > { %3239 = vmatpush3.bf16.msra.mxu0 (!%p138_p2), %v3549_v0  ;;  %3244 = vmatprep.mubr.msk.bf16.mxu0 (!%p138_p2), %vm3643_vm0, %v3642_v1  ;;  %v3557_v7 = vld [vmem:[%s4440_s1] sm:$0xff] (!%p138_p2)   ;;  %v3565_v11 = vld [vmem:[%s4440_s1 + $0x8] sm:$0xff] (!%p138_p2)   ;;  %v3575_v17 = vld [vmem:[%s4440_s1 + $0x10] sm:$0xff] (!%p138_p2)  }
   0x8   : > { %3289 = vmatpush3.bf16.msra.mxu1 (!%p138_p2), %v3550_v2  ;;  %3240 = vmatprep.subr.bf16.mxu0 (!%p138_p2), %v3642_v1  ;;  %v3558_v10 = vld [vmem:[%s4440_s1] sm:$0xff] (!%p138_p2)   ;;  %v3566_v13 = vld [vmem:[%s4440_s1 + $0x8] sm:$0xff] (!%p138_p2)   ;;  %v3576_v18 = vld [vmem:[%s4440_s1 + $0x10] sm:$0xff] (!%p138_p2)  }
   0x9   : > { %3290 = vmatprep.subr.bf16.mxu1 (!%p138_p2), %v3642_v1  ;;  %3294 = vmatprep.mubr.msk.bf16.mxu1 (!%p138_p2), %vm3643_vm0, %v3642_v1  ;;  %v3585_v37 = vld [vmem:[%s4440_s1] sm:$0xff] (!%p138_p2)   ;;  %v3593_v39 = vld [vmem:[%s4440_s1 + $0x8] sm:$0xff] (!%p138_p2)   ;;  %v3603_v43 = vld [vmem:[%s4440_s1 + $0x10] sm:$0xff] (!%p138_p2)  }
   0xa   : > { %v3586_v38 = vld [vmem:[%s4440_s1] sm:$0xff] (!%p138_p2)   ;;  %v3594_v40 = vld [vmem:[%s4440_s1 + $0x8] sm:$0xff] (!%p138_p2)   ;;  %v3604_v44 = vld [vmem:[%s4440_s1 + $0x10] sm:$0xff] (!%p138_p2)  }
   0xb   : > { %3241 = vmatpush3.bf16.msra.mxu0 (!%p138_p2), %v3551_v3 }
   0xc   : > { %3291 = vmatpush3.bf16.msra.mxu1 (!%p138_p2), %v3552_v4  ;;  %3242 = vmatprep.subr.bf16.mxu0 (!%p138_p2), %v3642_v1 }
   0xd   : > { %s4444_s13 = smov (!%p161_p3, %s2725_s13), 1  ;;  %3292 = vmatprep.subr.bf16.mxu1 %v3642_v1 }
   0xe   : > { %s3538_s24 = smul.u32 528, %s4444_s13 }
   0xf   : > { %3243 = vmatpush3.bf16.msra.mxu0 %v3553_v5 }
  0x10   : > { %s3708_s29 = scalar_lea.vmem %s4439_s0, %s3538_s24  ;;  %3293 = vmatpush3.bf16.msra.mxu1 %v3554_v6  ;;  %3338 = vmatprep.subr.bf16.mxu0 %v3642_v1  ;;  %s3991_s8 = scalar_lea.vmem %s4442_s3, %s3538_s24 }
  0x11   : > { %v3555_v8 = vld [vmem:[%s3708_s29] sm:$0xff]   ;;  %v3556_v9 = vld [vmem:[%s3708_s29 + $0x58] sm:$0xff]   ;;  %3388 = vmatprep.subr.bf16.mxu1 %v3642_v1  ;;  %v3559_v12 = vld [vmem:[%s3708_s29 + $0x8] sm:$0xff]  }
  0x12   : > { %3245 = vmatmul.mubr.msk.bf16.vlgmr.msra.gmra.mrb[0].mxu0 %vm280_vm1, %v3555_v8  ;;  %v3560_v14 = vld [vmem:[%s3708_s29 + $0x60] sm:$0xff]   ;;  %v3561_v15 = vld [vmem:[%s3708_s29 + $0x10] sm:$0xff]   ;;  %v3562_v16 = vld [vmem:[%s3708_s29 + $0x68] sm:$0xff]  }
  0x13   : > { %3295 = vmatmul.mubr.msk.bf16.vlgmr.msra.gmra.mrb[0].mxu1 %vm280_vm1, %v3556_v9  ;;  %3339 = vmatpush3.bf16.msra.mxu0 %v3557_v7  ;;  %v3563_v19 = vld [vmem:[%s3708_s29 + $0x18] sm:$0xff]   ;;  %v3564_v20 = vld [vmem:[%s3708_s29 + $0x70] sm:$0xff]   ;;  %v3567_v21 = vld [vmem:[%s3708_s29 + $0x20] sm:$0xff]  }
  0x14   : > { %3389 = vmatpush3.bf16.msra.mxu1 %v3558_v10  ;;  %3248 = vmatprep.mubr.msk.bf16.mxu0 %vm3643_vm0, %v3642_v1  ;;  %v3568_v22 = vld [vmem:[%s3708_s29 + $0x78] sm:$0xff]   ;;  %v3569_v23 = vld [vmem:[%s3708_s29 + $0x28] sm:$0xff]   ;;  %v3570_v24 = vld [vmem:[%s3708_s29 + $0x80] sm:$0xff]  }
  0x15   : > { %3298 = vmatprep.mubr.msk.bf16.mxu1 %vm3643_vm0, %v3642_v1  ;;  %3340 = vmatprep.subr.bf16.mxu0 %v3642_v1  ;;  %v3571_v25 = vld [vmem:[%s3708_s29 + $0x30] sm:$0xff]   ;;  %v3572_v26 = vld [vmem:[%s3708_s29 + $0x88] sm:$0xff]   ;;  %v3573_v27 = vld [vmem:[%s3708_s29 + $0x38] sm:$0xff]  }
  0x16   : > { %3390 = vmatprep.subr.bf16.mxu1 %v3642_v1  ;;  %v3574_v28 = vld [vmem:[%s3708_s29 + $0x90] sm:$0xff]   ;;  %v3577_v29 = vld [vmem:[%s3708_s29 + $0x40] sm:$0xff]   ;;  %v3578_v30 = vld [vmem:[%s3708_s29 + $0x98] sm:$0xff]  }
  0x17   : > { %3341 = vmatpush3.bf16.msra.mxu0 %v3565_v11  ;;  %v3579_v31 = vld [vmem:[%s3708_s29 + $0x48] sm:$0xff]   ;;  %v3580_v32 = vld [vmem:[%s3708_s29 + $0xa0] sm:$0xff]   ;;  %v3581_v33 = vld [vmem:[%s3708_s29 + $0x50] sm:$0xff]  }
  0x18   : > { %3391 = vmatpush3.bf16.msra.mxu1 %v3566_v13  ;;  %3342 = vmatprep.subr.bf16.mxu0 %v3642_v1  ;;  %v3582_v34 = vld [vmem:[%s3708_s29 + $0xa8] sm:$0xff]   ;;  %v3583_v35 = vld [vmem:[%s3708_s29 + $0xb0] sm:$0xff]   ;;  %v3587_v41 = vld [vmem:[%s3708_s29 + $0xb8] sm:$0xff]  }
  0x19   : > { %3392 = vmatprep.subr.bf16.mxu1 %v3642_v1  ;;  %v3584_v36 = vld [vmem:[%s3708_s29 + $0x108] sm:$0xff]   ;;  %v3588_v42 = vld [vmem:[%s3708_s29 + $0x110] sm:$0xff]   ;;  %v3589_v45 = vld [vmem:[%s3708_s29 + $0xc0] sm:$0xff]  }
  0x1a   : > { %3249 = vmatmul.mubr.msk.bf16.gmra.mrb[4].mxu0 %vm280_vm1, %v3559_v12  ;;  %v3590_v46 = vld [vmem:[%s3708_s29 + $0x118] sm:$0xff]   ;;  %v3591_v47 = vld [vmem:[%s3708_s29 + $0xc8] sm:$0xff]   ;;  %v3592_v48 = vld [vmem:[%s3708_s29 + $0x120] sm:$0xff]  }
  0x1b   : > { %3299 = vmatmul.mubr.msk.bf16.gmra.mrb[4].mxu1 %vm280_vm1, %v3560_v14  ;;  %3252 = vmatprep.mubr.msk.bf16.mxu0 %vm3643_vm0, %v3642_v1  ;;  %v3595_v49 = vld [vmem:[%s3708_s29 + $0xd0] sm:$0xff]   ;;  %v3596_v50 = vld [vmem:[%s3708_s29 + $0x128] sm:$0xff]   ;;  %v3597_v51 = vld [vmem:[%s3708_s29 + $0xd8] sm:$0xff]  }
  0x1c   : > { %3302 = vmatprep.mubr.msk.bf16.mxu1 %vm3643_vm0, %v3642_v1  ;;  %3343 = vmatpush3.bf16.msra.mxu0 %v3575_v17  ;;  %v3598_v52 = vld [vmem:[%s3708_s29 + $0x130] sm:$0xff]   ;;  %v3599_v53 = vld [vmem:[%s3708_s29 + $0xe0] sm:$0xff]   ;;  %v3600_v54 = vld [vmem:[%s3708_s29 + $0x138] sm:$0xff]  }
  0x1d   : > { %3393 = vmatpush3.bf16.msra.mxu1 %v3576_v18  ;;  %3438 = vmatprep.subr.bf16.mxu0 %v3642_v1  ;;  %v3601_v55 = vld [vmem:[%s3708_s29 + $0xe8] sm:$0xff]   ;;  %v3602_v56 = vld [vmem:[%s3708_s29 + $0x140] sm:$0xff]   ;;  %v3605_v57 = vld [vmem:[%s3708_s29 + $0xf0] sm:$0xff]  }
  0x1e   : > { %3488 = vmatprep.subr.bf16.mxu1 %v3642_v1  ;;  %v3606_v58 = vld [vmem:[%s3708_s29 + $0x148] sm:$0xff]   ;;  %v3607_v59 = vld [vmem:[%s3708_s29 + $0xf8] sm:$0xff]   ;;  %v3608_v60 = vld [vmem:[%s3708_s29 + $0x150] sm:$0xff]  }
  0x1f   : > { %v3609_v61 = vld [vmem:[%s3708_s29 + $0x100] sm:$0xff]   ;;  %v3610_v62 = vld [vmem:[%s3708_s29 + $0x158] sm:$0xff]   ;;  %v3613_v2 = vld [vmem:[%s3708_s29 + $0x168] sm:$0xff]  }
  0x20   : > { %v3611_v63 = vld [vmem:[%s3708_s29 + $0x160] sm:$0xff]   ;;  %v3612_v0 = vld [vmem:[%s3708_s29 + $0x1b8] sm:$0xff]   ;;  %v3615_v4 = vld [vmem:[%s3708_s29 + $0x170] sm:$0xff]  }
  0x21   : > { %v3614_v3 = vld [vmem:[%s3708_s29 + $0x1c0] sm:$0xff]   ;;  %v3616_v5 = vld [vmem:[%s3708_s29 + $0x1c8] sm:$0xff]   ;;  %v3617_v6 = vld [vmem:[%s3708_s29 + $0x178] sm:$0xff]  }
  0x22   : > { %3253 = vmatmul.mubr.msk.bf16.gmra.mrb[8].mxu0 %vm280_vm1, %v3561_v15  ;;  %v3618_v7 = vld [vmem:[%s3708_s29 + $0x1d0] sm:$0xff]   ;;  %v3619_v8 = vld [vmem:[%s3708_s29 + $0x180] sm:$0xff]   ;;  %v3620_v9 = vld [vmem:[%s3708_s29 + $0x1d8] sm:$0xff]  }
  0x23   : > { %3303 = vmatmul.mubr.msk.bf16.gmra.mrb[8].mxu1 %vm280_vm1, %v3562_v16  ;;  %3256 = vmatprep.mubr.msk.bf16.mxu0 %vm3643_vm0, %v3642_v1  ;;  %v3973_v10 = vld [vmem:[%s4441_s2] ss:$0 sm:$0xff]  ;;  %v3621_v15 = vld [vmem:[%s3708_s29 + $0x188] sm:$0xff]  }
  0x24   : > { %3306 = vmatprep.mubr.msk.bf16.mxu1 %vm3643_vm0, %v3642_v1 }
  0x2a   : > { %3257 = vmatmul.mubr.msk.bf16.gmra.mrb[12].mxu0 %vm280_vm1, %v3563_v19  ;;  %v3622_v19 = vld [vmem:[%s3708_s29 + $0x1e0] sm:$0xff]  }
  0x2b   : > { %3307 = vmatmul.mubr.msk.bf16.gmra.mrb[12].mxu1 %vm280_vm1, %v3564_v20  ;;  %3260 = vmatprep.mubr.msk.bf16.mxu0 %vm3643_vm0, %v3642_v1 }
  0x2c   : > { %3310 = vmatprep.mubr.msk.bf16.mxu1 %vm3643_vm0, %v3642_v1 }
  0x32   : > { %3261 = vmatmul.mubr.msk.bf16.gmra.mrb[16].mxu0 %vm280_vm1, %v3567_v21 }
  0x33   : > { %3311 = vmatmul.mubr.msk.bf16.gmra.mrb[16].mxu1 %vm280_vm1, %v3568_v22  ;;  %3264 = vmatprep.mubr.msk.bf16.mxu0 %vm3643_vm0, %v3642_v1 }
  0x34   : > { %3314 = vmatprep.mubr.msk.bf16.mxu1 %vm3643_vm0, %v3642_v1 }
  0x3a   : > { %3265 = vmatmul.mubr.msk.bf16.gmra.mrb[20].mxu0 %vm280_vm1, %v3569_v23 }
  0x3b   : > { %3315 = vmatmul.mubr.msk.bf16.gmra.mrb[20].mxu1 %vm280_vm1, %v3570_v24  ;;  %3268 = vmatprep.mubr.msk.bf16.mxu0 %vm3643_vm0, %v3642_v1 }
  0x3c   : > { %3318 = vmatprep.mubr.msk.bf16.mxu1 %vm3643_vm0, %v3642_v1 }
  0x42   : > { %3269 = vmatmul.mubr.msk.bf16.gmra.mrb[24].mxu0 %vm280_vm1, %v3571_v25 }
  0x43   : > { %3319 = vmatmul.mubr.msk.bf16.gmra.mrb[24].mxu1 %vm280_vm1, %v3572_v26  ;;  %3272 = vmatprep.mubr.msk.bf16.mxu0 %vm3643_vm0, %v3642_v1 }
  0x44   : > { %3322 = vmatprep.mubr.msk.bf16.mxu1 %vm3643_vm0, %v3642_v1 }
  0x4a   : > { %3273 = vmatmul.mubr.msk.bf16.gmra.mrb[28].mxu0 %vm280_vm1, %v3573_v27 }
  0x4b   : > { %3323 = vmatmul.mubr.msk.bf16.gmra.mrb[28].mxu1 %vm280_vm1, %v3574_v28  ;;  %3276 = vmatprep.mubr.msk.bf16.mxu0 %vm3643_vm0, %v3642_v1 }
  0x4c   : > { %3326 = vmatprep.mubr.msk.bf16.mxu1 %vm3643_vm0, %v3642_v1 }
  0x52   : > { %3277 = vmatmul.mubr.msk.bf16.gmra.mrb[32].mxu0 %vm280_vm1, %v3577_v29 }
  0x53   : > { %3327 = vmatmul.mubr.msk.bf16.gmra.mrb[32].mxu1 %vm280_vm1, %v3578_v30  ;;  %3280 = vmatprep.mubr.msk.bf16.mxu0 %vm3643_vm0, %v3642_v1 }
  0x54   : > { %3330 = vmatprep.mubr.msk.bf16.mxu1 %vm3643_vm0, %v3642_v1 }
  0x5a   : > { %3281 = vmatmul.mubr.msk.bf16.gmra.mrb[36].mxu0 %vm280_vm1, %v3579_v31 }
  0x5b   : > { %3331 = vmatmul.mubr.msk.bf16.gmra.mrb[36].mxu1 %vm280_vm1, %v3580_v32  ;;  %3284 = vmatprep.mubr.msk.bf16.mxu0 %vm3643_vm0, %v3642_v1 }
  0x5c   : > { %3334 = vmatprep.mubr.msk.bf16.mxu1 %vm3643_vm0, %v3642_v1 }
  0x62   : > { %3285 = vmatmul.mubr.msk.bf16.gmra.mrb[40].mxu0 %vm280_vm1, %v3581_v33 }
  0x63   : > { %3335 = vmatmul.mubr.msk.bf16.gmra.mrb[40].mxu1 %vm280_vm1, %v3582_v34  ;;  %3344 = vmatprep.mubr.msk.bf16.mxu0 %vm3643_vm0, %v3642_v1 }
  0x64   : > { %3394 = vmatprep.mubr.msk.bf16.mxu1 %vm3643_vm0, %v3642_v1 }
  0x6a   : > { %3345 = vmatmul.mubr.msk.bf16.vlgmr.msra.gmra.mrb[44].mxu0 %vm280_vm1, %v3583_v35 }
  0x6b   : > { %3395 = vmatmul.mubr.msk.bf16.vlgmr.msra.gmra.mrb[44].mxu1 %vm280_vm1, %v3584_v36  ;;  %3439 = vmatpush3.bf16.msra.mxu0 %v3585_v37 }
  0x6c   : > { %3489 = vmatpush3.bf16.msra.mxu1 %v3586_v38  ;;  %3348 = vmatprep.mubr.msk.bf16.mxu0 %vm3643_vm0, %v3642_v1 }
  0x6d   : > { %3398 = vmatprep.mubr.msk.bf16.mxu1 %vm3643_vm0, %v3642_v1  ;;  %3440 = vmatprep.subr.bf16.mxu0 %v3642_v1 }
  0x6e   : > { %3490 = vmatprep.subr.bf16.mxu1 %v3642_v1 }
  0x6f   : > { %3441 = vmatpush3.bf16.msra.mxu0 %v3593_v39 }
  0x70   : > { %3491 = vmatpush3.bf16.msra.mxu1 %v3594_v40  ;;  %3442 = vmatprep.subr.bf16.mxu0 %v3642_v1  ;;  %v3623_v40 = vld [vmem:[%s3708_s29 + $0x190] sm:$0xff]  }
  0x71   : > { %3492 = vmatprep.subr.bf16.mxu1 %v3642_v1 }
  0x72   : > { %3349 = vmatmul.mubr.msk.bf16.gmra.mrb[48].mxu0 %vm280_vm1, %v3587_v41 }
  0x73   : > { %3399 = vmatmul.mubr.msk.bf16.gmra.mrb[48].mxu1 %vm280_vm1, %v3588_v42  ;;  %3352 = vmatprep.mubr.msk.bf16.mxu0 %vm3643_vm0, %v3642_v1 }
  0x74   : > { %3402 = vmatprep.mubr.msk.bf16.mxu1 %vm3643_vm0, %v3642_v1  ;;  %3443 = vmatpush3.bf16.msra.mxu0 %v3603_v43 }
  0x75   : > { %3493 = vmatpush3.bf16.msra.mxu1 %v3604_v44 }
  0x7a   : > { %3353 = vmatmul.mubr.msk.bf16.gmra.mrb[52].mxu0 %vm280_vm1, %v3589_v45  ;;  %v3624_v45 = vld [vmem:[%s3708_s29 + $0x1e8] sm:$0xff]  }
  0x7b   : > { %3403 = vmatmul.mubr.msk.bf16.gmra.mrb[52].mxu1 %vm280_vm1, %v3590_v46  ;;  %3356 = vmatprep.mubr.msk.bf16.mxu0 %vm3643_vm0, %v3642_v1 }
  0x7c   : > { %3406 = vmatprep.mubr.msk.bf16.mxu1 %vm3643_vm0, %v3642_v1 }
  0x82   : > { %3357 = vmatmul.mubr.msk.bf16.gmra.mrb[56].mxu0 %vm280_vm1, %v3591_v47 }
  0x83   : > { %3407 = vmatmul.mubr.msk.bf16.gmra.mrb[56].mxu1 %vm280_vm1, %v3592_v48  ;;  %3360 = vmatprep.mubr.msk.bf16.mxu0 %vm3643_vm0, %v3642_v1 }
  0x84   : > { %3410 = vmatprep.mubr.msk.bf16.mxu1 %vm3643_vm0, %v3642_v1 }
  0x8a   : > { %3361 = vmatmul.mubr.msk.bf16.gmra.mrb[60].mxu0 %vm280_vm1, %v3595_v49 }
  0x8b   : > { %3411 = vmatmul.mubr.msk.bf16.gmra.mrb[60].mxu1 %vm280_vm1, %v3596_v50  ;;  %3364 = vmatprep.mubr.msk.bf16.mxu0 %vm3643_vm0, %v3642_v1 }
  0x8c   : > { %3414 = vmatprep.mubr.msk.bf16.mxu1 %vm3643_vm0, %v3642_v1 }
  0x92   : > { %3365 = vmatmul.mubr.msk.bf16.gmra.mrb[64].mxu0 %vm280_vm1, %v3597_v51 }
  0x93   : > { %3415 = vmatmul.mubr.msk.bf16.gmra.mrb[64].mxu1 %vm280_vm1, %v3598_v52  ;;  %3368 = vmatprep.mubr.msk.bf16.mxu0 %vm3643_vm0, %v3642_v1 }
  0x94   : > { %3418 = vmatprep.mubr.msk.bf16.mxu1 %vm3643_vm0, %v3642_v1 }
  0x9a   : > { %3369 = vmatmul.mubr.msk.bf16.gmra.mrb[68].mxu0 %vm280_vm1, %v3599_v53 }
  0x9b   : > { %3419 = vmatmul.mubr.msk.bf16.gmra.mrb[68].mxu1 %vm280_vm1, %v3600_v54  ;;  %3372 = vmatprep.mubr.msk.bf16.mxu0 %vm3643_vm0, %v3642_v1 }
  0x9c   : > { %3422 = vmatprep.mubr.msk.bf16.mxu1 %vm3643_vm0, %v3642_v1 }
  0xa2   : > { %3373 = vmatmul.mubr.msk.bf16.gmra.mrb[72].mxu0 %vm280_vm1, %v3601_v55 }
  0xa3   : > { %3423 = vmatmul.mubr.msk.bf16.gmra.mrb[72].mxu1 %vm280_vm1, %v3602_v56  ;;  %3376 = vmatprep.mubr.msk.bf16.mxu0 %vm3643_vm0, %v3642_v1 }
  0xa4   : > { %3426 = vmatprep.mubr.msk.bf16.mxu1 %vm3643_vm0, %v3642_v1 }
  0xaa   : > { %3377 = vmatmul.mubr.msk.bf16.gmra.mrb[76].mxu0 %vm280_vm1, %v3605_v57 }
  0xab   : > { %3427 = vmatmul.mubr.msk.bf16.gmra.mrb[76].mxu1 %vm280_vm1, %v3606_v58  ;;  %3380 = vmatprep.mubr.msk.bf16.mxu0 %vm3643_vm0, %v3642_v1 }
  0xac   : > { %3430 = vmatprep.mubr.msk.bf16.mxu1 %vm3643_vm0, %v3642_v1 }
  0xb2   : > { %3381 = vmatmul.mubr.msk.bf16.gmra.mrb[80].mxu0 %vm280_vm1, %v3607_v59 }
  0xb3   : > { %3431 = vmatmul.mubr.msk.bf16.gmra.mrb[80].mxu1 %vm280_vm1, %v3608_v60  ;;  %3384 = vmatprep.mubr.msk.bf16.mxu0 %vm3643_vm0, %v3642_v1 }
  0xb4   : > { %3434 = vmatprep.mubr.msk.bf16.mxu1 %vm3643_vm0, %v3642_v1 }
  0xba   : > { %3385 = vmatmul.mubr.msk.bf16.gmra.mrb[84].mxu0 %vm280_vm1, %v3609_v61 }
  0xbb   : > { %3435 = vmatmul.mubr.msk.bf16.gmra.mrb[84].mxu1 %vm280_vm1, %v3610_v62  ;;  %3444 = vmatprep.mubr.msk.bf16.mxu0 %vm3643_vm0, %v3642_v1 }
  0xbc   : > { %3494 = vmatprep.mubr.msk.bf16.mxu1 %vm3643_vm0, %v3642_v1 }
  0xc2   : > { %3445 = vmatmul.mubr.msk.bf16.vlgmr.msra.gmra.mrb[88].mxu0 %vm280_vm1, %v3611_v63 }
  0xc3   : > { %3495 = vmatmul.mubr.msk.bf16.vlgmr.msra.gmra.mrb[88].mxu1 %vm280_vm1, %v3612_v0  ;;  %3448 = vmatprep.mubr.msk.bf16.mxu0 %vm3643_vm0, %v3642_v1 }
  0xc4   : > { %3498 = vmatprep.mubr.msk.bf16.mxu1 %vm3643_vm0, %v3642_v1 }
  0xca   : > { %3449 = vmatmul.mubr.msk.bf16.gmra.mrb[92].mxu0 %vm280_vm1, %v3613_v2 }
  0xcb   : > { %3499 = vmatmul.mubr.msk.bf16.gmra.mrb[92].mxu1 %vm280_vm1, %v3614_v3  ;;  %3452 = vmatprep.mubr.msk.bf16.mxu0 %vm3643_vm0, %v3642_v1  ;;  %v3625_v3 = vld [vmem:[%s3708_s29 + $0x198] sm:$0xff]  }
  0xcc   : > { %3502 = vmatprep.mubr.msk.bf16.mxu1 %vm3643_vm0, %v3642_v1 }
  0xd2   : > { %3453 = vmatmul.mubr.msk.bf16.gmra.mrb[96].mxu0 %vm280_vm1, %v3615_v4 }
  0xd3   : > { %3503 = vmatmul.mubr.msk.bf16.gmra.mrb[96].mxu1 %vm280_vm1, %v3616_v5  ;;  %3456 = vmatprep.mubr.msk.bf16.mxu0 %vm3643_vm0, %v3642_v1 }
  0xd4   : > { %3506 = vmatprep.mubr.msk.bf16.mxu1 %vm3643_vm0, %v3642_v1 }
  0xda   : > { %3457 = vmatmul.mubr.msk.bf16.gmra.mrb[100].mxu0 %vm280_vm1, %v3617_v6 }
  0xdb   : > { %3507 = vmatmul.mubr.msk.bf16.gmra.mrb[100].mxu1 %vm280_vm1, %v3618_v7  ;;  %3460 = vmatprep.mubr.msk.bf16.mxu0 %vm3643_vm0, %v3642_v1 }
  0xdc   : > { %3510 = vmatprep.mubr.msk.bf16.mxu1 %vm3643_vm0, %v3642_v1 }
  0xe2   : > { %3461 = vmatmul.mubr.msk.bf16.gmra.mrb[104].mxu0 %vm280_vm1, %v3619_v8  ;;  %v3626_v8 = vld [vmem:[%s3708_s29 + $0x1f0] sm:$0xff]  }
  0xe3   : > { %3511 = vmatmul.mubr.msk.bf16.gmra.mrb[104].mxu1 %vm280_vm1, %v3620_v9  ;;  %3464 = vmatprep.mubr.msk.bf16.mxu0 %vm3643_vm0, %v3642_v1 }
  0xe4   : > { %3514 = vmatprep.mubr.msk.bf16.mxu1 %vm3643_vm0, %v3642_v1 }
  0xe5   : > { %v348_v11 = vpop.f32.mrb[0].mxu0 }
  0xe6   : > { %v349_v12 = vadd.f32 %v3973_v10, %v348_v11  ;;  %v765_v13 = vpop.f32.mrb[0].mxu1  ;;  %v3246_v14 = vpop.f32.mrb[1].mxu0 }
  0xe7   : > { %v766_v16 = vadd.f32 %v3973_v10, %v765_v13  ;;  %v3296_v17 = vpop.f32.mrb[1].mxu1  ;;  %v351_v18 = vpop.f32.mrb[2].mxu0 }
  0xe8   : > { %v435_v20 = vmul.f32 0.2, %v349_v12  ;;  %v352_v21 = vadd.f32 %v3973_v10, %v351_v18  ;;  %v768_v22 = vpop.f32.mrb[2].mxu1  ;;  %v3247_v23 = vpop.f32.mrb[3].mxu0 }
  0xe9   : > { %v852_v24 = vmul.f32 0.2, %v766_v16  ;;  %v769_v25 = vadd.f32 %v3973_v10, %v768_v22  ;;  %v3297_v26 = vpop.f32.mrb[3].mxu1 }
  0xea   : > { %v457_v27 = vmax.f32 %v349_v12, %v435_v20  ;;  %v436_v28 = vmul.f32 0.2, %v352_v21  ;;  %3465 = vmatmul.mubr.msk.bf16.gmra.mrb[108].mxu0 %vm280_vm1, %v3621_v15 }
  0xeb   : > { %v874_v29 = vmax.f32 %v766_v16, %v852_v24  ;;  %v853_v30 = vmul.f32 0.2, %v769_v25  ;;  %3515 = vmatmul.mubr.msk.bf16.gmra.mrb[108].mxu1 %vm280_vm1, %v3622_v19  ;;  %3468 = vmatprep.mubr.msk.bf16.mxu0 %vm3643_vm0, %v3642_v1 }
  0xec   : > { %v3022_v31 = vpack.c.bf16 %v457_v27, %v457_v27  ;;  %v458_v32 = vmax.f32 %v352_v21, %v436_v28  ;;  %3518 = vmatprep.mubr.msk.bf16.mxu1 %vm3643_vm0, %v3642_v1 }
  0xed   : > { %v3044_v33 = vpack.c.bf16 %v874_v29, %v874_v29  ;;  %v875_v34 = vmax.f32 %v769_v25, %v853_v30  ;;  %v356_v35 = vpop.f32.mrb[4].mxu0  ;;  %v3627_v30 = vld [vmem:[%s3708_s29 + $0x1a0] sm:$0xff]  }
  0xee   : > { %568 = vst.msk [vmem:[%s3991_s8] sm:$0xf] %vm567_vm2, %v3022_v31  ;;  %v3023_v36 = vpack.c.bf16 %v458_v32, %v458_v32  ;;  %v357_v37 = vadd.f32 %v3973_v10, %v356_v35  ;;  %v773_v38 = vpop.f32.mrb[4].mxu1  ;;  %v3250_v39 = vpop.f32.mrb[5].mxu0  ;;  %v3628_v35 = vld [vmem:[%s3708_s29 + $0x1f8] sm:$0xff]  }
  0xef   : > { %984 = vst.msk [vmem:[%s3991_s8 + $0x58] sm:$0xf] %vm567_vm2, %v3044_v33  ;;  %v3045_v41 = vpack.c.bf16 %v875_v34, %v875_v34  ;;  %v774_v42 = vadd.f32 %v3973_v10, %v773_v38  ;;  %v3300_v43 = vpop.f32.mrb[5].mxu1  ;;  %v359_v44 = vpop.f32.mrb[6].mxu0 }
  0xf0   : > { %569 = vst.msk [vmem:[%s3991_s8 + $0x4] sm:$0xf] %vm567_vm2, %v3023_v36  ;;  %v437_v46 = vmul.f32 0.2, %v357_v37  ;;  %v360_v47 = vadd.f32 %v3973_v10, %v359_v44  ;;  %v776_v48 = vpop.f32.mrb[6].mxu1  ;;  %v3251_v49 = vpop.f32.mrb[7].mxu0 }
  0xf1   : > { %985 = vst.msk [vmem:[%s3991_s8 + $0x5c] sm:$0xf] %vm567_vm2, %v3045_v41  ;;  %v854_v50 = vmul.f32 0.2, %v774_v42  ;;  %v777_v51 = vadd.f32 %v3973_v10, %v776_v48  ;;  %v3301_v52 = vpop.f32.mrb[7].mxu1 }
  0xf2   : > { %v459_v53 = vmax.f32 %v357_v37, %v437_v46  ;;  %v438_v54 = vmul.f32 0.2, %v360_v47  ;;  %3469 = vmatmul.mubr.msk.bf16.gmra.mrb[112].mxu0 %vm280_vm1, %v3623_v40 }
  0xf3   : > { %v876_v55 = vmax.f32 %v774_v42, %v854_v50  ;;  %v855_v56 = vmul.f32 0.2, %v777_v51  ;;  %3519 = vmatmul.mubr.msk.bf16.gmra.mrb[112].mxu1 %vm280_vm1, %v3624_v45  ;;  %3472 = vmatprep.mubr.msk.bf16.mxu0 %vm3643_vm0, %v3642_v1 }
  0xf4   : > { %v3024_v57 = vpack.c.bf16 %v459_v53, %v459_v53  ;;  %v460_v58 = vmax.f32 %v360_v47, %v438_v54  ;;  %3522 = vmatprep.mubr.msk.bf16.mxu1 %vm3643_vm0, %v3642_v1 }
  0xf5   : > { %v3046_v59 = vpack.c.bf16 %v876_v55, %v876_v55  ;;  %v877_v60 = vmax.f32 %v777_v51, %v855_v56  ;;  %v364_v61 = vpop.f32.mrb[8].mxu0  ;;  %v3629_v56 = vld [vmem:[%s3708_s29 + $0x1a8] sm:$0xff]  }
  0xf6   : > { %570 = vst.msk [vmem:[%s3991_s8 + $0x8] sm:$0xf] %vm567_vm2, %v3024_v57  ;;  %v3025_v62 = vpack.c.bf16 %v460_v58, %v460_v58  ;;  %v365_v63 = vadd.f32 %v3973_v10, %v364_v61  ;;  %v781_v0 = vpop.f32.mrb[8].mxu1  ;;  %v3254_v2 = vpop.f32.mrb[9].mxu0  ;;  %v3630_v61 = vld [vmem:[%s3708_s29 + $0x200] sm:$0xff]  }
  0xf7   : > { %986 = vst.msk [vmem:[%s3991_s8 + $0x60] sm:$0xf] %vm567_vm2, %v3046_v59  ;;  %v3047_v4 = vpack.c.bf16 %v877_v60, %v877_v60  ;;  %v782_v5 = vadd.f32 %v3973_v10, %v781_v0  ;;  %v3304_v6 = vpop.f32.mrb[9].mxu1  ;;  %v367_v7 = vpop.f32.mrb[10].mxu0 }
  0xf8   : > { %571 = vst.msk [vmem:[%s3991_s8 + $0xc] sm:$0xf] %vm567_vm2, %v3025_v62  ;;  %v439_v9 = vmul.f32 0.2, %v365_v63  ;;  %v368_v11 = vadd.f32 %v3973_v10, %v367_v7  ;;  %v784_v12 = vpop.f32.mrb[10].mxu1  ;;  %v3255_v13 = vpop.f32.mrb[11].mxu0 }
  0xf9   : > { %987 = vst.msk [vmem:[%s3991_s8 + $0x64] sm:$0xf] %vm567_vm2, %v3047_v4  ;;  %v856_v14 = vmul.f32 0.2, %v782_v5  ;;  %v785_v15 = vadd.f32 %v3973_v10, %v784_v12  ;;  %v3305_v16 = vpop.f32.mrb[11].mxu1 }
  0xfa   : > { %v461_v17 = vmax.f32 %v365_v63, %v439_v9  ;;  %v440_v18 = vmul.f32 0.2, %v368_v11  ;;  %3473 = vmatmul.mubr.msk.bf16.gmra.mrb[116].mxu0 %vm280_vm1, %v3625_v3 }
  0xfb   : > { %v878_v19 = vmax.f32 %v782_v5, %v856_v14  ;;  %v857_v20 = vmul.f32 0.2, %v785_v15  ;;  %3523 = vmatmul.mubr.msk.bf16.gmra.mrb[116].mxu1 %vm280_vm1, %v3626_v8  ;;  %3476 = vmatprep.mubr.msk.bf16.mxu0 %vm3643_vm0, %v3642_v1 }
  0xfc   : > { %v3026_v21 = vpack.c.bf16 %v461_v17, %v461_v17  ;;  %v462_v22 = vmax.f32 %v368_v11, %v440_v18  ;;  %3526 = vmatprep.mubr.msk.bf16.mxu1 %vm3643_vm0, %v3642_v1 }
  0xfd   : > { %v3048_v23 = vpack.c.bf16 %v878_v19, %v878_v19  ;;  %v879_v24 = vmax.f32 %v785_v15, %v857_v20  ;;  %v372_v25 = vpop.f32.mrb[12].mxu0  ;;  %v3631_v20 = vld [vmem:[%s3708_s29 + $0x1b0] sm:$0xff]  }
  0xfe   : > { %572 = vst.msk [vmem:[%s3991_s8 + $0x10] sm:$0xf] %vm567_vm2, %v3026_v21  ;;  %v3027_v26 = vpack.c.bf16 %v462_v22, %v462_v22  ;;  %v373_v27 = vadd.f32 %v3973_v10, %v372_v25  ;;  %v789_v28 = vpop.f32.mrb[12].mxu1  ;;  %v3258_v29 = vpop.f32.mrb[13].mxu0 }
  0xff   : > { %988 = vst.msk [vmem:[%s3991_s8 + $0x68] sm:$0xf] %vm567_vm2, %v3048_v23  ;;  %v3049_v31 = vpack.c.bf16 %v879_v24, %v879_v24  ;;  %v790_v32 = vadd.f32 %v3973_v10, %v789_v28  ;;  %v3308_v33 = vpop.f32.mrb[13].mxu1  ;;  %v375_v34 = vpop.f32.mrb[14].mxu0  ;;  %v3632_v24 = vld [vmem:[%s3708_s29 + $0x208] sm:$0xff]  }
 0x100   : > { %573 = vst.msk [vmem:[%s3991_s8 + $0x14] sm:$0xf] %vm567_vm2, %v3027_v26  ;;  %v441_v36 = vmul.f32 0.2, %v373_v27  ;;  %v376_v37 = vadd.f32 %v3973_v10, %v375_v34  ;;  %v792_v38 = vpop.f32.mrb[14].mxu1  ;;  %v3259_v39 = vpop.f32.mrb[15].mxu0 }
 0x101   : > { %989 = vst.msk [vmem:[%s3991_s8 + $0x6c] sm:$0xf] %vm567_vm2, %v3049_v31  ;;  %v858_v40 = vmul.f32 0.2, %v790_v32  ;;  %v793_v41 = vadd.f32 %v3973_v10, %v792_v38  ;;  %v3309_v42 = vpop.f32.mrb[15].mxu1 }
 0x102   : > { %v463_v43 = vmax.f32 %v373_v27, %v441_v36  ;;  %v442_v44 = vmul.f32 0.2, %v376_v37  ;;  %3477 = vmatmul.mubr.msk.bf16.gmra.mrb[120].mxu0 %vm280_vm1, %v3627_v30 }
 0x103   : > { %v880_v45 = vmax.f32 %v790_v32, %v858_v40  ;;  %v859_v46 = vmul.f32 0.2, %v793_v41  ;;  %3527 = vmatmul.mubr.msk.bf16.gmra.mrb[120].mxu1 %vm280_vm1, %v3628_v35  ;;  %3480 = vmatprep.mubr.msk.bf16.mxu0 %vm3643_vm0, %v3642_v1 }
 0x104   : > { %v3028_v47 = vpack.c.bf16 %v463_v43, %v463_v43  ;;  %v464_v48 = vmax.f32 %v376_v37, %v442_v44  ;;  %3530 = vmatprep.mubr.msk.bf16.mxu1 %vm3643_vm0, %v3642_v1 }
 0x105   : > { %v3050_v49 = vpack.c.bf16 %v880_v45, %v880_v45  ;;  %v881_v50 = vmax.f32 %v793_v41, %v859_v46  ;;  %v380_v51 = vpop.f32.mrb[16].mxu0 }
 0x106   : > { %574 = vst.msk [vmem:[%s3991_s8 + $0x18] sm:$0xf] %vm567_vm2, %v3028_v47  ;;  %v3029_v52 = vpack.c.bf16 %v464_v48, %v464_v48  ;;  %v381_v53 = vadd.f32 %v3973_v10, %v380_v51  ;;  %v797_v54 = vpop.f32.mrb[16].mxu1  ;;  %v3262_v55 = vpop.f32.mrb[17].mxu0 }
 0x107   : > { %990 = vst.msk [vmem:[%s3991_s8 + $0x70] sm:$0xf] %vm567_vm2, %v3050_v49  ;;  %v3051_v57 = vpack.c.bf16 %v881_v50, %v881_v50  ;;  %v798_v58 = vadd.f32 %v3973_v10, %v797_v54  ;;  %v3312_v59 = vpop.f32.mrb[17].mxu1  ;;  %v383_v60 = vpop.f32.mrb[18].mxu0 }
 0x108   : > { %575 = vst.msk [vmem:[%s3991_s8 + $0x1c] sm:$0xf] %vm567_vm2, %v3029_v52  ;;  %v443_v62 = vmul.f32 0.2, %v381_v53  ;;  %v384_v63 = vadd.f32 %v3973_v10, %v383_v60  ;;  %v800_v0 = vpop.f32.mrb[18].mxu1  ;;  %v3263_v2 = vpop.f32.mrb[19].mxu0 }
 0x109   : > { %991 = vst.msk [vmem:[%s3991_s8 + $0x74] sm:$0xf] %vm567_vm2, %v3051_v57  ;;  %v860_v3 = vmul.f32 0.2, %v798_v58  ;;  %v801_v4 = vadd.f32 %v3973_v10, %v800_v0  ;;  %v3313_v5 = vpop.f32.mrb[19].mxu1 }
 0x10a   : > { %v465_v6 = vmax.f32 %v381_v53, %v443_v62  ;;  %v444_v7 = vmul.f32 0.2, %v384_v63  ;;  %3481 = vmatmul.mubr.msk.bf16.gmra.mrb[124].mxu0 %vm280_vm1, %v3629_v56 }
 0x10b   : > { %v882_v8 = vmax.f32 %v798_v58, %v860_v3  ;;  %v861_v9 = vmul.f32 0.2, %v801_v4  ;;  %3531 = vmatmul.mubr.msk.bf16.gmra.mrb[124].mxu1 %vm280_vm1, %v3630_v61  ;;  %3484 = vmatprep.mubr.msk.bf16.mxu0 %vm3643_vm0, %v3642_v1 }
 0x10c   : > { %v3030_v11 = vpack.c.bf16 %v465_v6, %v465_v6  ;;  %v466_v12 = vmax.f32 %v384_v63, %v444_v7  ;;  %3534 = vmatprep.mubr.msk.bf16.mxu1 %vm3643_vm0, %v3642_v1 }
 0x10d   : > { %v3052_v13 = vpack.c.bf16 %v882_v8, %v882_v8  ;;  %v883_v14 = vmax.f32 %v801_v4, %v861_v9  ;;  %v388_v15 = vpop.f32.mrb[20].mxu0 }
 0x10e   : > { %576 = vst.msk [vmem:[%s3991_s8 + $0x20] sm:$0xf] %vm567_vm2, %v3030_v11  ;;  %v3031_v16 = vpack.c.bf16 %v466_v12, %v466_v12  ;;  %v389_v17 = vadd.f32 %v3973_v10, %v388_v15  ;;  %v805_v18 = vpop.f32.mrb[20].mxu1  ;;  %v3266_v19 = vpop.f32.mrb[21].mxu0 }
 0x10f   : > { %992 = vst.msk [vmem:[%s3991_s8 + $0x78] sm:$0xf] %vm567_vm2, %v3052_v13  ;;  %v3053_v21 = vpack.c.bf16 %v883_v14, %v883_v14  ;;  %v806_v22 = vadd.f32 %v3973_v10, %v805_v18  ;;  %v3316_v23 = vpop.f32.mrb[21].mxu1  ;;  %v391_v1 = vpop.f32.mrb[22].mxu0 }
 0x110   : > { %577 = vst.msk [vmem:[%s3991_s8 + $0x24] sm:$0xf] %vm567_vm2, %v3031_v16  ;;  %v445_v25 = vmul.f32 0.2, %v389_v17  ;;  %v392_v26 = vadd.f32 %v3973_v10, %v391_v1  ;;  %v808_v27 = vpop.f32.mrb[22].mxu1  ;;  %v3267_v28 = vpop.f32.mrb[23].mxu0 }
 0x111   : > { %993 = vst.msk [vmem:[%s3991_s8 + $0x7c] sm:$0xf] %vm567_vm2, %v3053_v21  ;;  %v862_v29 = vmul.f32 0.2, %v806_v22  ;;  %v809_v30 = vadd.f32 %v3973_v10, %v808_v27  ;;  %v3317_v31 = vpop.f32.mrb[23].mxu1 }
 0x112   : > { %v467_v32 = vmax.f32 %v389_v17, %v445_v25  ;;  %v446_v33 = vmul.f32 0.2, %v392_v26  ;;  %3485 = vmatmul.mubr.msk.bf16.gmra.mrb[128].mxu0 %vm280_vm1, %v3631_v20 }
 0x113   : > { %v884_v34 = vmax.f32 %v806_v22, %v862_v29  ;;  %v863_v35 = vmul.f32 0.2, %v809_v30  ;;  %3535 = vmatmul.mubr.msk.bf16.gmra.mrb[128].mxu1 %vm280_vm1, %v3632_v24 }
 0x114   : > { %v3032_v36 = vpack.c.bf16 %v467_v32, %v467_v32  ;;  %v468_v37 = vmax.f32 %v392_v26, %v446_v33 }
 0x115   : > { %v3054_v38 = vpack.c.bf16 %v884_v34, %v884_v34  ;;  %v885_v39 = vmax.f32 %v809_v30, %v863_v35  ;;  %v396_v40 = vpop.f32.mrb[24].mxu0 }
 0x116   : > { %578 = vst.msk [vmem:[%s3991_s8 + $0x28] sm:$0xf] %vm567_vm2, %v3032_v36  ;;  %v3033_v41 = vpack.c.bf16 %v468_v37, %v468_v37  ;;  %v397_v42 = vadd.f32 %v3973_v10, %v396_v40  ;;  %v813_v43 = vpop.f32.mrb[24].mxu1  ;;  %v3270_v44 = vpop.f32.mrb[25].mxu0 }
 0x117   : > { %994 = vst.msk [vmem:[%s3991_s8 + $0x80] sm:$0xf] %vm567_vm2, %v3054_v38  ;;  %v3055_v45 = vpack.c.bf16 %v885_v39, %v885_v39  ;;  %v814_v46 = vadd.f32 %v3973_v10, %v813_v43  ;;  %v3320_v47 = vpop.f32.mrb[25].mxu1  ;;  %v399_v48 = vpop.f32.mrb[26].mxu0 }
 0x118   : > { %579 = vst.msk [vmem:[%s3991_s8 + $0x2c] sm:$0xf] %vm567_vm2, %v3033_v41  ;;  %v447_v49 = vmul.f32 0.2, %v397_v42  ;;  %v400_v50 = vadd.f32 %v3973_v10, %v399_v48  ;;  %v816_v51 = vpop.f32.mrb[26].mxu1  ;;  %v3271_v52 = vpop.f32.mrb[27].mxu0 }
 0x119   : > { %995 = vst.msk [vmem:[%s3991_s8 + $0x84] sm:$0xf] %vm567_vm2, %v3055_v45  ;;  %v864_v53 = vmul.f32 0.2, %v814_v46  ;;  %v817_v54 = vadd.f32 %v3973_v10, %v816_v51  ;;  %v3321_v55 = vpop.f32.mrb[27].mxu1 }
 0x11a   : > { %v469_v56 = vmax.f32 %v397_v42, %v447_v49  ;;  %v448_v57 = vmul.f32 0.2, %v400_v50 }
 0x11b   : > { %v886_v58 = vmax.f32 %v814_v46, %v864_v53  ;;  %v865_v59 = vmul.f32 0.2, %v817_v54 }
 0x11c   : > { %v3034_v60 = vpack.c.bf16 %v469_v56, %v469_v56  ;;  %v470_v61 = vmax.f32 %v400_v50, %v448_v57 }
 0x11d   : > { %v3056_v62 = vpack.c.bf16 %v886_v58, %v886_v58  ;;  %v887_v63 = vmax.f32 %v817_v54, %v865_v59  ;;  %v404_v0 = vpop.f32.mrb[28].mxu0 }
 0x11e   : > { %580 = vst.msk [vmem:[%s3991_s8 + $0x30] sm:$0xf] %vm567_vm2, %v3034_v60  ;;  %v3035_v2 = vpack.c.bf16 %v470_v61, %v470_v61  ;;  %v405_v3 = vadd.f32 %v3973_v10, %v404_v0  ;;  %v821_v4 = vpop.f32.mrb[28].mxu1  ;;  %v3274_v5 = vpop.f32.mrb[29].mxu0 }
 0x11f   : > { %996 = vst.msk [vmem:[%s3991_s8 + $0x88] sm:$0xf] %vm567_vm2, %v3056_v62  ;;  %v3057_v6 = vpack.c.bf16 %v887_v63, %v887_v63  ;;  %v822_v7 = vadd.f32 %v3973_v10, %v821_v4  ;;  %v3324_v8 = vpop.f32.mrb[29].mxu1  ;;  %v407_v9 = vpop.f32.mrb[30].mxu0 }
 0x120   : > { %581 = vst.msk [vmem:[%s3991_s8 + $0x34] sm:$0xf] %vm567_vm2, %v3035_v2  ;;  %v449_v11 = vmul.f32 0.2, %v405_v3  ;;  %v408_v12 = vadd.f32 %v3973_v10, %v407_v9  ;;  %v824_v13 = vpop.f32.mrb[30].mxu1  ;;  %v3275_v14 = vpop.f32.mrb[31].mxu0 }
 0x121   : > { %997 = vst.msk [vmem:[%s3991_s8 + $0x8c] sm:$0xf] %vm567_vm2, %v3057_v6  ;;  %v866_v15 = vmul.f32 0.2, %v822_v7  ;;  %v825_v16 = vadd.f32 %v3973_v10, %v824_v13  ;;  %v3325_v17 = vpop.f32.mrb[31].mxu1 }
 0x122   : > { %v471_v18 = vmax.f32 %v405_v3, %v449_v11  ;;  %v450_v19 = vmul.f32 0.2, %v408_v12 }
 0x123   : > { %v888_v20 = vmax.f32 %v822_v7, %v866_v15  ;;  %v867_v21 = vmul.f32 0.2, %v825_v16 }
 0x124   : > { %v3036_v22 = vpack.c.bf16 %v471_v18, %v471_v18  ;;  %v472_v23 = vmax.f32 %v408_v12, %v450_v19 }
 0x125   : > { %v3058_v1 = vpack.c.bf16 %v888_v20, %v888_v20  ;;  %v889_v24 = vmax.f32 %v825_v16, %v867_v21  ;;  %v412_v25 = vpop.f32.mrb[32].mxu0 }
 0x126   : > { %582 = vst.msk [vmem:[%s3991_s8 + $0x38] sm:$0xf] %vm567_vm2, %v3036_v22  ;;  %v3037_v26 = vpack.c.bf16 %v472_v23, %v472_v23  ;;  %v413_v27 = vadd.f32 %v3973_v10, %v412_v25  ;;  %v829_v28 = vpop.f32.mrb[32].mxu1  ;;  %v3278_v29 = vpop.f32.mrb[33].mxu0 }
 0x127   : > { %998 = vst.msk [vmem:[%s3991_s8 + $0x90] sm:$0xf] %vm567_vm2, %v3058_v1  ;;  %v3059_v30 = vpack.c.bf16 %v889_v24, %v889_v24  ;;  %v830_v31 = vadd.f32 %v3973_v10, %v829_v28  ;;  %v3328_v32 = vpop.f32.mrb[33].mxu1  ;;  %v415_v33 = vpop.f32.mrb[34].mxu0 }
 0x128   : > { %583 = vst.msk [vmem:[%s3991_s8 + $0x3c] sm:$0xf] %vm567_vm2, %v3037_v26  ;;  %v451_v34 = vmul.f32 0.2, %v413_v27  ;;  %v416_v35 = vadd.f32 %v3973_v10, %v415_v33  ;;  %v832_v36 = vpop.f32.mrb[34].mxu1  ;;  %v3279_v37 = vpop.f32.mrb[35].mxu0 }
 0x129   : > { %999 = vst.msk [vmem:[%s3991_s8 + $0x94] sm:$0xf] %vm567_vm2, %v3059_v30  ;;  %v868_v38 = vmul.f32 0.2, %v830_v31  ;;  %v833_v39 = vadd.f32 %v3973_v10, %v832_v36  ;;  %v3329_v40 = vpop.f32.mrb[35].mxu1 }
 0x12a   : > { %v473_v41 = vmax.f32 %v413_v27, %v451_v34  ;;  %v452_v42 = vmul.f32 0.2, %v416_v35 }
 0x12b   : > { %v890_v43 = vmax.f32 %v830_v31, %v868_v38  ;;  %v869_v44 = vmul.f32 0.2, %v833_v39 }
 0x12c   : > { %v3038_v45 = vpack.c.bf16 %v473_v41, %v473_v41  ;;  %v474_v46 = vmax.f32 %v416_v35, %v452_v42 }
 0x12d   : > { %v3060_v47 = vpack.c.bf16 %v890_v43, %v890_v43  ;;  %v891_v48 = vmax.f32 %v833_v39, %v869_v44  ;;  %v420_v49 = vpop.f32.mrb[36].mxu0 }
 0x12e   : > { %584 = vst.msk [vmem:[%s3991_s8 + $0x40] sm:$0xf] %vm567_vm2, %v3038_v45  ;;  %v3039_v50 = vpack.c.bf16 %v474_v46, %v474_v46  ;;  %v421_v51 = vadd.f32 %v3973_v10, %v420_v49  ;;  %v837_v52 = vpop.f32.mrb[36].mxu1  ;;  %v3282_v53 = vpop.f32.mrb[37].mxu0 }
 0x12f   : > { %1000 = vst.msk [vmem:[%s3991_s8 + $0x98] sm:$0xf] %vm567_vm2, %v3060_v47  ;;  %v3061_v54 = vpack.c.bf16 %v891_v48, %v891_v48  ;;  %v838_v55 = vadd.f32 %v3973_v10, %v837_v52  ;;  %v3332_v56 = vpop.f32.mrb[37].mxu1  ;;  %v423_v57 = vpop.f32.mrb[38].mxu0 }
 0x130   : > { %585 = vst.msk [vmem:[%s3991_s8 + $0x44] sm:$0xf] %vm567_vm2, %v3039_v50  ;;  %v453_v58 = vmul.f32 0.2, %v421_v51  ;;  %v424_v59 = vadd.f32 %v3973_v10, %v423_v57  ;;  %v840_v60 = vpop.f32.mrb[38].mxu1  ;;  %v3283_v61 = vpop.f32.mrb[39].mxu0 }
 0x131   : > { %1001 = vst.msk [vmem:[%s3991_s8 + $0x9c] sm:$0xf] %vm567_vm2, %v3061_v54  ;;  %v870_v62 = vmul.f32 0.2, %v838_v55  ;;  %v841_v63 = vadd.f32 %v3973_v10, %v840_v60  ;;  %v3333_v0 = vpop.f32.mrb[39].mxu1 }
 0x132   : > { %v475_v2 = vmax.f32 %v421_v51, %v453_v58  ;;  %v454_v3 = vmul.f32 0.2, %v424_v59 }
 0x133   : > { %v892_v4 = vmax.f32 %v838_v55, %v870_v62  ;;  %v871_v5 = vmul.f32 0.2, %v841_v63 }
 0x134   : > { %v3040_v6 = vpack.c.bf16 %v475_v2, %v475_v2  ;;  %v476_v7 = vmax.f32 %v424_v59, %v454_v3 }
 0x135   : > { %v3062_v8 = vpack.c.bf16 %v892_v4, %v892_v4  ;;  %v893_v9 = vmax.f32 %v841_v63, %v871_v5  ;;  %v428_v11 = vpop.f32.mrb[40].mxu0 }
 0x136   : > { %586 = vst.msk [vmem:[%s3991_s8 + $0x48] sm:$0xf] %vm567_vm2, %v3040_v6  ;;  %v3041_v12 = vpack.c.bf16 %v476_v7, %v476_v7  ;;  %v429_v13 = vadd.f32 %v3973_v10, %v428_v11  ;;  %v845_v14 = vpop.f32.mrb[40].mxu1  ;;  %v3286_v15 = vpop.f32.mrb[41].mxu0 }
 0x137   : > { %1002 = vst.msk [vmem:[%s3991_s8 + $0xa0] sm:$0xf] %vm567_vm2, %v3062_v8  ;;  %v3063_v16 = vpack.c.bf16 %v893_v9, %v893_v9  ;;  %v846_v17 = vadd.f32 %v3973_v10, %v845_v14  ;;  %v3336_v18 = vpop.f32.mrb[41].mxu1  ;;  %v431_v19 = vpop.f32.mrb[42].mxu0 }
 0x138   : > { %587 = vst.msk [vmem:[%s3991_s8 + $0x4c] sm:$0xf] %vm567_vm2, %v3041_v12  ;;  %v455_v20 = vmul.f32 0.2, %v429_v13  ;;  %v432_v21 = vadd.f32 %v3973_v10, %v431_v19  ;;  %v848_v22 = vpop.f32.mrb[42].mxu1  ;;  %v3287_v23 = vpop.f32.mrb[43].mxu0 }
 0x139   : > { %1003 = vst.msk [vmem:[%s3991_s8 + $0xa4] sm:$0xf] %vm567_vm2, %v3063_v16  ;;  %v872_v1 = vmul.f32 0.2, %v846_v17  ;;  %v849_v24 = vadd.f32 %v3973_v10, %v848_v22  ;;  %v3337_v25 = vpop.f32.mrb[43].mxu1 }
 0x13a   : > { %v477_v26 = vmax.f32 %v429_v13, %v455_v20  ;;  %v456_v27 = vmul.f32 0.2, %v432_v21 }
 0x13b   : > { %v894_v28 = vmax.f32 %v846_v17, %v872_v1  ;;  %v873_v29 = vmul.f32 0.2, %v849_v24 }
 0x13c   : > { %v3042_v30 = vpack.c.bf16 %v477_v26, %v477_v26  ;;  %v478_v31 = vmax.f32 %v432_v21, %v456_v27 }
 0x13d   : > { %v3064_v32 = vpack.c.bf16 %v894_v28, %v894_v28  ;;  %v895_v33 = vmax.f32 %v849_v24, %v873_v29  ;;  %v1181_v34 = vpop.f32.mrb[44].mxu0 }
 0x13e   : > { %588 = vst.msk [vmem:[%s3991_s8 + $0x50] sm:$0xf] %vm567_vm2, %v3042_v30  ;;  %v3043_v35 = vpack.c.bf16 %v478_v31, %v478_v31  ;;  %v1182_v36 = vadd.f32 %v3973_v10, %v1181_v34  ;;  %v1597_v37 = vpop.f32.mrb[44].mxu1  ;;  %v3346_v38 = vpop.f32.mrb[45].mxu0 }
 0x13f   : > { %1004 = vst.msk [vmem:[%s3991_s8 + $0xa8] sm:$0xf] %vm567_vm2, %v3064_v32  ;;  %v3065_v39 = vpack.c.bf16 %v895_v33, %v895_v33  ;;  %v1598_v40 = vadd.f32 %v3973_v10, %v1597_v37  ;;  %v3396_v41 = vpop.f32.mrb[45].mxu1  ;;  %v1184_v42 = vpop.f32.mrb[46].mxu0 }
 0x140   : > { %589 = vst.msk [vmem:[%s3991_s8 + $0x54] sm:$0xf] %vm567_vm2, %v3043_v35  ;;  %v1268_v43 = vmul.f32 0.2, %v1182_v36  ;;  %v1185_v44 = vadd.f32 %v3973_v10, %v1184_v42  ;;  %v1600_v45 = vpop.f32.mrb[46].mxu1  ;;  %v3347_v46 = vpop.f32.mrb[47].mxu0 }
 0x141   : > { %1005 = vst.msk [vmem:[%s3991_s8 + $0xac] sm:$0xf] %vm567_vm2, %v3065_v39  ;;  %v1684_v47 = vmul.f32 0.2, %v1598_v40  ;;  %v1601_v48 = vadd.f32 %v3973_v10, %v1600_v45  ;;  %v3397_v49 = vpop.f32.mrb[47].mxu1 }
 0x142   : > { %v1290_v50 = vmax.f32 %v1182_v36, %v1268_v43  ;;  %v1269_v51 = vmul.f32 0.2, %v1185_v44 }
 0x143   : > { %v1706_v52 = vmax.f32 %v1598_v40, %v1684_v47  ;;  %v1685_v53 = vmul.f32 0.2, %v1601_v48 }
 0x144   : > { %v3066_v54 = vpack.c.bf16 %v1290_v50, %v1290_v50  ;;  %v1291_v55 = vmax.f32 %v1185_v44, %v1269_v51 }
 0x145   : > { %v3088_v56 = vpack.c.bf16 %v1706_v52, %v1706_v52  ;;  %v1707_v57 = vmax.f32 %v1601_v48, %v1685_v53  ;;  %v1189_v58 = vpop.f32.mrb[48].mxu0 }
 0x146   : > { %1400 = vst.msk [vmem:[%s3991_s8 + $0xb0] sm:$0xf] %vm567_vm2, %v3066_v54  ;;  %v3067_v59 = vpack.c.bf16 %v1291_v55, %v1291_v55  ;;  %v1190_v60 = vadd.f32 %v3973_v10, %v1189_v58  ;;  %v1605_v61 = vpop.f32.mrb[48].mxu1  ;;  %v3350_v62 = vpop.f32.mrb[49].mxu0 }
 0x147   : > { %1816 = vst.msk [vmem:[%s3991_s8 + $0x108] sm:$0xf] %vm567_vm2, %v3088_v56  ;;  %v3089_v63 = vpack.c.bf16 %v1707_v57, %v1707_v57  ;;  %v1606_v0 = vadd.f32 %v3973_v10, %v1605_v61  ;;  %v3400_v2 = vpop.f32.mrb[49].mxu1  ;;  %v1192_v3 = vpop.f32.mrb[50].mxu0 }
 0x148   : > { %1401 = vst.msk [vmem:[%s3991_s8 + $0xb4] sm:$0xf] %vm567_vm2, %v3067_v59  ;;  %v1270_v4 = vmul.f32 0.2, %v1190_v60  ;;  %v1193_v5 = vadd.f32 %v3973_v10, %v1192_v3  ;;  %v1608_v6 = vpop.f32.mrb[50].mxu1  ;;  %v3351_v7 = vpop.f32.mrb[51].mxu0 }
 0x149   : > { %1817 = vst.msk [vmem:[%s3991_s8 + $0x10c] sm:$0xf] %vm567_vm2, %v3089_v63  ;;  %v1686_v8 = vmul.f32 0.2, %v1606_v0  ;;  %v1609_v9 = vadd.f32 %v3973_v10, %v1608_v6  ;;  %v3401_v11 = vpop.f32.mrb[51].mxu1 }
 0x14a   : > { %v1292_v12 = vmax.f32 %v1190_v60, %v1270_v4  ;;  %v1271_v13 = vmul.f32 0.2, %v1193_v5 }
 0x14b   : > { %v1708_v14 = vmax.f32 %v1606_v0, %v1686_v8  ;;  %v1687_v15 = vmul.f32 0.2, %v1609_v9 }
 0x14c   : > { %v3068_v16 = vpack.c.bf16 %v1292_v12, %v1292_v12  ;;  %v1293_v17 = vmax.f32 %v1193_v5, %v1271_v13 }
 0x14d   : > { %v3090_v18 = vpack.c.bf16 %v1708_v14, %v1708_v14  ;;  %v1709_v19 = vmax.f32 %v1609_v9, %v1687_v15  ;;  %v1197_v20 = vpop.f32.mrb[52].mxu0 }
 0x14e   : > { %1402 = vst.msk [vmem:[%s3991_s8 + $0xb8] sm:$0xf] %vm567_vm2, %v3068_v16  ;;  %v3069_v21 = vpack.c.bf16 %v1293_v17, %v1293_v17  ;;  %v1198_v22 = vadd.f32 %v3973_v10, %v1197_v20  ;;  %v1613_v23 = vpop.f32.mrb[52].mxu1  ;;  %v3354_v1 = vpop.f32.mrb[53].mxu0 }
 0x14f   : > { %1818 = vst.msk [vmem:[%s3991_s8 + $0x110] sm:$0xf] %vm567_vm2, %v3090_v18  ;;  %v3091_v24 = vpack.c.bf16 %v1709_v19, %v1709_v19  ;;  %v1614_v25 = vadd.f32 %v3973_v10, %v1613_v23  ;;  %v3404_v26 = vpop.f32.mrb[53].mxu1  ;;  %v1200_v27 = vpop.f32.mrb[54].mxu0 }
 0x150   : > { %1403 = vst.msk [vmem:[%s3991_s8 + $0xbc] sm:$0xf] %vm567_vm2, %v3069_v21  ;;  %v1272_v28 = vmul.f32 0.2, %v1198_v22  ;;  %v1201_v29 = vadd.f32 %v3973_v10, %v1200_v27  ;;  %v1616_v30 = vpop.f32.mrb[54].mxu1  ;;  %v3355_v31 = vpop.f32.mrb[55].mxu0 }
 0x151   : > { %1819 = vst.msk [vmem:[%s3991_s8 + $0x114] sm:$0xf] %vm567_vm2, %v3091_v24  ;;  %v1688_v32 = vmul.f32 0.2, %v1614_v25  ;;  %v1617_v33 = vadd.f32 %v3973_v10, %v1616_v30  ;;  %v3405_v34 = vpop.f32.mrb[55].mxu1 }
 0x152   : > { %v1294_v35 = vmax.f32 %v1198_v22, %v1272_v28  ;;  %v1273_v36 = vmul.f32 0.2, %v1201_v29 }
 0x153   : > { %v1710_v37 = vmax.f32 %v1614_v25, %v1688_v32  ;;  %v1689_v38 = vmul.f32 0.2, %v1617_v33 }
 0x154   : > { %v3070_v39 = vpack.c.bf16 %v1294_v35, %v1294_v35  ;;  %v1295_v40 = vmax.f32 %v1201_v29, %v1273_v36 }
 0x155   : > { %v3092_v41 = vpack.c.bf16 %v1710_v37, %v1710_v37  ;;  %v1711_v42 = vmax.f32 %v1617_v33, %v1689_v38  ;;  %v1205_v43 = vpop.f32.mrb[56].mxu0 }
 0x156   : > { %1404 = vst.msk [vmem:[%s3991_s8 + $0xc0] sm:$0xf] %vm567_vm2, %v3070_v39  ;;  %v3071_v44 = vpack.c.bf16 %v1295_v40, %v1295_v40  ;;  %v1206_v45 = vadd.f32 %v3973_v10, %v1205_v43  ;;  %v1621_v46 = vpop.f32.mrb[56].mxu1  ;;  %v3358_v47 = vpop.f32.mrb[57].mxu0 }
 0x157   : > { %1820 = vst.msk [vmem:[%s3991_s8 + $0x118] sm:$0xf] %vm567_vm2, %v3092_v41  ;;  %v3093_v48 = vpack.c.bf16 %v1711_v42, %v1711_v42  ;;  %v1622_v49 = vadd.f32 %v3973_v10, %v1621_v46  ;;  %v3408_v50 = vpop.f32.mrb[57].mxu1  ;;  %v1208_v51 = vpop.f32.mrb[58].mxu0 }
 0x158   : > { %1405 = vst.msk [vmem:[%s3991_s8 + $0xc4] sm:$0xf] %vm567_vm2, %v3071_v44  ;;  %v1274_v52 = vmul.f32 0.2, %v1206_v45  ;;  %v1209_v53 = vadd.f32 %v3973_v10, %v1208_v51  ;;  %v1624_v54 = vpop.f32.mrb[58].mxu1  ;;  %v3359_v55 = vpop.f32.mrb[59].mxu0 }
 0x159   : > { %1821 = vst.msk [vmem:[%s3991_s8 + $0x11c] sm:$0xf] %vm567_vm2, %v3093_v48  ;;  %v1690_v56 = vmul.f32 0.2, %v1622_v49  ;;  %v1625_v57 = vadd.f32 %v3973_v10, %v1624_v54  ;;  %v3409_v58 = vpop.f32.mrb[59].mxu1 }
 0x15a   : > { %v1296_v59 = vmax.f32 %v1206_v45, %v1274_v52  ;;  %v1275_v60 = vmul.f32 0.2, %v1209_v53 }
 0x15b   : > { %v1712_v61 = vmax.f32 %v1622_v49, %v1690_v56  ;;  %v1691_v62 = vmul.f32 0.2, %v1625_v57 }
 0x15c   : > { %v3072_v63 = vpack.c.bf16 %v1296_v59, %v1296_v59  ;;  %v1297_v0 = vmax.f32 %v1209_v53, %v1275_v60 }
 0x15d   : > { %v3094_v2 = vpack.c.bf16 %v1712_v61, %v1712_v61  ;;  %v1713_v3 = vmax.f32 %v1625_v57, %v1691_v62  ;;  %v1213_v4 = vpop.f32.mrb[60].mxu0 }
 0x15e   : > { %1406 = vst.msk [vmem:[%s3991_s8 + $0xc8] sm:$0xf] %vm567_vm2, %v3072_v63  ;;  %v3073_v5 = vpack.c.bf16 %v1297_v0, %v1297_v0  ;;  %v1214_v6 = vadd.f32 %v3973_v10, %v1213_v4  ;;  %v1629_v7 = vpop.f32.mrb[60].mxu1  ;;  %v3362_v8 = vpop.f32.mrb[61].mxu0 }
 0x15f   : > { %1822 = vst.msk [vmem:[%s3991_s8 + $0x120] sm:$0xf] %vm567_vm2, %v3094_v2  ;;  %v3095_v9 = vpack.c.bf16 %v1713_v3, %v1713_v3  ;;  %v1630_v11 = vadd.f32 %v3973_v10, %v1629_v7  ;;  %v3412_v12 = vpop.f32.mrb[61].mxu1  ;;  %v1216_v13 = vpop.f32.mrb[62].mxu0 }
 0x160   : > { %1407 = vst.msk [vmem:[%s3991_s8 + $0xcc] sm:$0xf] %vm567_vm2, %v3073_v5  ;;  %v1276_v14 = vmul.f32 0.2, %v1214_v6  ;;  %v1217_v15 = vadd.f32 %v3973_v10, %v1216_v13  ;;  %v1632_v16 = vpop.f32.mrb[62].mxu1  ;;  %v3363_v17 = vpop.f32.mrb[63].mxu0 }
 0x161   : > { %1823 = vst.msk [vmem:[%s3991_s8 + $0x124] sm:$0xf] %vm567_vm2, %v3095_v9  ;;  %v1692_v18 = vmul.f32 0.2, %v1630_v11  ;;  %v1633_v19 = vadd.f32 %v3973_v10, %v1632_v16  ;;  %v3413_v20 = vpop.f32.mrb[63].mxu1 }
 0x162   : > { %v1298_v21 = vmax.f32 %v1214_v6, %v1276_v14  ;;  %v1277_v22 = vmul.f32 0.2, %v1217_v15 }
 0x163   : > { %v1714_v23 = vmax.f32 %v1630_v11, %v1692_v18  ;;  %v1693_v1 = vmul.f32 0.2, %v1633_v19 }
 0x164   : > { %v3074_v24 = vpack.c.bf16 %v1298_v21, %v1298_v21  ;;  %v1299_v25 = vmax.f32 %v1217_v15, %v1277_v22 }
 0x165   : > { %v3096_v26 = vpack.c.bf16 %v1714_v23, %v1714_v23  ;;  %v1715_v27 = vmax.f32 %v1633_v19, %v1693_v1  ;;  %v1221_v28 = vpop.f32.mrb[64].mxu0 }
 0x166   : > { %1408 = vst.msk [vmem:[%s3991_s8 + $0xd0] sm:$0xf] %vm567_vm2, %v3074_v24  ;;  %v3075_v29 = vpack.c.bf16 %v1299_v25, %v1299_v25  ;;  %v1222_v30 = vadd.f32 %v3973_v10, %v1221_v28  ;;  %v1637_v31 = vpop.f32.mrb[64].mxu1  ;;  %v3366_v32 = vpop.f32.mrb[65].mxu0 }
 0x167   : > { %1824 = vst.msk [vmem:[%s3991_s8 + $0x128] sm:$0xf] %vm567_vm2, %v3096_v26  ;;  %v3097_v33 = vpack.c.bf16 %v1715_v27, %v1715_v27  ;;  %v1638_v34 = vadd.f32 %v3973_v10, %v1637_v31  ;;  %v3416_v35 = vpop.f32.mrb[65].mxu1  ;;  %v1224_v36 = vpop.f32.mrb[66].mxu0 }
 0x168   : > { %1409 = vst.msk [vmem:[%s3991_s8 + $0xd4] sm:$0xf] %vm567_vm2, %v3075_v29  ;;  %v1278_v37 = vmul.f32 0.2, %v1222_v30  ;;  %v1225_v38 = vadd.f32 %v3973_v10, %v1224_v36  ;;  %v1640_v39 = vpop.f32.mrb[66].mxu1  ;;  %v3367_v40 = vpop.f32.mrb[67].mxu0 }
 0x169   : > { %1825 = vst.msk [vmem:[%s3991_s8 + $0x12c] sm:$0xf] %vm567_vm2, %v3097_v33  ;;  %v1694_v41 = vmul.f32 0.2, %v1638_v34  ;;  %v1641_v42 = vadd.f32 %v3973_v10, %v1640_v39  ;;  %v3417_v43 = vpop.f32.mrb[67].mxu1 }
 0x16a   : > { %v1300_v44 = vmax.f32 %v1222_v30, %v1278_v37  ;;  %v1279_v45 = vmul.f32 0.2, %v1225_v38  ;;  %v4231_v10 = vld [vmem:[%s4441_s2] ss:$0 sm:$0xff] }
 0x16b   : > { %v1716_v46 = vmax.f32 %v1638_v34, %v1694_v41  ;;  %v1695_v47 = vmul.f32 0.2, %v1641_v42 }
 0x16c   : > { %v3076_v48 = vpack.c.bf16 %v1300_v44, %v1300_v44  ;;  %v1301_v49 = vmax.f32 %v1225_v38, %v1279_v45 }
 0x16d   : > { %v3098_v50 = vpack.c.bf16 %v1716_v46, %v1716_v46  ;;  %v1717_v51 = vmax.f32 %v1641_v42, %v1695_v47  ;;  %v1229_v52 = vpop.f32.mrb[68].mxu0 }
 0x16e   : > { %1410 = vst.msk [vmem:[%s3991_s8 + $0xd8] sm:$0xf] %vm567_vm2, %v3076_v48  ;;  %v3077_v53 = vpack.c.bf16 %v1301_v49, %v1301_v49  ;;  %v1230_v54 = vadd.f32 %v4231_v10, %v1229_v52  ;;  %v1645_v55 = vpop.f32.mrb[68].mxu1  ;;  %v3370_v56 = vpop.f32.mrb[69].mxu0 }
 0x16f   : > { %1826 = vst.msk [vmem:[%s3991_s8 + $0x130] sm:$0xf] %vm567_vm2, %v3098_v50  ;;  %v3099_v57 = vpack.c.bf16 %v1717_v51, %v1717_v51  ;;  %v1646_v58 = vadd.f32 %v4231_v10, %v1645_v55  ;;  %v3420_v59 = vpop.f32.mrb[69].mxu1  ;;  %v1232_v60 = vpop.f32.mrb[70].mxu0 }
 0x170   : > { %1411 = vst.msk [vmem:[%s3991_s8 + $0xdc] sm:$0xf] %vm567_vm2, %v3077_v53  ;;  %v1280_v61 = vmul.f32 0.2, %v1230_v54  ;;  %v1233_v62 = vadd.f32 %v4231_v10, %v1232_v60  ;;  %v1648_v63 = vpop.f32.mrb[70].mxu1  ;;  %v3371_v0 = vpop.f32.mrb[71].mxu0 }
 0x171   : > { %1827 = vst.msk [vmem:[%s3991_s8 + $0x134] sm:$0xf] %vm567_vm2, %v3099_v57  ;;  %v1696_v2 = vmul.f32 0.2, %v1646_v58  ;;  %v1649_v3 = vadd.f32 %v4231_v10, %v1648_v63  ;;  %v3421_v4 = vpop.f32.mrb[71].mxu1 }
 0x172   : > { %v1302_v5 = vmax.f32 %v1230_v54, %v1280_v61  ;;  %v1281_v6 = vmul.f32 0.2, %v1233_v62 }
 0x173   : > { %v1718_v7 = vmax.f32 %v1646_v58, %v1696_v2  ;;  %v1697_v8 = vmul.f32 0.2, %v1649_v3 }
 0x174   : > { %v3078_v9 = vpack.c.bf16 %v1302_v5, %v1302_v5  ;;  %v1303_v11 = vmax.f32 %v1233_v62, %v1281_v6 }
 0x175   : > { %v3100_v12 = vpack.c.bf16 %v1718_v7, %v1718_v7  ;;  %v1719_v13 = vmax.f32 %v1649_v3, %v1697_v8  ;;  %v1237_v14 = vpop.f32.mrb[72].mxu0 }
 0x176   : > { %1412 = vst.msk [vmem:[%s3991_s8 + $0xe0] sm:$0xf] %vm567_vm2, %v3078_v9  ;;  %v3079_v15 = vpack.c.bf16 %v1303_v11, %v1303_v11  ;;  %v1238_v16 = vadd.f32 %v4231_v10, %v1237_v14  ;;  %v1653_v17 = vpop.f32.mrb[72].mxu1  ;;  %v3374_v18 = vpop.f32.mrb[73].mxu0 }
 0x177   : > { %1828 = vst.msk [vmem:[%s3991_s8 + $0x138] sm:$0xf] %vm567_vm2, %v3100_v12  ;;  %v3101_v19 = vpack.c.bf16 %v1719_v13, %v1719_v13  ;;  %v1654_v20 = vadd.f32 %v4231_v10, %v1653_v17  ;;  %v3424_v21 = vpop.f32.mrb[73].mxu1  ;;  %v1240_v22 = vpop.f32.mrb[74].mxu0 }
 0x178   : > { %1413 = vst.msk [vmem:[%s3991_s8 + $0xe4] sm:$0xf] %vm567_vm2, %v3079_v15  ;;  %v1282_v23 = vmul.f32 0.2, %v1238_v16  ;;  %v1241_v1 = vadd.f32 %v4231_v10, %v1240_v22  ;;  %v1656_v24 = vpop.f32.mrb[74].mxu1  ;;  %v3375_v25 = vpop.f32.mrb[75].mxu0 }
 0x179   : > { %1829 = vst.msk [vmem:[%s3991_s8 + $0x13c] sm:$0xf] %vm567_vm2, %v3101_v19  ;;  %v1698_v26 = vmul.f32 0.2, %v1654_v20  ;;  %v1657_v27 = vadd.f32 %v4231_v10, %v1656_v24  ;;  %v3425_v28 = vpop.f32.mrb[75].mxu1 }
 0x17a   : > { %v1304_v29 = vmax.f32 %v1238_v16, %v1282_v23  ;;  %v1283_v30 = vmul.f32 0.2, %v1241_v1 }
 0x17b   : > { %v1720_v31 = vmax.f32 %v1654_v20, %v1698_v26  ;;  %v1699_v32 = vmul.f32 0.2, %v1657_v27 }
 0x17c   : > { %v3080_v33 = vpack.c.bf16 %v1304_v29, %v1304_v29  ;;  %v1305_v34 = vmax.f32 %v1241_v1, %v1283_v30 }
 0x17d   : > { %v3102_v35 = vpack.c.bf16 %v1720_v31, %v1720_v31  ;;  %v1721_v36 = vmax.f32 %v1657_v27, %v1699_v32  ;;  %v1245_v37 = vpop.f32.mrb[76].mxu0 }
 0x17e   : > { %1414 = vst.msk [vmem:[%s3991_s8 + $0xe8] sm:$0xf] %vm567_vm2, %v3080_v33  ;;  %v3081_v38 = vpack.c.bf16 %v1305_v34, %v1305_v34  ;;  %v1246_v39 = vadd.f32 %v4231_v10, %v1245_v37  ;;  %v1661_v40 = vpop.f32.mrb[76].mxu1  ;;  %v3378_v41 = vpop.f32.mrb[77].mxu0 }
 0x17f   : > { %1830 = vst.msk [vmem:[%s3991_s8 + $0x140] sm:$0xf] %vm567_vm2, %v3102_v35  ;;  %v3103_v42 = vpack.c.bf16 %v1721_v36, %v1721_v36  ;;  %v1662_v43 = vadd.f32 %v4231_v10, %v1661_v40  ;;  %v3428_v44 = vpop.f32.mrb[77].mxu1  ;;  %v1248_v45 = vpop.f32.mrb[78].mxu0 }
 0x180   : > { %1415 = vst.msk [vmem:[%s3991_s8 + $0xec] sm:$0xf] %vm567_vm2, %v3081_v38  ;;  %v1284_v46 = vmul.f32 0.2, %v1246_v39  ;;  %v1249_v47 = vadd.f32 %v4231_v10, %v1248_v45  ;;  %v1664_v48 = vpop.f32.mrb[78].mxu1  ;;  %v3379_v49 = vpop.f32.mrb[79].mxu0 }
 0x181   : > { %1831 = vst.msk [vmem:[%s3991_s8 + $0x144] sm:$0xf] %vm567_vm2, %v3103_v42  ;;  %v1700_v50 = vmul.f32 0.2, %v1662_v43  ;;  %v1665_v51 = vadd.f32 %v4231_v10, %v1664_v48  ;;  %v3429_v52 = vpop.f32.mrb[79].mxu1 }
 0x182   : > { %v1306_v53 = vmax.f32 %v1246_v39, %v1284_v46  ;;  %v1285_v54 = vmul.f32 0.2, %v1249_v47  ;;  %v4294_v42 = vld [vmem:[%s4441_s2] ss:$0 sm:$0xff] }
 0x183   : > { %v1722_v55 = vmax.f32 %v1662_v43, %v1700_v50  ;;  %v1701_v56 = vmul.f32 0.2, %v1665_v51 }
 0x184   : > { %v3082_v57 = vpack.c.bf16 %v1306_v53, %v1306_v53  ;;  %v1307_v58 = vmax.f32 %v1249_v47, %v1285_v54 }
 0x185   : > { %v3104_v59 = vpack.c.bf16 %v1722_v55, %v1722_v55  ;;  %v1723_v60 = vmax.f32 %v1665_v51, %v1701_v56  ;;  %v1253_v61 = vpop.f32.mrb[80].mxu0 }
 0x186   : > { %1416 = vst.msk [vmem:[%s3991_s8 + $0xf0] sm:$0xf] %vm567_vm2, %v3082_v57  ;;  %v3083_v62 = vpack.c.bf16 %v1307_v58, %v1307_v58  ;;  %v1254_v63 = vadd.f32 %v4231_v10, %v1253_v61  ;;  %v1669_v0 = vpop.f32.mrb[80].mxu1  ;;  %v3382_v2 = vpop.f32.mrb[81].mxu0 }
 0x187   : > { %1832 = vst.msk [vmem:[%s3991_s8 + $0x148] sm:$0xf] %vm567_vm2, %v3104_v59  ;;  %v3105_v3 = vpack.c.bf16 %v1723_v60, %v1723_v60  ;;  %v1670_v4 = vadd.f32 %v4231_v10, %v1669_v0  ;;  %v3432_v5 = vpop.f32.mrb[81].mxu1  ;;  %v1256_v6 = vpop.f32.mrb[82].mxu0 }
 0x188   : > { %1417 = vst.msk [vmem:[%s3991_s8 + $0xf4] sm:$0xf] %vm567_vm2, %v3083_v62  ;;  %v1286_v7 = vmul.f32 0.2, %v1254_v63  ;;  %v1257_v8 = vadd.f32 %v4231_v10, %v1256_v6  ;;  %v1672_v9 = vpop.f32.mrb[82].mxu1  ;;  %v3383_v11 = vpop.f32.mrb[83].mxu0 }
 0x189   : > { %1833 = vst.msk [vmem:[%s3991_s8 + $0x14c] sm:$0xf] %vm567_vm2, %v3105_v3  ;;  %v1702_v12 = vmul.f32 0.2, %v1670_v4  ;;  %v1673_v13 = vadd.f32 %v4231_v10, %v1672_v9  ;;  %v3433_v14 = vpop.f32.mrb[83].mxu1 }
 0x18a   : > { %v1308_v15 = vmax.f32 %v1254_v63, %v1286_v7  ;;  %v1287_v16 = vmul.f32 0.2, %v1257_v8 }
 0x18b   : > { %v1724_v17 = vmax.f32 %v1670_v4, %v1702_v12  ;;  %v1703_v18 = vmul.f32 0.2, %v1673_v13 }
 0x18c   : > { %v3084_v19 = vpack.c.bf16 %v1308_v15, %v1308_v15  ;;  %v1309_v20 = vmax.f32 %v1257_v8, %v1287_v16 }
 0x18d   : > { %v3106_v21 = vpack.c.bf16 %v1724_v17, %v1724_v17  ;;  %v1725_v22 = vmax.f32 %v1673_v13, %v1703_v18  ;;  %v1261_v23 = vpop.f32.mrb[84].mxu0 }
 0x18e   : > { %1418 = vst.msk [vmem:[%s3991_s8 + $0xf8] sm:$0xf] %vm567_vm2, %v3084_v19  ;;  %v3085_v1 = vpack.c.bf16 %v1309_v20, %v1309_v20  ;;  %v1262_v24 = vadd.f32 %v4231_v10, %v1261_v23  ;;  %v1677_v25 = vpop.f32.mrb[84].mxu1  ;;  %v3386_v26 = vpop.f32.mrb[85].mxu0 }
 0x18f   : > { %1834 = vst.msk [vmem:[%s3991_s8 + $0x150] sm:$0xf] %vm567_vm2, %v3106_v21  ;;  %v3107_v27 = vpack.c.bf16 %v1725_v22, %v1725_v22  ;;  %v1678_v28 = vadd.f32 %v4231_v10, %v1677_v25  ;;  %v3436_v29 = vpop.f32.mrb[85].mxu1  ;;  %v1264_v30 = vpop.f32.mrb[86].mxu0 }
 0x190   : > { %1419 = vst.msk [vmem:[%s3991_s8 + $0xfc] sm:$0xf] %vm567_vm2, %v3085_v1  ;;  %v1288_v31 = vmul.f32 0.2, %v1262_v24  ;;  %v1265_v32 = vadd.f32 %v4231_v10, %v1264_v30  ;;  %v1680_v33 = vpop.f32.mrb[86].mxu1  ;;  %v3387_v34 = vpop.f32.mrb[87].mxu0 }
 0x191   : > { %1835 = vst.msk [vmem:[%s3991_s8 + $0x154] sm:$0xf] %vm567_vm2, %v3107_v27  ;;  %v1704_v35 = vmul.f32 0.2, %v1678_v28  ;;  %v1681_v36 = vadd.f32 %v4231_v10, %v1680_v33  ;;  %v3437_v37 = vpop.f32.mrb[87].mxu1 }
 0x192   : > { %v1310_v38 = vmax.f32 %v1262_v24, %v1288_v31  ;;  %v1289_v39 = vmul.f32 0.2, %v1265_v32 }
 0x193   : > { %v1726_v40 = vmax.f32 %v1678_v28, %v1704_v35  ;;  %v1705_v41 = vmul.f32 0.2, %v1681_v36 }
 0x194   : > { %v3086_v43 = vpack.c.bf16 %v1310_v38, %v1310_v38  ;;  %v1311_v44 = vmax.f32 %v1265_v32, %v1289_v39 }
 0x195   : > { %v3108_v45 = vpack.c.bf16 %v1726_v40, %v1726_v40  ;;  %v1727_v46 = vmax.f32 %v1681_v36, %v1705_v41  ;;  %v2013_v47 = vpop.f32.mrb[88].mxu0 }
 0x196   : > { %1420 = vst.msk [vmem:[%s3991_s8 + $0x100] sm:$0xf] %vm567_vm2, %v3086_v43  ;;  %v3087_v10 = vpack.c.bf16 %v1311_v44, %v1311_v44  ;;  %v2014_v48 = vadd.f32 %v4294_v42, %v2013_v47  ;;  %v2429_v49 = vpop.f32.mrb[88].mxu1  ;;  %v3446_v50 = vpop.f32.mrb[89].mxu0 }
 0x197   : > { %1836 = vst.msk [vmem:[%s3991_s8 + $0x158] sm:$0xf] %vm567_vm2, %v3108_v45  ;;  %v3109_v51 = vpack.c.bf16 %v1727_v46, %v1727_v46  ;;  %v2430_v52 = vadd.f32 %v4294_v42, %v2429_v49  ;;  %v3496_v53 = vpop.f32.mrb[89].mxu1  ;;  %v2016_v54 = vpop.f32.mrb[90].mxu0 }
 0x198   : > { %1421 = vst.msk [vmem:[%s3991_s8 + $0x104] sm:$0xf] %vm567_vm2, %v3087_v10  ;;  %v2100_v55 = vmul.f32 0.2, %v2014_v48  ;;  %v2017_v56 = vadd.f32 %v4294_v42, %v2016_v54  ;;  %v2432_v57 = vpop.f32.mrb[90].mxu1  ;;  %v3447_v58 = vpop.f32.mrb[91].mxu0 }
 0x199   : > { %1837 = vst.msk [vmem:[%s3991_s8 + $0x15c] sm:$0xf] %vm567_vm2, %v3109_v51  ;;  %v2516_v59 = vmul.f32 0.2, %v2430_v52  ;;  %v2433_v60 = vadd.f32 %v4294_v42, %v2432_v57  ;;  %v3497_v61 = vpop.f32.mrb[91].mxu1 }
 0x19a   : > { %v2122_v62 = vmax.f32 %v2014_v48, %v2100_v55  ;;  %v2101_v63 = vmul.f32 0.2, %v2017_v56 }
 0x19b   : > { %v2538_v0 = vmax.f32 %v2430_v52, %v2516_v59  ;;  %v2517_v2 = vmul.f32 0.2, %v2433_v60 }
 0x19c   : > { %v3110_v3 = vpack.c.bf16 %v2122_v62, %v2122_v62  ;;  %v2123_v4 = vmax.f32 %v2017_v56, %v2101_v63 }
 0x19d   : > { %v3132_v5 = vpack.c.bf16 %v2538_v0, %v2538_v0  ;;  %v2539_v6 = vmax.f32 %v2433_v60, %v2517_v2  ;;  %v2021_v7 = vpop.f32.mrb[92].mxu0 }
 0x19e   : > { %2232 = vst.msk [vmem:[%s3991_s8 + $0x160] sm:$0xf] %vm567_vm2, %v3110_v3  ;;  %v3111_v8 = vpack.c.bf16 %v2123_v4, %v2123_v4  ;;  %v2022_v9 = vadd.f32 %v4294_v42, %v2021_v7  ;;  %v2437_v11 = vpop.f32.mrb[92].mxu1  ;;  %v3450_v12 = vpop.f32.mrb[93].mxu0 }
 0x19f   : > { %2648 = vst.msk [vmem:[%s3991_s8 + $0x1b8] sm:$0xf] %vm567_vm2, %v3132_v5  ;;  %v3133_v13 = vpack.c.bf16 %v2539_v6, %v2539_v6  ;;  %v2438_v14 = vadd.f32 %v4294_v42, %v2437_v11  ;;  %v3500_v15 = vpop.f32.mrb[93].mxu1  ;;  %v2024_v16 = vpop.f32.mrb[94].mxu0 }
 0x1a0   : > { %2233 = vst.msk [vmem:[%s3991_s8 + $0x164] sm:$0xf] %vm567_vm2, %v3111_v8  ;;  %v2102_v17 = vmul.f32 0.2, %v2022_v9  ;;  %v2025_v18 = vadd.f32 %v4294_v42, %v2024_v16  ;;  %v2440_v19 = vpop.f32.mrb[94].mxu1  ;;  %v3451_v20 = vpop.f32.mrb[95].mxu0 }
 0x1a1   : > { %2649 = vst.msk [vmem:[%s3991_s8 + $0x1bc] sm:$0xf] %vm567_vm2, %v3133_v13  ;;  %v2518_v21 = vmul.f32 0.2, %v2438_v14  ;;  %v2441_v22 = vadd.f32 %v4294_v42, %v2440_v19  ;;  %v3501_v23 = vpop.f32.mrb[95].mxu1 }
 0x1a2   : > { %v2124_v1 = vmax.f32 %v2022_v9, %v2102_v17  ;;  %v2103_v24 = vmul.f32 0.2, %v2025_v18 }
 0x1a3   : > { %v2540_v25 = vmax.f32 %v2438_v14, %v2518_v21  ;;  %v2519_v26 = vmul.f32 0.2, %v2441_v22 }
 0x1a4   : > { %v3112_v27 = vpack.c.bf16 %v2124_v1, %v2124_v1  ;;  %v2125_v28 = vmax.f32 %v2025_v18, %v2103_v24 }
 0x1a5   : > { %v3134_v29 = vpack.c.bf16 %v2540_v25, %v2540_v25  ;;  %v2541_v30 = vmax.f32 %v2441_v22, %v2519_v26  ;;  %v2029_v31 = vpop.f32.mrb[96].mxu0 }
 0x1a6   : > { %2234 = vst.msk [vmem:[%s3991_s8 + $0x168] sm:$0xf] %vm567_vm2, %v3112_v27  ;;  %v3113_v32 = vpack.c.bf16 %v2125_v28, %v2125_v28  ;;  %v2030_v33 = vadd.f32 %v4294_v42, %v2029_v31  ;;  %v2445_v34 = vpop.f32.mrb[96].mxu1  ;;  %v3454_v35 = vpop.f32.mrb[97].mxu0 }
 0x1a7   : > { %2650 = vst.msk [vmem:[%s3991_s8 + $0x1c0] sm:$0xf] %vm567_vm2, %v3134_v29  ;;  %v3135_v36 = vpack.c.bf16 %v2541_v30, %v2541_v30  ;;  %v2446_v37 = vadd.f32 %v4294_v42, %v2445_v34  ;;  %v3504_v38 = vpop.f32.mrb[97].mxu1  ;;  %v2032_v39 = vpop.f32.mrb[98].mxu0 }
 0x1a8   : > { %2235 = vst.msk [vmem:[%s3991_s8 + $0x16c] sm:$0xf] %vm567_vm2, %v3113_v32  ;;  %v2104_v40 = vmul.f32 0.2, %v2030_v33  ;;  %v2033_v41 = vadd.f32 %v4294_v42, %v2032_v39  ;;  %v2448_v43 = vpop.f32.mrb[98].mxu1  ;;  %v3455_v44 = vpop.f32.mrb[99].mxu0 }
 0x1a9   : > { %2651 = vst.msk [vmem:[%s3991_s8 + $0x1c4] sm:$0xf] %vm567_vm2, %v3135_v36  ;;  %v2520_v45 = vmul.f32 0.2, %v2446_v37  ;;  %v2449_v46 = vadd.f32 %v4294_v42, %v2448_v43  ;;  %v3505_v47 = vpop.f32.mrb[99].mxu1 }
 0x1aa   : > { %v2126_v10 = vmax.f32 %v2030_v33, %v2104_v40  ;;  %v2105_v48 = vmul.f32 0.2, %v2033_v41 }
 0x1ab   : > { %v2542_v49 = vmax.f32 %v2446_v37, %v2520_v45  ;;  %v2521_v50 = vmul.f32 0.2, %v2449_v46 }
 0x1ac   : > { %v3114_v51 = vpack.c.bf16 %v2126_v10, %v2126_v10  ;;  %v2127_v52 = vmax.f32 %v2033_v41, %v2105_v48 }
 0x1ad   : > { %v3136_v53 = vpack.c.bf16 %v2542_v49, %v2542_v49  ;;  %v2543_v54 = vmax.f32 %v2449_v46, %v2521_v50  ;;  %v2037_v55 = vpop.f32.mrb[100].mxu0 }
 0x1ae   : > { %2236 = vst.msk [vmem:[%s3991_s8 + $0x170] sm:$0xf] %vm567_vm2, %v3114_v51  ;;  %v3115_v56 = vpack.c.bf16 %v2127_v52, %v2127_v52  ;;  %v2038_v57 = vadd.f32 %v4294_v42, %v2037_v55  ;;  %v2453_v58 = vpop.f32.mrb[100].mxu1  ;;  %v3458_v59 = vpop.f32.mrb[101].mxu0 }
 0x1af   : > { %2652 = vst.msk [vmem:[%s3991_s8 + $0x1c8] sm:$0xf] %vm567_vm2, %v3136_v53  ;;  %v3137_v60 = vpack.c.bf16 %v2543_v54, %v2543_v54  ;;  %v2454_v61 = vadd.f32 %v4294_v42, %v2453_v58  ;;  %v3508_v62 = vpop.f32.mrb[101].mxu1  ;;  %v2040_v63 = vpop.f32.mrb[102].mxu0 }
 0x1b0   : > { %2237 = vst.msk [vmem:[%s3991_s8 + $0x174] sm:$0xf] %vm567_vm2, %v3115_v56  ;;  %v2106_v0 = vmul.f32 0.2, %v2038_v57  ;;  %v2041_v2 = vadd.f32 %v4294_v42, %v2040_v63  ;;  %v2456_v3 = vpop.f32.mrb[102].mxu1  ;;  %v3459_v4 = vpop.f32.mrb[103].mxu0 }
 0x1b1   : > { %2653 = vst.msk [vmem:[%s3991_s8 + $0x1cc] sm:$0xf] %vm567_vm2, %v3137_v60  ;;  %v2522_v5 = vmul.f32 0.2, %v2454_v61  ;;  %v2457_v6 = vadd.f32 %v4294_v42, %v2456_v3  ;;  %v3509_v7 = vpop.f32.mrb[103].mxu1 }
 0x1b2   : > { %v2128_v8 = vmax.f32 %v2038_v57, %v2106_v0  ;;  %v2107_v9 = vmul.f32 0.2, %v2041_v2 }
 0x1b3   : > { %v2544_v11 = vmax.f32 %v2454_v61, %v2522_v5  ;;  %v2523_v12 = vmul.f32 0.2, %v2457_v6 }
 0x1b4   : > { %v3116_v13 = vpack.c.bf16 %v2128_v8, %v2128_v8  ;;  %v2129_v14 = vmax.f32 %v2041_v2, %v2107_v9 }
 0x1b5   : > { %v3138_v15 = vpack.c.bf16 %v2544_v11, %v2544_v11  ;;  %v2545_v16 = vmax.f32 %v2457_v6, %v2523_v12  ;;  %v2045_v17 = vpop.f32.mrb[104].mxu0 }
 0x1b6   : > { %2238 = vst.msk [vmem:[%s3991_s8 + $0x178] sm:$0xf] %vm567_vm2, %v3116_v13  ;;  %v3117_v18 = vpack.c.bf16 %v2129_v14, %v2129_v14  ;;  %v2046_v19 = vadd.f32 %v4294_v42, %v2045_v17  ;;  %v2461_v20 = vpop.f32.mrb[104].mxu1  ;;  %v3462_v21 = vpop.f32.mrb[105].mxu0 }
 0x1b7   : > { %2654 = vst.msk [vmem:[%s3991_s8 + $0x1d0] sm:$0xf] %vm567_vm2, %v3138_v15  ;;  %v3139_v22 = vpack.c.bf16 %v2545_v16, %v2545_v16  ;;  %v2462_v23 = vadd.f32 %v4294_v42, %v2461_v20  ;;  %v3512_v1 = vpop.f32.mrb[105].mxu1  ;;  %v2048_v24 = vpop.f32.mrb[106].mxu0 }
 0x1b8   : > { %2239 = vst.msk [vmem:[%s3991_s8 + $0x17c] sm:$0xf] %vm567_vm2, %v3117_v18  ;;  %v2108_v25 = vmul.f32 0.2, %v2046_v19  ;;  %v2049_v26 = vadd.f32 %v4294_v42, %v2048_v24  ;;  %v2464_v27 = vpop.f32.mrb[106].mxu1  ;;  %v3463_v28 = vpop.f32.mrb[107].mxu0 }
 0x1b9   : > { %2655 = vst.msk [vmem:[%s3991_s8 + $0x1d4] sm:$0xf] %vm567_vm2, %v3139_v22  ;;  %v2524_v29 = vmul.f32 0.2, %v2462_v23  ;;  %v2465_v30 = vadd.f32 %v4294_v42, %v2464_v27  ;;  %v3513_v31 = vpop.f32.mrb[107].mxu1 }
 0x1ba   : > { %v2130_v32 = vmax.f32 %v2046_v19, %v2108_v25  ;;  %v2109_v33 = vmul.f32 0.2, %v2049_v26 }
 0x1bb   : > { %v2546_v34 = vmax.f32 %v2462_v23, %v2524_v29  ;;  %v2525_v35 = vmul.f32 0.2, %v2465_v30 }
 0x1bc   : > { %v3118_v36 = vpack.c.bf16 %v2130_v32, %v2130_v32  ;;  %v2131_v37 = vmax.f32 %v2049_v26, %v2109_v33 }
 0x1bd   : > { %v3140_v38 = vpack.c.bf16 %v2546_v34, %v2546_v34  ;;  %v2547_v39 = vmax.f32 %v2465_v30, %v2525_v35  ;;  %v2053_v40 = vpop.f32.mrb[108].mxu0 }
 0x1be   : > { %2240 = vst.msk [vmem:[%s3991_s8 + $0x180] sm:$0xf] %vm567_vm2, %v3118_v36  ;;  %v3119_v41 = vpack.c.bf16 %v2131_v37, %v2131_v37  ;;  %v2054_v43 = vadd.f32 %v4294_v42, %v2053_v40  ;;  %v2469_v44 = vpop.f32.mrb[108].mxu1  ;;  %v3466_v45 = vpop.f32.mrb[109].mxu0 }
 0x1bf   : > { %2656 = vst.msk [vmem:[%s3991_s8 + $0x1d8] sm:$0xf] %vm567_vm2, %v3140_v38  ;;  %v3141_v46 = vpack.c.bf16 %v2547_v39, %v2547_v39  ;;  %v2470_v47 = vadd.f32 %v4294_v42, %v2469_v44  ;;  %v3516_v10 = vpop.f32.mrb[109].mxu1  ;;  %v2056_v48 = vpop.f32.mrb[110].mxu0 }
 0x1c0   : > { %2241 = vst.msk [vmem:[%s3991_s8 + $0x184] sm:$0xf] %vm567_vm2, %v3119_v41  ;;  %v2110_v49 = vmul.f32 0.2, %v2054_v43  ;;  %v2057_v50 = vadd.f32 %v4294_v42, %v2056_v48  ;;  %v2472_v51 = vpop.f32.mrb[110].mxu1  ;;  %v3467_v52 = vpop.f32.mrb[111].mxu0 }
 0x1c1   : > { %2657 = vst.msk [vmem:[%s3991_s8 + $0x1dc] sm:$0xf] %vm567_vm2, %v3141_v46  ;;  %v2526_v53 = vmul.f32 0.2, %v2470_v47  ;;  %v2473_v54 = vadd.f32 %v4294_v42, %v2472_v51  ;;  %v3517_v55 = vpop.f32.mrb[111].mxu1 }
 0x1c2   : > { %v2132_v56 = vmax.f32 %v2054_v43, %v2110_v49  ;;  %v2111_v57 = vmul.f32 0.2, %v2057_v50 }
 0x1c3   : > { %v2548_v58 = vmax.f32 %v2470_v47, %v2526_v53  ;;  %v2527_v59 = vmul.f32 0.2, %v2473_v54 }
 0x1c4   : > { %v3120_v60 = vpack.c.bf16 %v2132_v56, %v2132_v56  ;;  %v2133_v61 = vmax.f32 %v2057_v50, %v2111_v57 }
 0x1c5   : > { %v3142_v62 = vpack.c.bf16 %v2548_v58, %v2548_v58  ;;  %v2549_v63 = vmax.f32 %v2473_v54, %v2527_v59  ;;  %v2061_v0 = vpop.f32.mrb[112].mxu0 }
 0x1c6   : > { %2242 = vst.msk [vmem:[%s3991_s8 + $0x188] sm:$0xf] %vm567_vm2, %v3120_v60  ;;  %v3121_v2 = vpack.c.bf16 %v2133_v61, %v2133_v61  ;;  %v2062_v3 = vadd.f32 %v4294_v42, %v2061_v0  ;;  %v2477_v4 = vpop.f32.mrb[112].mxu1  ;;  %v3470_v5 = vpop.f32.mrb[113].mxu0 }
 0x1c7   : > { %2658 = vst.msk [vmem:[%s3991_s8 + $0x1e0] sm:$0xf] %vm567_vm2, %v3142_v62  ;;  %v3143_v6 = vpack.c.bf16 %v2549_v63, %v2549_v63  ;;  %v2478_v7 = vadd.f32 %v4294_v42, %v2477_v4  ;;  %v3520_v8 = vpop.f32.mrb[113].mxu1  ;;  %v2064_v9 = vpop.f32.mrb[114].mxu0 }
 0x1c8   : > { %2243 = vst.msk [vmem:[%s3991_s8 + $0x18c] sm:$0xf] %vm567_vm2, %v3121_v2  ;;  %v2112_v11 = vmul.f32 0.2, %v2062_v3  ;;  %v2065_v12 = vadd.f32 %v4294_v42, %v2064_v9  ;;  %v2480_v13 = vpop.f32.mrb[114].mxu1  ;;  %v3471_v14 = vpop.f32.mrb[115].mxu0 }
 0x1c9   : > { %2659 = vst.msk [vmem:[%s3991_s8 + $0x1e4] sm:$0xf] %vm567_vm2, %v3143_v6  ;;  %v2528_v15 = vmul.f32 0.2, %v2478_v7  ;;  %v2481_v16 = vadd.f32 %v4294_v42, %v2480_v13  ;;  %v3521_v17 = vpop.f32.mrb[115].mxu1 }
 0x1ca   : > { %v2134_v18 = vmax.f32 %v2062_v3, %v2112_v11  ;;  %v2113_v19 = vmul.f32 0.2, %v2065_v12 }
 0x1cb   : > { %v2550_v20 = vmax.f32 %v2478_v7, %v2528_v15  ;;  %v2529_v21 = vmul.f32 0.2, %v2481_v16 }
 0x1cc   : > { %v3122_v22 = vpack.c.bf16 %v2134_v18, %v2134_v18  ;;  %v2135_v23 = vmax.f32 %v2065_v12, %v2113_v19 }
 0x1cd   : > { %v3144_v1 = vpack.c.bf16 %v2550_v20, %v2550_v20  ;;  %v2551_v24 = vmax.f32 %v2481_v16, %v2529_v21  ;;  %v2069_v25 = vpop.f32.mrb[116].mxu0 }
 0x1ce   : > { %2244 = vst.msk [vmem:[%s3991_s8 + $0x190] sm:$0xf] %vm567_vm2, %v3122_v22  ;;  %v3123_v26 = vpack.c.bf16 %v2135_v23, %v2135_v23  ;;  %v2070_v27 = vadd.f32 %v4294_v42, %v2069_v25  ;;  %v2485_v28 = vpop.f32.mrb[116].mxu1  ;;  %v3474_v29 = vpop.f32.mrb[117].mxu0 }
 0x1cf   : > { %2660 = vst.msk [vmem:[%s3991_s8 + $0x1e8] sm:$0xf] %vm567_vm2, %v3144_v1  ;;  %v3145_v30 = vpack.c.bf16 %v2551_v24, %v2551_v24  ;;  %v2486_v31 = vadd.f32 %v4294_v42, %v2485_v28  ;;  %v3524_v32 = vpop.f32.mrb[117].mxu1  ;;  %v2072_v33 = vpop.f32.mrb[118].mxu0 }
 0x1d0   : > { %2245 = vst.msk [vmem:[%s3991_s8 + $0x194] sm:$0xf] %vm567_vm2, %v3123_v26  ;;  %v2114_v34 = vmul.f32 0.2, %v2070_v27  ;;  %v2073_v35 = vadd.f32 %v4294_v42, %v2072_v33  ;;  %v2488_v36 = vpop.f32.mrb[118].mxu1  ;;  %v3475_v37 = vpop.f32.mrb[119].mxu0 }
 0x1d1   : > { %2661 = vst.msk [vmem:[%s3991_s8 + $0x1ec] sm:$0xf] %vm567_vm2, %v3145_v30  ;;  %v2530_v38 = vmul.f32 0.2, %v2486_v31  ;;  %v2489_v39 = vadd.f32 %v4294_v42, %v2488_v36  ;;  %v3525_v40 = vpop.f32.mrb[119].mxu1 }
 0x1d2   : > { %v2136_v41 = vmax.f32 %v2070_v27, %v2114_v34  ;;  %v2115_v43 = vmul.f32 0.2, %v2073_v35 }
 0x1d3   : > { %v2552_v44 = vmax.f32 %v2486_v31, %v2530_v38  ;;  %v2531_v45 = vmul.f32 0.2, %v2489_v39 }
 0x1d4   : > { %v3124_v46 = vpack.c.bf16 %v2136_v41, %v2136_v41  ;;  %v2137_v47 = vmax.f32 %v2073_v35, %v2115_v43 }
 0x1d5   : > { %v3146_v10 = vpack.c.bf16 %v2552_v44, %v2552_v44  ;;  %v2553_v48 = vmax.f32 %v2489_v39, %v2531_v45  ;;  %v2077_v49 = vpop.f32.mrb[120].mxu0 }
 0x1d6   : > { %2246 = vst.msk [vmem:[%s3991_s8 + $0x198] sm:$0xf] %vm567_vm2, %v3124_v46  ;;  %v3125_v50 = vpack.c.bf16 %v2137_v47, %v2137_v47  ;;  %v2078_v51 = vadd.f32 %v4294_v42, %v2077_v49  ;;  %v2493_v52 = vpop.f32.mrb[120].mxu1  ;;  %v3478_v53 = vpop.f32.mrb[121].mxu0 }
 0x1d7   : > { %2662 = vst.msk [vmem:[%s3991_s8 + $0x1f0] sm:$0xf] %vm567_vm2, %v3146_v10  ;;  %v3147_v54 = vpack.c.bf16 %v2553_v48, %v2553_v48  ;;  %v2494_v55 = vadd.f32 %v4294_v42, %v2493_v52  ;;  %v3528_v56 = vpop.f32.mrb[121].mxu1  ;;  %v2080_v57 = vpop.f32.mrb[122].mxu0 }
 0x1d8   : > { %2247 = vst.msk [vmem:[%s3991_s8 + $0x19c] sm:$0xf] %vm567_vm2, %v3125_v50  ;;  %v2116_v58 = vmul.f32 0.2, %v2078_v51  ;;  %v2081_v59 = vadd.f32 %v4294_v42, %v2080_v57  ;;  %v2496_v60 = vpop.f32.mrb[122].mxu1  ;;  %v3479_v61 = vpop.f32.mrb[123].mxu0 }
 0x1d9   : > { %2663 = vst.msk [vmem:[%s3991_s8 + $0x1f4] sm:$0xf] %vm567_vm2, %v3147_v54  ;;  %v2532_v62 = vmul.f32 0.2, %v2494_v55  ;;  %v2497_v63 = vadd.f32 %v4294_v42, %v2496_v60  ;;  %v3529_v0 = vpop.f32.mrb[123].mxu1 }
 0x1da   : > { %v2138_v2 = vmax.f32 %v2078_v51, %v2116_v58  ;;  %v2117_v3 = vmul.f32 0.2, %v2081_v59 }
 0x1db   : > { %v2554_v4 = vmax.f32 %v2494_v55, %v2532_v62  ;;  %v2533_v5 = vmul.f32 0.2, %v2497_v63 }
 0x1dc   : > { %v3126_v6 = vpack.c.bf16 %v2138_v2, %v2138_v2  ;;  %v2139_v7 = vmax.f32 %v2081_v59, %v2117_v3 }
 0x1dd   : > { %v3148_v8 = vpack.c.bf16 %v2554_v4, %v2554_v4  ;;  %v2555_v9 = vmax.f32 %v2497_v63, %v2533_v5  ;;  %v2085_v11 = vpop.f32.mrb[124].mxu0 }
 0x1de   : > { %2248 = vst.msk [vmem:[%s3991_s8 + $0x1a0] sm:$0xf] %vm567_vm2, %v3126_v6  ;;  %v3127_v12 = vpack.c.bf16 %v2139_v7, %v2139_v7  ;;  %v2086_v13 = vadd.f32 %v4294_v42, %v2085_v11  ;;  %v2501_v14 = vpop.f32.mrb[124].mxu1  ;;  %v3482_v15 = vpop.f32.mrb[125].mxu0 }
 0x1df   : > { %2664 = vst.msk [vmem:[%s3991_s8 + $0x1f8] sm:$0xf] %vm567_vm2, %v3148_v8  ;;  %v3149_v16 = vpack.c.bf16 %v2555_v9, %v2555_v9  ;;  %v2502_v17 = vadd.f32 %v4294_v42, %v2501_v14  ;;  %v3532_v18 = vpop.f32.mrb[125].mxu1  ;;  %v2088_v19 = vpop.f32.mrb[126].mxu0 }
 0x1e0   : > { %2249 = vst.msk [vmem:[%s3991_s8 + $0x1a4] sm:$0xf] %vm567_vm2, %v3127_v12  ;;  %v2118_v20 = vmul.f32 0.2, %v2086_v13  ;;  %v2089_v21 = vadd.f32 %v4294_v42, %v2088_v19  ;;  %v2504_v22 = vpop.f32.mrb[126].mxu1  ;;  %v3483_v23 = vpop.f32.mrb[127].mxu0 }
 0x1e1   : > { %2665 = vst.msk [vmem:[%s3991_s8 + $0x1fc] sm:$0xf] %vm567_vm2, %v3149_v16  ;;  %v2534_v1 = vmul.f32 0.2, %v2502_v17  ;;  %v2505_v24 = vadd.f32 %v4294_v42, %v2504_v22  ;;  %v3533_v25 = vpop.f32.mrb[127].mxu1 }
 0x1e2   : > { %v2140_v26 = vmax.f32 %v2086_v13, %v2118_v20  ;;  %v2119_v27 = vmul.f32 0.2, %v2089_v21 }
 0x1e3   : > { %v2556_v28 = vmax.f32 %v2502_v17, %v2534_v1  ;;  %v2535_v29 = vmul.f32 0.2, %v2505_v24 }
 0x1e4   : > { %v3128_v30 = vpack.c.bf16 %v2140_v26, %v2140_v26  ;;  %v2141_v31 = vmax.f32 %v2089_v21, %v2119_v27 }
 0x1e5   : > { %v3150_v32 = vpack.c.bf16 %v2556_v28, %v2556_v28  ;;  %v2557_v33 = vmax.f32 %v2505_v24, %v2535_v29  ;;  %v2093_v34 = vpop.f32.mrb[128].mxu0 }
 0x1e6   : > { %2250 = vst.msk [vmem:[%s3991_s8 + $0x1a8] sm:$0xf] %vm567_vm2, %v3128_v30  ;;  %v3129_v35 = vpack.c.bf16 %v2141_v31, %v2141_v31  ;;  %v2094_v36 = vadd.f32 %v4294_v42, %v2093_v34  ;;  %v2509_v37 = vpop.f32.mrb[128].mxu1  ;;  %v3486_v38 = vpop.f32.mrb[129].mxu0 }
 0x1e7   : > { %2666 = vst.msk [vmem:[%s3991_s8 + $0x200] sm:$0xf] %vm567_vm2, %v3150_v32  ;;  %v3151_v39 = vpack.c.bf16 %v2557_v33, %v2557_v33  ;;  %v2510_v40 = vadd.f32 %v4294_v42, %v2509_v37  ;;  %v3536_v41 = vpop.f32.mrb[129].mxu1  ;;  %v2096_v43 = vpop.f32.mrb[130].mxu0 }
 0x1e8   : > { %2251 = vst.msk [vmem:[%s3991_s8 + $0x1ac] sm:$0xf] %vm567_vm2, %v3129_v35  ;;  %v2120_v44 = vmul.f32 0.2, %v2094_v36  ;;  %v2097_v45 = vadd.f32 %v4294_v42, %v2096_v43  ;;  %v2512_v46 = vpop.f32.mrb[130].mxu1  ;;  %v3487_v47 = vpop.f32.mrb[131].mxu0 }
 0x1e9   : > { %2667 = vst.msk [vmem:[%s3991_s8 + $0x204] sm:$0xf] %vm567_vm2, %v3151_v39  ;;  %v2536_v10 = vmul.f32 0.2, %v2510_v40  ;;  %v2513_v48 = vadd.f32 %v4294_v42, %v2512_v46  ;;  %v3537_v49 = vpop.f32.mrb[131].mxu1 }
 0x1ea   : > { %v2142_v50 = vmax.f32 %v2094_v36, %v2120_v44  ;;  %v2121_v51 = vmul.f32 0.2, %v2097_v45 }
 0x1eb   : > { %v2558_v52 = vmax.f32 %v2510_v40, %v2536_v10  ;;  %v2537_v53 = vmul.f32 0.2, %v2513_v48 }
 0x1ec   : > { %v3130_v54 = vpack.c.bf16 %v2142_v50, %v2142_v50  ;;  %v2143_v55 = vmax.f32 %v2097_v45, %v2121_v51 }
 0x1ed   : > { %v3152_v56 = vpack.c.bf16 %v2558_v52, %v2558_v52  ;;  %v2559_v57 = vmax.f32 %v2513_v48, %v2537_v53 }
 0x1ee   : > { %2252 = vst.msk [vmem:[%s3991_s8 + $0x1b0] sm:$0xf] %vm567_vm2, %v3130_v54  ;;  %v3131_v58 = vpack.c.bf16 %v2143_v55, %v2143_v55 }
 0x1ef   : > { %2668 = vst.msk [vmem:[%s3991_s8 + $0x208] sm:$0xf] %vm567_vm2, %v3152_v56  ;;  %v3153_v59 = vpack.c.bf16 %v2559_v57, %v2559_v57 }
 0x1f0   : > { %2253 = vst.msk [vmem:[%s3991_s8 + $0x1b4] sm:$0xf] %vm567_vm2, %v3131_v58 }
 0x1f1   : > { %2669 = vst.msk [vmem:[%s3991_s8 + $0x20c] sm:$0xf] %vm567_vm2, %v3153_v59 }
 0x1f2 PF: > { %s13_s12 = sadd.s32 1, %s3640_s12  }
 0x1f3   : > { %p10_p4 = scmp.ge.s32.totalorder %s13_s12, 4  }
 0x1f5   :  { %12 = sbr.rel (!%p10_p4) target bundleno = 1 (0x1), region = 62 }

// kernel: discriminator_forward.6
= control target key start
LH: loop header
LB: loop body
LE: loop exit
PB: predicated region body
PF: predicated region fallthrough
CT: control target
= control target key end

     0   :  { %s1306_s12 = smov 0   ;;  %s1565_s0 = inlined_call_operand.vmem [shape: bf16[2,288,128], index: 0, kind: input, shape index: {}]   ;;  %s1566_s1 = inlined_call_operand.vmem [shape: bf16[1,128,16], index: 1, kind: input, shape index: {}]   ;;  %s1567_s2 = inlined_call_operand.vmem [shape: f32[1,16], index: 2, kind: input, shape index: {}]   ;;  %s1568_s3 = inlined_call_operand.vmem [shape: bf16[2,288,16], index: 3, kind: output, shape index: {}]  }
   0x1 LB: > { %s976_s13 = sadd.s32 4294967295, %s1282_s12   ;;  %p980_p0 = scmp.ge.s32.totalorder %s1282_s12, 1  ;;  %s1282_s12 = sphi %s1306_s12, %s13_s12  }
   0x2   : > { %p137_p1 = scmp.lt.s32.totalorder %s1282_s12, 3 }
   0x4   : > { %p138_p2 = pnand %p980_p0, %p137_p1 }
   0x5   : > { %v1242_v0 = vld [vmem:[%s1566_s1] sm:$0xff] (!%p138_p2)   ;;  %v1284_v1 = vmov (!%p138_p2), 0.0   ;;  %v1244_v3 = vld [vmem:[%s1566_s1 + $0x8] sm:$0xff] (!%p138_p2)   ;;  %vm1285_vm0 = vmmov (!%p138_p2), 0   ;;  %p161_p3 = scmp.lt.s32.totalorder (!%p138_p2), %s976_s13, 1  ;;  %v1246_v5 = vld [vmem:[%s1566_s1 + $0x10] sm:$0xff] (!%p138_p2)  }
   0x6   : > { %141 = sbr.rel (%p138_p2) target bundleno = 326 (0x146), region = 32  ;;  %1127 = vmatprep.subr.bf16.mxu0 (!%p138_p2), %v1284_v1  ;;  %1179 = vmatprep.subr.bf16.mxu1 (!%p138_p2), %v1284_v1  ;;  %v1243_v2 = vld [vmem:[%s1566_s1] sm:$0xff] (!%p138_p2)   ;;  %v1245_v4 = vld [vmem:[%s1566_s1 + $0x8] sm:$0xff] (!%p138_p2)   ;;  %v1247_v6 = vld [vmem:[%s1566_s1 + $0x10] sm:$0xff] (!%p138_p2)   ;;  %vm528_vm1 = vcmask (!%p138_p2), 125952  }
   0x7   : > { %1128 = vmatpush3.bf16.msra.mxu0 (!%p138_p2), %v1242_v0  ;;  %1143 = vmatprep.mubr.msk.bf16.mxu0 (!%p138_p2), %vm1285_vm0, %v1284_v1  ;;  %v1248_v7 = vld [vmem:[%s1566_s1 + $0x18] sm:$0xff] (!%p138_p2)   ;;  %v1250_v9 = vld [vmem:[%s1566_s1 + $0x20] sm:$0xff] (!%p138_p2)   ;;  %v1252_v11 = vld [vmem:[%s1566_s1 + $0x28] sm:$0xff] (!%p138_p2)  }
   0x8   : > { %1180 = vmatpush3.bf16.msra.mxu1 (!%p138_p2), %v1243_v2  ;;  %1129 = vmatprep.subr.bf16.mxu0 (!%p138_p2), %v1284_v1  ;;  %v1249_v8 = vld [vmem:[%s1566_s1 + $0x18] sm:$0xff] (!%p138_p2)   ;;  %v1251_v10 = vld [vmem:[%s1566_s1 + $0x20] sm:$0xff] (!%p138_p2)   ;;  %v1253_v12 = vld [vmem:[%s1566_s1 + $0x28] sm:$0xff] (!%p138_p2)  }
   0x9   : > { %1181 = vmatprep.subr.bf16.mxu1 (!%p138_p2), %v1284_v1  ;;  %1195 = vmatprep.mubr.msk.bf16.mxu1 (!%p138_p2), %vm1285_vm0, %v1284_v1  ;;  %v1254_v13 = vld [vmem:[%s1566_s1 + $0x30] sm:$0xff] (!%p138_p2)   ;;  %v1256_v15 = vld [vmem:[%s1566_s1 + $0x38] sm:$0xff] (!%p138_p2)   ;;  %v1445_v35 = vld [vmem:[%s1567_s2] ss:$0 sm:$0xff] (!%p138_p2) }
   0xa   : > { %v1255_v14 = vld [vmem:[%s1566_s1 + $0x30] sm:$0xff] (!%p138_p2)   ;;  %v1257_v16 = vld [vmem:[%s1566_s1 + $0x38] sm:$0xff] (!%p138_p2)  }
   0xb   : > { %1130 = vmatpush3.bf16.msra.mxu0 (!%p138_p2), %v1244_v3 }
   0xc   : > { %1182 = vmatpush3.bf16.msra.mxu1 (!%p138_p2), %v1245_v4  ;;  %1131 = vmatprep.subr.bf16.mxu0 (!%p138_p2), %v1284_v1 }
   0xd   : > { %s1570_s13 = smov (!%p161_p3, %s976_s13), 1  ;;  %1183 = vmatprep.subr.bf16.mxu1 %v1284_v1 }
   0xe   : > { %s1231_s30 = smul.u32 144, %s1570_s13 }
   0xf   : > { %1132 = vmatpush3.bf16.msra.mxu0 %v1246_v5 }
  0x10   : > { %1184 = vmatpush3.bf16.msra.mxu1 %v1247_v6  ;;  %1133 = vmatprep.subr.bf16.mxu0 %v1284_v1  ;;  %s1365_s10 = scalar_lea.vmem %s1565_s0, %s1231_s30  ;;  %s1456_s29 = scalar_lea.vmem %s1568_s3, %s1231_s30 }
  0x11   : > { %1185 = vmatprep.subr.bf16.mxu1 %v1284_v1  ;;  %v1258_v17 = vld [vmem:[%s1365_s10] sm:$0xff]   ;;  %v1259_v18 = vld [vmem:[%s1365_s10 + $0x48] sm:$0xff]   ;;  %v1261_v20 = vld [vmem:[%s1365_s10 + $0x50] sm:$0xff]  }
  0x12   : > { %v1260_v19 = vld [vmem:[%s1365_s10 + $0x8] sm:$0xff]   ;;  %v1262_v21 = vld [vmem:[%s1365_s10 + $0x10] sm:$0xff]   ;;  %v1263_v22 = vld [vmem:[%s1365_s10 + $0x58] sm:$0xff]  }
  0x13   : > { %1134 = vmatpush3.bf16.msra.mxu0 %v1248_v7  ;;  %v1264_v23 = vld [vmem:[%s1365_s10 + $0x18] sm:$0xff]   ;;  %v1265_v24 = vld [vmem:[%s1365_s10 + $0x60] sm:$0xff]   ;;  %v1267_v26 = vld [vmem:[%s1365_s10 + $0x68] sm:$0xff]  }
  0x14   : > { %1186 = vmatpush3.bf16.msra.mxu1 %v1249_v8  ;;  %1135 = vmatprep.subr.bf16.mxu0 %v1284_v1  ;;  %v1266_v25 = vld [vmem:[%s1365_s10 + $0x20] sm:$0xff]   ;;  %v1268_v27 = vld [vmem:[%s1365_s10 + $0x28] sm:$0xff]   ;;  %v1269_v28 = vld [vmem:[%s1365_s10 + $0x70] sm:$0xff]  }
  0x15   : > { %1187 = vmatprep.subr.bf16.mxu1 %v1284_v1  ;;  %v1270_v29 = vld [vmem:[%s1365_s10 + $0x30] sm:$0xff]   ;;  %v1271_v30 = vld [vmem:[%s1365_s10 + $0x78] sm:$0xff]   ;;  %v1273_v32 = vld [vmem:[%s1365_s10 + $0x80] sm:$0xff]  }
  0x16   : > { %v1272_v31 = vld [vmem:[%s1365_s10 + $0x38] sm:$0xff]   ;;  %v1274_v33 = vld [vmem:[%s1365_s10 + $0x40] sm:$0xff]   ;;  %v1275_v34 = vld [vmem:[%s1365_s10 + $0x88] sm:$0xff]  }
  0x17   : > { %1136 = vmatpush3.bf16.msra.mxu0 %v1250_v9 }
  0x18   : > { %1188 = vmatpush3.bf16.msra.mxu1 %v1251_v10  ;;  %1137 = vmatprep.subr.bf16.mxu0 %v1284_v1 }
  0x19   : > { %1189 = vmatprep.subr.bf16.mxu1 %v1284_v1 }
  0x1b   : > { %1138 = vmatpush3.bf16.msra.mxu0 %v1252_v11 }
  0x1c   : > { %1190 = vmatpush3.bf16.msra.mxu1 %v1253_v12  ;;  %1139 = vmatprep.subr.bf16.mxu0 %v1284_v1 }
  0x1d   : > { %1191 = vmatprep.subr.bf16.mxu1 %v1284_v1 }
  0x1f   : > { %1140 = vmatpush3.bf16.msra.mxu0 %v1254_v13 }
  0x20   : > { %1192 = vmatpush3.bf16.msra.mxu1 %v1255_v14  ;;  %1141 = vmatprep.subr.bf16.mxu0 %v1284_v1 }
  0x21   : > { %1193 = vmatprep.subr.bf16.mxu1 %v1284_v1 }
  0x23   : > { %1142 = vmatpush3.bf16.msra.mxu0 %v1256_v15 }
  0x24   : > { %1194 = vmatpush3.bf16.msra.mxu1 %v1257_v16 }
  0x26   : > { %1144 = vmatmul.mubr.bf16.vlgmr.msra.gmra.mrb[0].mxu0 %v1258_v17 }
  0x27   : > { %1196 = vmatmul.mubr.bf16.vlgmr.msra.gmra.mrb[0].mxu1 %v1259_v18  ;;  %1147 = vmatprep.mubr.msk.bf16.mxu0 %vm1285_vm0, %v1284_v1 }
  0x28   : > { %1199 = vmatprep.mubr.msk.bf16.mxu1 %vm1285_vm0, %v1284_v1 }
  0x2e   : > { %1148 = vmatmul.mubr.bf16.gmra.mrb[4].mxu0 %v1260_v19 }
  0x2f   : > { %1200 = vmatmul.mubr.bf16.gmra.mrb[4].mxu1 %v1261_v20  ;;  %1151 = vmatprep.mubr.msk.bf16.mxu0 %vm1285_vm0, %v1284_v1 }
  0x30   : > { %1203 = vmatprep.mubr.msk.bf16.mxu1 %vm1285_vm0, %v1284_v1 }
  0x36   : > { %1152 = vmatmul.mubr.bf16.gmra.mrb[8].mxu0 %v1262_v21 }
  0x37   : > { %1204 = vmatmul.mubr.bf16.gmra.mrb[8].mxu1 %v1263_v22  ;;  %1155 = vmatprep.mubr.msk.bf16.mxu0 %vm1285_vm0, %v1284_v1 }
  0x38   : > { %1207 = vmatprep.mubr.msk.bf16.mxu1 %vm1285_vm0, %v1284_v1 }
  0x3e   : > { %1156 = vmatmul.mubr.bf16.gmra.mrb[12].mxu0 %v1264_v23 }
  0x3f   : > { %1208 = vmatmul.mubr.bf16.gmra.mrb[12].mxu1 %v1265_v24  ;;  %1159 = vmatprep.mubr.msk.bf16.mxu0 %vm1285_vm0, %v1284_v1 }
  0x40   : > { %1211 = vmatprep.mubr.msk.bf16.mxu1 %vm1285_vm0, %v1284_v1 }
  0x46   : > { %1160 = vmatmul.mubr.bf16.gmra.mrb[16].mxu0 %v1266_v25 }
  0x47   : > { %1212 = vmatmul.mubr.bf16.gmra.mrb[16].mxu1 %v1267_v26  ;;  %1163 = vmatprep.mubr.msk.bf16.mxu0 %vm1285_vm0, %v1284_v1 }
  0x48   : > { %1215 = vmatprep.mubr.msk.bf16.mxu1 %vm1285_vm0, %v1284_v1 }
  0x4e   : > { %1164 = vmatmul.mubr.bf16.gmra.mrb[20].mxu0 %v1268_v27 }
  0x4f   : > { %1216 = vmatmul.mubr.bf16.gmra.mrb[20].mxu1 %v1269_v28  ;;  %1167 = vmatprep.mubr.msk.bf16.mxu0 %vm1285_vm0, %v1284_v1 }
  0x50   : > { %1219 = vmatprep.mubr.msk.bf16.mxu1 %vm1285_vm0, %v1284_v1 }
  0x56   : > { %1168 = vmatmul.mubr.bf16.gmra.mrb[24].mxu0 %v1270_v29 }
  0x57   : > { %1220 = vmatmul.mubr.bf16.gmra.mrb[24].mxu1 %v1271_v30  ;;  %1171 = vmatprep.mubr.msk.bf16.mxu0 %vm1285_vm0, %v1284_v1 }
  0x58   : > { %1223 = vmatprep.mubr.msk.bf16.mxu1 %vm1285_vm0, %v1284_v1 }
  0x5e   : > { %1172 = vmatmul.mubr.bf16.gmra.mrb[28].mxu0 %v1272_v31 }
  0x5f   : > { %1224 = vmatmul.mubr.bf16.gmra.mrb[28].mxu1 %v1273_v32  ;;  %1175 = vmatprep.mubr.msk.bf16.mxu0 %vm1285_vm0, %v1284_v1 }
  0x60   : > { %1227 = vmatprep.mubr.msk.bf16.mxu1 %vm1285_vm0, %v1284_v1 }
  0x66   : > { %1176 = vmatmul.mubr.bf16.gmra.mrb[32].mxu0 %v1274_v33 }
  0x67   : > { %1228 = vmatmul.mubr.bf16.gmra.mrb[32].mxu1 %v1275_v34 }
  0xf9   : > { %v349_v36 = vpop.f32.mrb[0].mxu0 }
  0xfa   : > { %v350_v37 = vadd.f32 %v1445_v35, %v349_v36  ;;  %v724_v38 = vpop.f32.mrb[0].mxu1  ;;  %v1145_v39 = vpop.f32.mrb[1].mxu0 }
  0xfb   : > { %v725_v40 = vadd.f32 %v1445_v35, %v724_v38  ;;  %v1197_v41 = vpop.f32.mrb[1].mxu1  ;;  %v352_v42 = vpop.f32.mrb[2].mxu0 }
  0xfc   : > { %v420_v43 = vmul.f32 0.2, %v350_v37  ;;  %v353_v44 = vadd.f32 %v1445_v35, %v352_v42  ;;  %v727_v45 = vpop.f32.mrb[2].mxu1  ;;  %v1146_v46 = vpop.f32.mrb[3].mxu0 }
  0xfd   : > { %v795_v47 = vmul.f32 0.2, %v725_v40  ;;  %v728_v48 = vadd.f32 %v1445_v35, %v727_v45  ;;  %v1198_v49 = vpop.f32.mrb[3].mxu1 }
  0xfe   : > { %v438_v50 = vmax.f32 %v350_v37, %v420_v43  ;;  %v421_v51 = vmul.f32 0.2, %v353_v44 }
  0xff   : > { %v813_v52 = vmax.f32 %v725_v40, %v795_v47  ;;  %v796_v53 = vmul.f32 0.2, %v728_v48 }
 0x100   : > { %v1057_v54 = vpack.c.bf16 %v438_v50, %v438_v50  ;;  %v439_v55 = vmax.f32 %v353_v44, %v421_v51 }
 0x101   : > { %v1075_v56 = vpack.c.bf16 %v813_v52, %v813_v52  ;;  %v814_v57 = vmax.f32 %v728_v48, %v796_v53  ;;  %v357_v58 = vpop.f32.mrb[4].mxu0 }
 0x102   : > { %529 = vst.msk [vmem:[%s1456_s29] sm:$0xf] %vm528_vm1, %v1057_v54  ;;  %v1058_v59 = vpack.c.bf16 %v439_v55, %v439_v55  ;;  %v358_v60 = vadd.f32 %v1445_v35, %v357_v58  ;;  %v732_v61 = vpop.f32.mrb[4].mxu1  ;;  %v1149_v62 = vpop.f32.mrb[5].mxu0 }
 0x103   : > { %903 = vst.msk [vmem:[%s1456_s29 + $0x48] sm:$0xf] %vm528_vm1, %v1075_v56  ;;  %v1076_v63 = vpack.c.bf16 %v814_v57, %v814_v57  ;;  %v733_v0 = vadd.f32 %v1445_v35, %v732_v61  ;;  %v1201_v1 = vpop.f32.mrb[5].mxu1  ;;  %v360_v2 = vpop.f32.mrb[6].mxu0 }
 0x104   : > { %530 = vst.msk [vmem:[%s1456_s29 + $0x4] sm:$0xf] %vm528_vm1, %v1058_v59  ;;  %v422_v3 = vmul.f32 0.2, %v358_v60  ;;  %v361_v4 = vadd.f32 %v1445_v35, %v360_v2  ;;  %v735_v5 = vpop.f32.mrb[6].mxu1  ;;  %v1150_v6 = vpop.f32.mrb[7].mxu0 }
 0x105   : > { %904 = vst.msk [vmem:[%s1456_s29 + $0x4c] sm:$0xf] %vm528_vm1, %v1076_v63  ;;  %v797_v7 = vmul.f32 0.2, %v733_v0  ;;  %v736_v8 = vadd.f32 %v1445_v35, %v735_v5  ;;  %v1202_v9 = vpop.f32.mrb[7].mxu1 }
 0x106   : > { %v440_v10 = vmax.f32 %v358_v60, %v422_v3  ;;  %v423_v11 = vmul.f32 0.2, %v361_v4 }
 0x107   : > { %v815_v12 = vmax.f32 %v733_v0, %v797_v7  ;;  %v798_v13 = vmul.f32 0.2, %v736_v8 }
 0x108   : > { %v1059_v14 = vpack.c.bf16 %v440_v10, %v440_v10  ;;  %v441_v15 = vmax.f32 %v361_v4, %v423_v11 }
 0x109   : > { %v1077_v16 = vpack.c.bf16 %v815_v12, %v815_v12  ;;  %v816_v17 = vmax.f32 %v736_v8, %v798_v13  ;;  %v365_v18 = vpop.f32.mrb[8].mxu0 }
 0x10a   : > { %531 = vst.msk [vmem:[%s1456_s29 + $0x8] sm:$0xf] %vm528_vm1, %v1059_v14  ;;  %v1060_v19 = vpack.c.bf16 %v441_v15, %v441_v15  ;;  %v366_v20 = vadd.f32 %v1445_v35, %v365_v18  ;;  %v740_v21 = vpop.f32.mrb[8].mxu1  ;;  %v1153_v22 = vpop.f32.mrb[9].mxu0 }
 0x10b   : > { %905 = vst.msk [vmem:[%s1456_s29 + $0x50] sm:$0xf] %vm528_vm1, %v1077_v16  ;;  %v1078_v23 = vpack.c.bf16 %v816_v17, %v816_v17  ;;  %v741_v24 = vadd.f32 %v1445_v35, %v740_v21  ;;  %v1205_v25 = vpop.f32.mrb[9].mxu1  ;;  %v368_v26 = vpop.f32.mrb[10].mxu0 }
 0x10c   : > { %532 = vst.msk [vmem:[%s1456_s29 + $0xc] sm:$0xf] %vm528_vm1, %v1060_v19  ;;  %v424_v27 = vmul.f32 0.2, %v366_v20  ;;  %v369_v28 = vadd.f32 %v1445_v35, %v368_v26  ;;  %v743_v29 = vpop.f32.mrb[10].mxu1  ;;  %v1154_v30 = vpop.f32.mrb[11].mxu0 }
 0x10d   : > { %906 = vst.msk [vmem:[%s1456_s29 + $0x54] sm:$0xf] %vm528_vm1, %v1078_v23  ;;  %v799_v31 = vmul.f32 0.2, %v741_v24  ;;  %v744_v32 = vadd.f32 %v1445_v35, %v743_v29  ;;  %v1206_v33 = vpop.f32.mrb[11].mxu1 }
 0x10e   : > { %v442_v34 = vmax.f32 %v366_v20, %v424_v27  ;;  %v425_v36 = vmul.f32 0.2, %v369_v28 }
 0x10f   : > { %v817_v37 = vmax.f32 %v741_v24, %v799_v31  ;;  %v800_v38 = vmul.f32 0.2, %v744_v32 }
 0x110   : > { %v1061_v39 = vpack.c.bf16 %v442_v34, %v442_v34  ;;  %v443_v40 = vmax.f32 %v369_v28, %v425_v36 }
 0x111   : > { %v1079_v41 = vpack.c.bf16 %v817_v37, %v817_v37  ;;  %v818_v42 = vmax.f32 %v744_v32, %v800_v38  ;;  %v373_v43 = vpop.f32.mrb[12].mxu0 }
 0x112   : > { %533 = vst.msk [vmem:[%s1456_s29 + $0x10] sm:$0xf] %vm528_vm1, %v1061_v39  ;;  %v1062_v44 = vpack.c.bf16 %v443_v40, %v443_v40  ;;  %v374_v45 = vadd.f32 %v1445_v35, %v373_v43  ;;  %v748_v46 = vpop.f32.mrb[12].mxu1  ;;  %v1157_v47 = vpop.f32.mrb[13].mxu0 }
 0x113   : > { %907 = vst.msk [vmem:[%s1456_s29 + $0x58] sm:$0xf] %vm528_vm1, %v1079_v41  ;;  %v1080_v48 = vpack.c.bf16 %v818_v42, %v818_v42  ;;  %v749_v49 = vadd.f32 %v1445_v35, %v748_v46  ;;  %v1209_v50 = vpop.f32.mrb[13].mxu1  ;;  %v376_v51 = vpop.f32.mrb[14].mxu0 }
 0x114   : > { %534 = vst.msk [vmem:[%s1456_s29 + $0x14] sm:$0xf] %vm528_vm1, %v1062_v44  ;;  %v426_v52 = vmul.f32 0.2, %v374_v45  ;;  %v377_v53 = vadd.f32 %v1445_v35, %v376_v51  ;;  %v751_v54 = vpop.f32.mrb[14].mxu1  ;;  %v1158_v55 = vpop.f32.mrb[15].mxu0 }
 0x115   : > { %908 = vst.msk [vmem:[%s1456_s29 + $0x5c] sm:$0xf] %vm528_vm1, %v1080_v48  ;;  %v801_v56 = vmul.f32 0.2, %v749_v49  ;;  %v752_v57 = vadd.f32 %v1445_v35, %v751_v54  ;;  %v1210_v58 = vpop.f32.mrb[15].mxu1 }
 0x116   : > { %v444_v59 = vmax.f32 %v374_v45, %v426_v52  ;;  %v427_v60 = vmul.f32 0.2, %v377_v53 }
 0x117   : > { %v819_v61 = vmax.f32 %v749_v49, %v801_v56  ;;  %v802_v62 = vmul.f32 0.2, %v752_v57 }
 0x118   : > { %v1063_v63 = vpack.c.bf16 %v444_v59, %v444_v59  ;;  %v445_v0 = vmax.f32 %v377_v53, %v427_v60 }
 0x119   : > { %v1081_v1 = vpack.c.bf16 %v819_v61, %v819_v61  ;;  %v820_v2 = vmax.f32 %v752_v57, %v802_v62  ;;  %v381_v3 = vpop.f32.mrb[16].mxu0 }
 0x11a   : > { %535 = vst.msk [vmem:[%s1456_s29 + $0x18] sm:$0xf] %vm528_vm1, %v1063_v63  ;;  %v1064_v4 = vpack.c.bf16 %v445_v0, %v445_v0  ;;  %v382_v5 = vadd.f32 %v1445_v35, %v381_v3  ;;  %v756_v6 = vpop.f32.mrb[16].mxu1  ;;  %v1161_v7 = vpop.f32.mrb[17].mxu0 }
 0x11b   : > { %909 = vst.msk [vmem:[%s1456_s29 + $0x60] sm:$0xf] %vm528_vm1, %v1081_v1  ;;  %v1082_v8 = vpack.c.bf16 %v820_v2, %v820_v2  ;;  %v757_v9 = vadd.f32 %v1445_v35, %v756_v6  ;;  %v1213_v10 = vpop.f32.mrb[17].mxu1  ;;  %v384_v11 = vpop.f32.mrb[18].mxu0 }
 0x11c   : > { %536 = vst.msk [vmem:[%s1456_s29 + $0x1c] sm:$0xf] %vm528_vm1, %v1064_v4  ;;  %v428_v12 = vmul.f32 0.2, %v382_v5  ;;  %v385_v13 = vadd.f32 %v1445_v35, %v384_v11  ;;  %v759_v14 = vpop.f32.mrb[18].mxu1  ;;  %v1162_v15 = vpop.f32.mrb[19].mxu0 }
 0x11d   : > { %910 = vst.msk [vmem:[%s1456_s29 + $0x64] sm:$0xf] %vm528_vm1, %v1082_v8  ;;  %v803_v16 = vmul.f32 0.2, %v757_v9  ;;  %v760_v17 = vadd.f32 %v1445_v35, %v759_v14  ;;  %v1214_v18 = vpop.f32.mrb[19].mxu1 }
 0x11e   : > { %v446_v19 = vmax.f32 %v382_v5, %v428_v12  ;;  %v429_v20 = vmul.f32 0.2, %v385_v13 }
 0x11f   : > { %v821_v21 = vmax.f32 %v757_v9, %v803_v16  ;;  %v804_v22 = vmul.f32 0.2, %v760_v17 }
 0x120   : > { %v1065_v23 = vpack.c.bf16 %v446_v19, %v446_v19  ;;  %v447_v24 = vmax.f32 %v385_v13, %v429_v20 }
 0x121   : > { %v1083_v25 = vpack.c.bf16 %v821_v21, %v821_v21  ;;  %v822_v26 = vmax.f32 %v760_v17, %v804_v22  ;;  %v389_v27 = vpop.f32.mrb[20].mxu0 }
 0x122   : > { %537 = vst.msk [vmem:[%s1456_s29 + $0x20] sm:$0xf] %vm528_vm1, %v1065_v23  ;;  %v1066_v28 = vpack.c.bf16 %v447_v24, %v447_v24  ;;  %v390_v29 = vadd.f32 %v1445_v35, %v389_v27  ;;  %v764_v30 = vpop.f32.mrb[20].mxu1  ;;  %v1165_v31 = vpop.f32.mrb[21].mxu0 }
 0x123   : > { %911 = vst.msk [vmem:[%s1456_s29 + $0x68] sm:$0xf] %vm528_vm1, %v1083_v25  ;;  %v1084_v32 = vpack.c.bf16 %v822_v26, %v822_v26  ;;  %v765_v33 = vadd.f32 %v1445_v35, %v764_v30  ;;  %v1217_v34 = vpop.f32.mrb[21].mxu1  ;;  %v392_v36 = vpop.f32.mrb[22].mxu0 }
 0x124   : > { %538 = vst.msk [vmem:[%s1456_s29 + $0x24] sm:$0xf] %vm528_vm1, %v1066_v28  ;;  %v430_v37 = vmul.f32 0.2, %v390_v29  ;;  %v393_v38 = vadd.f32 %v1445_v35, %v392_v36  ;;  %v767_v39 = vpop.f32.mrb[22].mxu1  ;;  %v1166_v40 = vpop.f32.mrb[23].mxu0 }
 0x125   : > { %912 = vst.msk [vmem:[%s1456_s29 + $0x6c] sm:$0xf] %vm528_vm1, %v1084_v32  ;;  %v805_v41 = vmul.f32 0.2, %v765_v33  ;;  %v768_v42 = vadd.f32 %v1445_v35, %v767_v39  ;;  %v1218_v43 = vpop.f32.mrb[23].mxu1 }
 0x126   : > { %v448_v44 = vmax.f32 %v390_v29, %v430_v37  ;;  %v431_v45 = vmul.f32 0.2, %v393_v38 }
 0x127   : > { %v823_v46 = vmax.f32 %v765_v33, %v805_v41  ;;  %v806_v47 = vmul.f32 0.2, %v768_v42 }
 0x128   : > { %v1067_v48 = vpack.c.bf16 %v448_v44, %v448_v44  ;;  %v449_v49 = vmax.f32 %v393_v38, %v431_v45 }
 0x129   : > { %v1085_v50 = vpack.c.bf16 %v823_v46, %v823_v46  ;;  %v824_v51 = vmax.f32 %v768_v42, %v806_v47  ;;  %v397_v52 = vpop.f32.mrb[24].mxu0 }
 0x12a   : > { %539 = vst.msk [vmem:[%s1456_s29 + $0x28] sm:$0xf] %vm528_vm1, %v1067_v48  ;;  %v1068_v53 = vpack.c.bf16 %v449_v49, %v449_v49  ;;  %v398_v54 = vadd.f32 %v1445_v35, %v397_v52  ;;  %v772_v55 = vpop.f32.mrb[24].mxu1  ;;  %v1169_v56 = vpop.f32.mrb[25].mxu0 }
 0x12b   : > { %913 = vst.msk [vmem:[%s1456_s29 + $0x70] sm:$0xf] %vm528_vm1, %v1085_v50  ;;  %v1086_v57 = vpack.c.bf16 %v824_v51, %v824_v51  ;;  %v773_v58 = vadd.f32 %v1445_v35, %v772_v55  ;;  %v1221_v59 = vpop.f32.mrb[25].mxu1  ;;  %v400_v60 = vpop.f32.mrb[26].mxu0 }
 0x12c   : > { %540 = vst.msk [vmem:[%s1456_s29 + $0x2c] sm:$0xf] %vm528_vm1, %v1068_v53  ;;  %v432_v61 = vmul.f32 0.2, %v398_v54  ;;  %v401_v62 = vadd.f32 %v1445_v35, %v400_v60  ;;  %v775_v63 = vpop.f32.mrb[26].mxu1  ;;  %v1170_v0 = vpop.f32.mrb[27].mxu0 }
 0x12d   : > { %914 = vst.msk [vmem:[%s1456_s29 + $0x74] sm:$0xf] %vm528_vm1, %v1086_v57  ;;  %v807_v1 = vmul.f32 0.2, %v773_v58  ;;  %v776_v2 = vadd.f32 %v1445_v35, %v775_v63  ;;  %v1222_v3 = vpop.f32.mrb[27].mxu1 }
 0x12e   : > { %v450_v4 = vmax.f32 %v398_v54, %v432_v61  ;;  %v433_v5 = vmul.f32 0.2, %v401_v62 }
 0x12f   : > { %v825_v6 = vmax.f32 %v773_v58, %v807_v1  ;;  %v808_v7 = vmul.f32 0.2, %v776_v2 }
 0x130   : > { %v1069_v8 = vpack.c.bf16 %v450_v4, %v450_v4  ;;  %v451_v9 = vmax.f32 %v401_v62, %v433_v5 }
 0x131   : > { %v1087_v10 = vpack.c.bf16 %v825_v6, %v825_v6  ;;  %v826_v11 = vmax.f32 %v776_v2, %v808_v7  ;;  %v405_v12 = vpop.f32.mrb[28].mxu0 }
 0x132   : > { %541 = vst.msk [vmem:[%s1456_s29 + $0x30] sm:$0xf] %vm528_vm1, %v1069_v8  ;;  %v1070_v13 = vpack.c.bf16 %v451_v9, %v451_v9  ;;  %v406_v14 = vadd.f32 %v1445_v35, %v405_v12  ;;  %v780_v15 = vpop.f32.mrb[28].mxu1  ;;  %v1173_v16 = vpop.f32.mrb[29].mxu0 }
 0x133   : > { %915 = vst.msk [vmem:[%s1456_s29 + $0x78] sm:$0xf] %vm528_vm1, %v1087_v10  ;;  %v1088_v17 = vpack.c.bf16 %v826_v11, %v826_v11  ;;  %v781_v18 = vadd.f32 %v1445_v35, %v780_v15  ;;  %v1225_v19 = vpop.f32.mrb[29].mxu1  ;;  %v408_v20 = vpop.f32.mrb[30].mxu0 }
 0x134   : > { %542 = vst.msk [vmem:[%s1456_s29 + $0x34] sm:$0xf] %vm528_vm1, %v1070_v13  ;;  %v434_v21 = vmul.f32 0.2, %v406_v14  ;;  %v409_v22 = vadd.f32 %v1445_v35, %v408_v20  ;;  %v783_v23 = vpop.f32.mrb[30].mxu1  ;;  %v1174_v24 = vpop.f32.mrb[31].mxu0 }
 0x135   : > { %916 = vst.msk [vmem:[%s1456_s29 + $0x7c] sm:$0xf] %vm528_vm1, %v1088_v17  ;;  %v809_v25 = vmul.f32 0.2, %v781_v18  ;;  %v784_v26 = vadd.f32 %v1445_v35, %v783_v23  ;;  %v1226_v27 = vpop.f32.mrb[31].mxu1 }
 0x136   : > { %v452_v28 = vmax.f32 %v406_v14, %v434_v21  ;;  %v435_v29 = vmul.f32 0.2, %v409_v22 }
 0x137   : > { %v827_v30 = vmax.f32 %v781_v18, %v809_v25  ;;  %v810_v31 = vmul.f32 0.2, %v784_v26 }
 0x138   : > { %v1071_v32 = vpack.c.bf16 %v452_v28, %v452_v28  ;;  %v453_v33 = vmax.f32 %v409_v22, %v435_v29 }
 0x139   : > { %v1089_v34 = vpack.c.bf16 %v827_v30, %v827_v30  ;;  %v828_v36 = vmax.f32 %v784_v26, %v810_v31  ;;  %v413_v37 = vpop.f32.mrb[32].mxu0 }
 0x13a   : > { %543 = vst.msk [vmem:[%s1456_s29 + $0x38] sm:$0xf] %vm528_vm1, %v1071_v32  ;;  %v1072_v38 = vpack.c.bf16 %v453_v33, %v453_v33  ;;  %v414_v39 = vadd.f32 %v1445_v35, %v413_v37  ;;  %v788_v40 = vpop.f32.mrb[32].mxu1  ;;  %v1177_v41 = vpop.f32.mrb[33].mxu0 }
 0x13b   : > { %917 = vst.msk [vmem:[%s1456_s29 + $0x80] sm:$0xf] %vm528_vm1, %v1089_v34  ;;  %v1090_v42 = vpack.c.bf16 %v828_v36, %v828_v36  ;;  %v789_v43 = vadd.f32 %v1445_v35, %v788_v40  ;;  %v1229_v44 = vpop.f32.mrb[33].mxu1  ;;  %v416_v45 = vpop.f32.mrb[34].mxu0 }
 0x13c   : > { %544 = vst.msk [vmem:[%s1456_s29 + $0x3c] sm:$0xf] %vm528_vm1, %v1072_v38  ;;  %v436_v46 = vmul.f32 0.2, %v414_v39  ;;  %v417_v47 = vadd.f32 %v1445_v35, %v416_v45  ;;  %v791_v48 = vpop.f32.mrb[34].mxu1  ;;  %v1178_v49 = vpop.f32.mrb[35].mxu0 }
 0x13d   : > { %918 = vst.msk [vmem:[%s1456_s29 + $0x84] sm:$0xf] %vm528_vm1, %v1090_v42  ;;  %v811_v50 = vmul.f32 0.2, %v789_v43  ;;  %v792_v51 = vadd.f32 %v1445_v35, %v791_v48  ;;  %v1230_v52 = vpop.f32.mrb[35].mxu1 }
 0x13e   : > { %v454_v53 = vmax.f32 %v414_v39, %v436_v46  ;;  %v437_v54 = vmul.f32 0.2, %v417_v47 }
 0x13f   : > { %v829_v55 = vmax.f32 %v789_v43, %v811_v50  ;;  %v812_v56 = vmul.f32 0.2, %v792_v51 }
 0x140   : > { %v1073_v57 = vpack.c.bf16 %v454_v53, %v454_v53  ;;  %v455_v58 = vmax.f32 %v417_v47, %v437_v54 }
 0x141   : > { %v1091_v59 = vpack.c.bf16 %v829_v55, %v829_v55  ;;  %v830_v60 = vmax.f32 %v792_v51, %v812_v56 }
 0x142   : > { %545 = vst.msk [vmem:[%s1456_s29 + $0x40] sm:$0xf] %vm528_vm1, %v1073_v57  ;;  %v1074_v61 = vpack.c.bf16 %v455_v58, %v455_v58 }
 0x143   : > { %919 = vst.msk [vmem:[%s1456_s29 + $0x88] sm:$0xf] %vm528_vm1, %v1091_v59  ;;  %v1092_v62 = vpack.c.bf16 %v830_v60, %v830_v60 }
 0x144   : > { %546 = vst.msk [vmem:[%s1456_s29 + $0x44] sm:$0xf] %vm528_vm1, %v1074_v61 }
 0x145   : > { %920 = vst.msk [vmem:[%s1456_s29 + $0x8c] sm:$0xf] %vm528_vm1, %v1092_v62 }
 0x146 PF: > { %s13_s12 = sadd.s32 1, %s1282_s12  }
 0x147   : > { %p10_p4 = scmp.ge.s32.totalorder %s13_s12, 4  }
 0x149   :  { %12 = sbr.rel (!%p10_p4) target bundleno = 1 (0x1), region = 62 }

// kernel: discriminator_forward.7
= control target key start
LH: loop header
LB: loop body
LE: loop exit
PB: predicated region body
PF: predicated region fallthrough
CT: control target
= control target key end

     0   :  { %s753_s12 = smov 0   ;;  %s871_s0 = inlined_call_operand.vmem [shape: bf16[2,80,256], index: 0, kind: input, shape index: {}]   ;;  %s872_s1 = inlined_call_operand.vmem [shape: bf16[1,256,32], index: 1, kind: input, shape index: {}]   ;;  %s873_s2 = inlined_call_operand.vmem [shape: f32[1,32], index: 2, kind: input, shape index: {}]   ;;  %s874_s3 = inlined_call_operand.vmem [shape: bf16[2,80,32], index: 3, kind: output, shape index: {}]  }
   0x1 LB: > { %s566_s13 = sadd.s32 4294967295, %s731_s12   ;;  %p570_p0 = scmp.ge.s32.totalorder %s731_s12, 1  ;;  %s731_s12 = sphi %s753_s12, %s13_s12  }
   0x2   : > { %p137_p1 = scmp.lt.s32.totalorder %s731_s12, 3 }
   0x4   : > { %p138_p2 = pnand %p570_p0, %p137_p1 }
   0x5   : > { %v694_v0 = vld [vmem:[%s872_s1 + $0x40] sm:$0xff] (!%p138_p2)   ;;  %v696_v2 = vld [vmem:[%s872_s1 + $0x48] sm:$0xff] (!%p138_p2)   ;;  %p161_p3 = scmp.lt.s32.totalorder (!%p138_p2), %s566_s13, 1  ;;  %v698_v4 = vld [vmem:[%s872_s1 + $0x50] sm:$0xff] (!%p138_p2)   ;;  %vm500_vm0 = vcmask (!%p138_p2), 257024  }
   0x6   : > { %141 = sbr.rel (%p138_p2) target bundleno = 280 (0x118), region = 32  ;;  %v695_v1 = vld [vmem:[%s872_s1] sm:$0xff] (!%p138_p2)   ;;  %622 = vmatprep.subr.bf16.mxu0 (!%p138_p2), %v694_v0  ;;  %668 = vmatprep.subr.bf16.mxu1 (!%p138_p2), %v694_v0  ;;  %v697_v3 = vld [vmem:[%s872_s1 + $0x8] sm:$0xff] (!%p138_p2)   ;;  %v699_v5 = vld [vmem:[%s872_s1 + $0x10] sm:$0xff] (!%p138_p2)  }
   0x7   : > { %623 = vmatpush3.bf16.msra.mxu0 (!%p138_p2), %v695_v1  ;;  %676 = vmatpush3.bf16.msra.mxu1 (!%p138_p2), %v695_v1  ;;  %v700_v6 = vld [vmem:[%s872_s1 + $0x58] sm:$0xff] (!%p138_p2)   ;;  %v702_v8 = vld [vmem:[%s872_s1 + $0x60] sm:$0xff] (!%p138_p2)   ;;  %v704_v10 = vld [vmem:[%s872_s1 + $0x68] sm:$0xff] (!%p138_p2)  }
   0x8   : > { %624 = vmatprep.subr.bf16.mxu0 (!%p138_p2), %v696_v2  ;;  %669 = vmatprep.subr.bf16.mxu1 (!%p138_p2), %v696_v2  ;;  %v701_v7 = vld [vmem:[%s872_s1 + $0x18] sm:$0xff] (!%p138_p2)   ;;  %v703_v9 = vld [vmem:[%s872_s1 + $0x20] sm:$0xff] (!%p138_p2)   ;;  %v705_v13 = vld [vmem:[%s872_s1 + $0x28] sm:$0xff] (!%p138_p2)  }
   0x9   : > { %v706_v14 = vld [vmem:[%s872_s1 + $0x70] sm:$0xff] (!%p138_p2)   ;;  %v708_v16 = vld [vmem:[%s872_s1 + $0x78] sm:$0xff] (!%p138_p2)   ;;  %v830_v28 = vld [vmem:[%s873_s2] ss:$0 sm:$0xff] (!%p138_p2) }
   0xa   : > { %v707_v15 = vld [vmem:[%s872_s1 + $0x30] sm:$0xff] (!%p138_p2)   ;;  %v709_v17 = vld [vmem:[%s872_s1 + $0x38] sm:$0xff] (!%p138_p2)  }
   0xb   : > { %625 = vmatpush3.bf16.msra.mxu0 (!%p138_p2), %v697_v3  ;;  %677 = vmatpush3.bf16.msra.mxu1 (!%p138_p2), %v697_v3 }
   0xc   : > { %626 = vmatprep.subr.bf16.mxu0 (!%p138_p2), %v698_v4  ;;  %670 = vmatprep.subr.bf16.mxu1 (!%p138_p2), %v698_v4 }
   0xd   : > { %s876_s13 = smov (!%p161_p3, %s566_s13), 1 }
   0xe   : > { %s684_s28 = smul.u32 80, %s876_s13 }
   0xf   : > { %627 = vmatpush3.bf16.msra.mxu0 %v699_v5  ;;  %678 = vmatpush3.bf16.msra.mxu1 %v699_v5  ;;  %s685_s27 = smul.u32 40, %s876_s13 }
  0x10   : > { %628 = vmatprep.subr.bf16.mxu0 %v700_v6  ;;  %671 = vmatprep.subr.bf16.mxu1 %v700_v6  ;;  %s794_s8 = scalar_lea.vmem %s871_s0, %s684_s28 }
  0x11   : > { %v712_v11 = vld [vmem:[%s794_s8 + $0x4] ss:$8 sps:$4 sm:$0xff]   ;;  %v715_v12 = vld [vmem:[%s794_s8 + $0x34] ss:$8 sps:$4 sm:$0xff]   ;;  %v710_v18 = vld [vmem:[%s794_s8] ss:$8 sps:$4 sm:$0xff]   ;;  %s840_s30 = scalar_lea.vmem %s874_s3, %s685_s27 }
  0x12   : > { %399 = vmatprep.mubr.bf16.mxu0 %v712_v11  ;;  %423 = vmatprep.mubr.bf16.mxu1 %v715_v12  ;;  %v713_v19 = vld [vmem:[%s794_s8 + $0x30] ss:$8 sps:$4 sm:$0xff]   ;;  %v716_v20 = vld [vmem:[%s794_s8 + $0x14] ss:$8 sps:$4 sm:$0xff]   ;;  %v719_v21 = vld [vmem:[%s794_s8 + $0x44] ss:$8 sps:$4 sm:$0xff]  }
  0x13   : > { %629 = vmatpush3.bf16.msra.mxu0 %v701_v7  ;;  %679 = vmatpush3.bf16.msra.mxu1 %v701_v7  ;;  %v718_v22 = vld [vmem:[%s794_s8 + $0x10] ss:$8 sps:$4 sm:$0xff]   ;;  %v721_v23 = vld [vmem:[%s794_s8 + $0x40] ss:$8 sps:$4 sm:$0xff]   ;;  %v722_v24 = vld [vmem:[%s794_s8 + $0x24] ss:$8 sps:$4 sm:$0xff]  }
  0x14   : > { %630 = vmatprep.subr.bf16.mxu0 %v702_v8  ;;  %672 = vmatprep.subr.bf16.mxu1 %v702_v8  ;;  %v724_v25 = vld [vmem:[%s794_s8 + $0x20] ss:$8 sps:$4 sm:$0xff]  }
  0x17   : > { %631 = vmatpush3.bf16.msra.mxu0 %v703_v9  ;;  %680 = vmatpush3.bf16.msra.mxu1 %v703_v9 }
  0x18   : > { %632 = vmatprep.subr.bf16.mxu0 %v704_v10  ;;  %673 = vmatprep.subr.bf16.mxu1 %v704_v10 }
  0x1b   : > { %633 = vmatpush3.bf16.msra.mxu0 %v705_v13  ;;  %681 = vmatpush3.bf16.msra.mxu1 %v705_v13 }
  0x1c   : > { %634 = vmatprep.subr.bf16.mxu0 %v706_v14  ;;  %674 = vmatprep.subr.bf16.mxu1 %v706_v14 }
  0x1f   : > { %635 = vmatpush3.bf16.msra.mxu0 %v707_v15  ;;  %682 = vmatpush3.bf16.msra.mxu1 %v707_v15 }
  0x20   : > { %636 = vmatprep.subr.bf16.mxu0 %v708_v16  ;;  %675 = vmatprep.subr.bf16.mxu1 %v708_v16 }
  0x23   : > { %637 = vmatpush3.bf16.msra.mxu0 %v709_v17  ;;  %683 = vmatpush3.bf16.msra.mxu1 %v709_v17 }
  0x26   : > { %400 = vmatmul.mubr.bf16.vlgmr.msra.gmra.mrb[0].mxu0 %v710_v18  ;;  %424 = vmatmul.mubr.bf16.vlgmr.msra.gmra.mrb[0].mxu1 %v713_v19 }
  0x27   : > { %407 = vmatprep.mubr.bf16.mxu0 %v716_v20  ;;  %431 = vmatprep.mubr.bf16.mxu1 %v719_v21 }
  0x2e   : > { %408 = vmatmul.mubr.bf16.gmra.mrb[4].mxu0 %v718_v22  ;;  %432 = vmatmul.mubr.bf16.gmra.mrb[4].mxu1 %v721_v23 }
  0x2f   : > { %415 = vmatprep.mubr.bf16.mxu0 %v722_v24 }
  0x36   : > { %416 = vmatmul.mubr.bf16.gmra.mrb[8].mxu0 %v724_v25 }
  0xf9   : > { %v638_v26 = vpop.f32.mrb[0].mxu0  ;;  %v656_v27 = vpop.f32.mrb[0].mxu1 }
  0xfa   : > { %v639_v29 = vpop.f32.mrb[1].mxu0  ;;  %v657_v30 = vpop.f32.mrb[1].mxu1 }
  0xfb   : > { %v640_v31 = vadd.f32 %v639_v29, %v638_v26  ;;  %v641_v32 = vpop.f32.mrb[2].mxu0  ;;  %v658_v33 = vadd.f32 %v657_v30, %v656_v27  ;;  %v659_v34 = vpop.f32.mrb[2].mxu1 }
  0xfc   : > { %v642_v35 = vpop.f32.mrb[3].mxu0  ;;  %v660_v36 = vpop.f32.mrb[3].mxu1 }
  0xfd   : > { %v402_v37 = vadd.f32 %v640_v31, %v830_v28  ;;  %v643_v38 = vadd.f32 %v642_v35, %v641_v32  ;;  %v426_v39 = vadd.f32 %v658_v33, %v830_v28  ;;  %v661_v40 = vadd.f32 %v660_v36, %v659_v34 }
  0xff   : > { %v440_v41 = vmul.f32 0.2, %v402_v37  ;;  %v405_v42 = vadd.f32 %v643_v38, %v830_v28  ;;  %v446_v43 = vmul.f32 0.2, %v426_v39  ;;  %v429_v44 = vadd.f32 %v661_v40, %v830_v28 }
 0x101   : > { %v450_v45 = vmax.f32 %v402_v37, %v440_v41  ;;  %v441_v46 = vmul.f32 0.2, %v405_v42  ;;  %v456_v47 = vmax.f32 %v426_v39, %v446_v43  ;;  %v447_v48 = vmul.f32 0.2, %v429_v44  ;;  %v644_v49 = vpop.f32.mrb[4].mxu0  ;;  %v662_v50 = vpop.f32.mrb[4].mxu1 }
 0x102   : > { %v645_v51 = vpop.f32.mrb[5].mxu0  ;;  %v663_v52 = vpop.f32.mrb[5].mxu1 }
 0x103   : > { %v612_v53 = vpack.c.bf16 %v450_v45, %v450_v45  ;;  %v451_v54 = vmax.f32 %v405_v42, %v441_v46  ;;  %v618_v55 = vpack.c.bf16 %v456_v47, %v456_v47  ;;  %v457_v56 = vmax.f32 %v429_v44, %v447_v48  ;;  %v647_v57 = vpop.f32.mrb[6].mxu0  ;;  %v665_v58 = vpop.f32.mrb[6].mxu1 }
 0x104   : > { %v646_v59 = vadd.f32 %v645_v51, %v644_v49  ;;  %v648_v60 = vpop.f32.mrb[7].mxu0  ;;  %v664_v61 = vadd.f32 %v663_v52, %v662_v50  ;;  %v666_v62 = vpop.f32.mrb[7].mxu1 }
 0x105   : > { %501 = vst.msk [vmem:[%s840_s30] sm:$0xf] %vm500_vm0, %v612_v53  ;;  %v613_v63 = vpack.c.bf16 %v451_v54, %v451_v54  ;;  %507 = vst.msk [vmem:[%s840_s30 + $0x18] sm:$0xf] %vm500_vm0, %v618_v55  ;;  %v619_v0 = vpack.c.bf16 %v457_v56, %v457_v56  ;;  %v649_v1 = vadd.f32 %v648_v60, %v647_v57 }
 0x106   : > { %v667_v2 = vadd.f32 %v666_v62, %v665_v58  ;;  %v410_v3 = vadd.f32 %v646_v59, %v830_v28  ;;  %v434_v4 = vadd.f32 %v664_v61, %v830_v28 }
 0x107   : > { %502 = vst.msk [vmem:[%s840_s30 + $0x4] sm:$0xf] %vm500_vm0, %v613_v63  ;;  %508 = vst.msk [vmem:[%s840_s30 + $0x1c] sm:$0xf] %vm500_vm0, %v619_v0  ;;  %v413_v5 = vadd.f32 %v649_v1, %v830_v28 }
 0x108   : > { %v437_v6 = vadd.f32 %v667_v2, %v830_v28  ;;  %v442_v7 = vmul.f32 0.2, %v410_v3  ;;  %v448_v8 = vmul.f32 0.2, %v434_v4 }
 0x109   : > { %v443_v9 = vmul.f32 0.2, %v413_v5  ;;  %v650_v11 = vpop.f32.mrb[8].mxu0 }
 0x10a   : > { %v449_v10 = vmul.f32 0.2, %v437_v6  ;;  %v452_v12 = vmax.f32 %v410_v3, %v442_v7  ;;  %v458_v13 = vmax.f32 %v434_v4, %v448_v8  ;;  %v651_v14 = vpop.f32.mrb[9].mxu0 }
 0x10b   : > { %v453_v15 = vmax.f32 %v413_v5, %v443_v9  ;;  %v652_v17 = vadd.f32 %v651_v14, %v650_v11  ;;  %v653_v18 = vpop.f32.mrb[10].mxu0 }
 0x10c   : > { %v459_v16 = vmax.f32 %v437_v6, %v449_v10  ;;  %v614_v19 = vpack.c.bf16 %v452_v12, %v452_v12  ;;  %v620_v20 = vpack.c.bf16 %v458_v13, %v458_v13  ;;  %v654_v21 = vpop.f32.mrb[11].mxu0 }
 0x10d   : > { %v615_v22 = vpack.c.bf16 %v453_v15, %v453_v15  ;;  %v418_v24 = vadd.f32 %v652_v17, %v830_v28  ;;  %v655_v25 = vadd.f32 %v654_v21, %v653_v18 }
 0x10e   : > { %v621_v23 = vpack.c.bf16 %v459_v16, %v459_v16  ;;  %503 = vst.msk [vmem:[%s840_s30 + $0x8] sm:$0xf] %vm500_vm0, %v614_v19  ;;  %509 = vst.msk [vmem:[%s840_s30 + $0x20] sm:$0xf] %vm500_vm0, %v620_v20 }
 0x10f   : > { %504 = vst.msk [vmem:[%s840_s30 + $0xc] sm:$0xf] %vm500_vm0, %v615_v22  ;;  %v444_v26 = vmul.f32 0.2, %v418_v24  ;;  %v421_v27 = vadd.f32 %v655_v25, %v830_v28 }
 0x110   : > { %510 = vst.msk [vmem:[%s840_s30 + $0x24] sm:$0xf] %vm500_vm0, %v621_v23 }
 0x111   : > { %v454_v29 = vmax.f32 %v418_v24, %v444_v26  ;;  %v445_v30 = vmul.f32 0.2, %v421_v27 }
 0x113   : > { %v616_v31 = vpack.c.bf16 %v454_v29, %v454_v29  ;;  %v455_v32 = vmax.f32 %v421_v27, %v445_v30 }
 0x115   : > { %505 = vst.msk [vmem:[%s840_s30 + $0x10] sm:$0xf] %vm500_vm0, %v616_v31  ;;  %v617_v33 = vpack.c.bf16 %v455_v32, %v455_v32 }
 0x117   : > { %506 = vst.msk [vmem:[%s840_s30 + $0x14] sm:$0xf] %vm500_vm0, %v617_v33 }
 0x118 PF: > { %s13_s12 = sadd.s32 1, %s731_s12  }
 0x119   : > { %p10_p4 = scmp.ge.s32.totalorder %s13_s12, 4  }
 0x11b   :  { %12 = sbr.rel (!%p10_p4) target bundleno = 1 (0x1), region = 62 }

// kernel: discriminator_forward.8
= control target key start
LH: loop header
LB: loop body
LE: loop exit
PB: predicated region body
PF: predicated region fallthrough
CT: control target
= control target key end

     0   :  { %s1130_s12 = smov 0   ;;  %s1286_s0 = inlined_call_operand.vmem [shape: bf16[2,48,128], index: 0, kind: input, shape index: {}]   ;;  %s1287_s1 = inlined_call_operand.vmem [shape: bf16[4,128,64], index: 1, kind: input, shape index: {}]   ;;  %s1288_s2 = inlined_call_operand.vmem [shape: f32[1,64], index: 2, kind: input, shape index: {}]   ;;  %s1289_s3 = inlined_call_operand.vmem [shape: bf16[2,32,64], index: 3, kind: output, shape index: {}]  }
   0x1 LB: > { %s817_s13 = sadd.s32 4294967295, %s1108_s12   ;;  %p821_p0 = scmp.ge.s32.totalorder %s1108_s12, 1  ;;  %s1108_s12 = sphi %s1130_s12, %s13_s12  }
   0x2   : > { %p137_p1 = scmp.lt.s32.totalorder %s1108_s12, 3 }
   0x4   : > { %p138_p2 = pnand %p821_p0, %p137_p1 }
   0x5   : > { %v1064_v0 = vld [vmem:[%s1287_s1 + $0x40] sm:$0xff] (!%p138_p2)   ;;  %p161_p3 = scmp.lt.s32.totalorder (!%p138_p2), %s817_s13, 1  ;;  %v1066_v2 = vld [vmem:[%s1287_s1 + $0x48] sm:$0xff] (!%p138_p2)   ;;  %v1068_v4 = vld [vmem:[%s1287_s1 + $0x50] sm:$0xff] (!%p138_p2)   ;;  %vm223_vm0 = vsmask.f32 (!%p138_p2), 7424 }
   0x6   : > { %141 = sbr.rel (%p138_p2) target bundleno = 297 (0x129), region = 32  ;;  %v1065_v1 = vld [vmem:[%s1287_s1 + $0x80] sm:$0xff] (!%p138_p2)   ;;  %963 = vmatprep.subr.bf16.mxu1 (!%p138_p2), %v1064_v0  ;;  %v1067_v3 = vld [vmem:[%s1287_s1 + $0x88] sm:$0xff] (!%p138_p2)   ;;  %v1069_v5 = vld [vmem:[%s1287_s1 + $0x90] sm:$0xff] (!%p138_p2)   ;;  %vm467_vm1 = vsmask.f32 (!%p138_p2), 5376 }
   0x7   : > { %1003 = vmatprep.subr.bf16.mxu0 (!%p138_p2), %v1065_v1  ;;  %964 = vmatpush3.bf16.msra.mxu1 (!%p138_p2), %v1064_v0  ;;  %v1070_v6 = vld [vmem:[%s1287_s1 + $0x58] sm:$0xff] (!%p138_p2)   ;;  %v1072_v8 = vld [vmem:[%s1287_s1 + $0x60] sm:$0xff] (!%p138_p2)   ;;  %v1074_v10 = vld [vmem:[%s1287_s1 + $0x68] sm:$0xff] (!%p138_p2)   ;;  %vm613_vm2 = vcmask (!%p138_p2), 1044480   ;;  %vm757_vm3 = vcmask (!%p138_p2), 519168  }
   0x8   : > { %1004 = vmatpush3.bf16.msra.mxu0 (!%p138_p2), %v1065_v1  ;;  %965 = vmatprep.subr.bf16.mxu1 (!%p138_p2), %v1066_v2  ;;  %v1071_v7 = vld [vmem:[%s1287_s1 + $0x98] sm:$0xff] (!%p138_p2)   ;;  %v1073_v9 = vld [vmem:[%s1287_s1 + $0xa0] sm:$0xff] (!%p138_p2)   ;;  %v1075_v13 = vld [vmem:[%s1287_s1 + $0xa8] sm:$0xff] (!%p138_p2)  }
   0x9   : > { %1005 = vmatprep.subr.bf16.mxu0 (!%p138_p2), %v1067_v3  ;;  %v1076_v16 = vld [vmem:[%s1287_s1 + $0x70] sm:$0xff] (!%p138_p2)   ;;  %v1078_v31 = vld [vmem:[%s1287_s1 + $0x78] sm:$0xff] (!%p138_p2)   ;;  %v1082_v42 = vld [vmem:[%s1287_s1] sm:$0xff] (!%p138_p2)  }
   0xa   : > { %v1077_v18 = vld [vmem:[%s1287_s1 + $0xb0] sm:$0xff] (!%p138_p2)   ;;  %v1079_v34 = vld [vmem:[%s1287_s1 + $0xb8] sm:$0xff] (!%p138_p2)   ;;  %v1084_v49 = vld [vmem:[%s1287_s1 + $0xc0] sm:$0xff] (!%p138_p2)  }
   0xb   : > { %966 = vmatpush3.bf16.msra.mxu1 (!%p138_p2), %v1066_v2  ;;  %v1087_v53 = vld [vmem:[%s1287_s1 + $0x8] sm:$0xff] (!%p138_p2)   ;;  %v1089_v55 = vld [vmem:[%s1287_s1 + $0x10] sm:$0xff] (!%p138_p2)   ;;  %v1091_v60 = vld [vmem:[%s1287_s1 + $0x18] sm:$0xff] (!%p138_p2)  }
   0xc   : > { %1006 = vmatpush3.bf16.msra.mxu0 (!%p138_p2), %v1067_v3  ;;  %967 = vmatprep.subr.bf16.mxu1 (!%p138_p2), %v1068_v4  ;;  %v1088_v54 = vld [vmem:[%s1287_s1 + $0xc8] sm:$0xff] (!%p138_p2)   ;;  %v1090_v56 = vld [vmem:[%s1287_s1 + $0xd0] sm:$0xff] (!%p138_p2)   ;;  %v1092_v61 = vld [vmem:[%s1287_s1 + $0xd8] sm:$0xff] (!%p138_p2)  }
   0xd   : > { %s1291_s13 = smov (!%p161_p3, %s817_s13), 1  ;;  %1007 = vmatprep.subr.bf16.mxu0 %v1069_v5  ;;  %v1093_v0 = vld [vmem:[%s1287_s1 + $0x20] sm:$0xff]   ;;  %v1095_v2 = vld [vmem:[%s1287_s1 + $0x28] sm:$0xff]  }
   0xe   : > { %s1055_s30 = smul.u32 24, %s1291_s13  ;;  %v1094_v1 = vld [vmem:[%s1287_s1 + $0xe0] sm:$0xff]   ;;  %v1096_v3 = vld [vmem:[%s1287_s1 + $0xe8] sm:$0xff]   ;;  %s918_s7 = sshll.u32 %s1291_s13, 4 }
   0xf   : > { %968 = vmatpush3.bf16.msra.mxu1 %v1068_v4  ;;  %v1097_v4 = vld [vmem:[%s1287_s1 + $0x30] sm:$0xff]   ;;  %s170_s11 = scalar_lea.vmem %s1289_s3, %s918_s7 }
  0x10   : > { %1008 = vmatpush3.bf16.msra.mxu0 %v1069_v5  ;;  %969 = vmatprep.subr.bf16.mxu1 %v1070_v6  ;;  %s1174_s10 = scalar_lea.vmem %s1286_s0, %s1055_s30  ;;  %v1098_v5 = vld [vmem:[%s1287_s1 + $0xf0] sm:$0xff]  }
  0x11   : > { %1009 = vmatprep.subr.bf16.mxu0 %v1071_v7  ;;  %v172_v11 = vld [vmem:[%s1174_s10] sm:$0xf]  ;;  %v1181_v12 = vld [vmem:[%s1174_s10 + $0x4] sm:$0xf]  ;;  %v1190_v15 = vld [vmem:[%s1174_s10 + $0x8] sm:$0xff]  }
  0x12   : > { %v1187_v14 = vcombine.low %v172_v11, %v1181_v12  ;;  %v442_v17 = vld [vmem:[%s1174_s10] sm:$0xc]  ;;  %v232_v21 = vshll.u32 %v1190_v15, 16  ;;  %v236_v22 = vshrl.u32 %v1190_v15, 16  ;;  %v615_v59 = vrot.slane %v1190_v15, 3 }
  0x13   : > { %970 = vmatpush3.bf16.msra.mxu1 %v1070_v6  ;;  %v876_v23 = vcombine.low %v442_v17, %v1181_v12  ;;  %v1085_v30 = vld [vmem:[%s1174_s10 + $0x10] ss:$0 sps:$4 sm:$0x11]   ;;  %v592_v57 = vld [vmem:[%s1174_s10] sm:$0x8]  ;;  %v1099_v6 = vld [vmem:[%s1287_s1 + $0x38] sm:$0xff]  }
  0x14   : > { %1010 = vmatpush3.bf16.msra.mxu0 %v1071_v7  ;;  %971 = vmatprep.subr.bf16.mxu1 %v1072_v8  ;;  %v225_v19 = vshrl.u32 %v1187_v14, 16  ;;  %v227_v20 = vshll.u32 %v1187_v14, 16  ;;  %v234_v25 = vrot.slane %v232_v21, 1  ;;  %v476_v26 = vrot.slane %v236_v22, 2  ;;  %v1100_v7 = vld [vmem:[%s1287_s1 + $0xf8] sm:$0xff]  }
  0x15   : > { %1011 = vmatprep.subr.bf16.mxu0 %v1073_v9  ;;  %v477_v27 = vrot.slane %v232_v21, 3  ;;  %v469_v28 = vshrl.u32 %v876_v23, 16  ;;  %v472_v29 = vshll.u32 %v876_v23, 16  ;;  %v1209_v33 = vld [vmem:[%s1174_s10 + $0x10] ss:$0 sps:$4 sm:$0x77]   ;;  %v902_v58 = vcombine.low %v592_v57, %v1181_v12 }
  0x16   : > { %v229_v24 = vrot.slane %v227_v20, 1  ;;  %v240_v38 = vshll.u32 %v1085_v30, 16  ;;  %v481_v40 = vshrl.u32 %v1209_v33, 16  ;;  %v484_v41 = vshll.u32 %v1209_v33, 16  ;;  %v911_v12 = vld [vmem:[%s1288_s2] ss:$0 sm:$0xff] }
  0x17   : > { %972 = vmatpush3.bf16.msra.mxu1 %v1072_v8  ;;  %v471_v35 = vrot.slane %v469_v28, 2  ;;  %v474_v36 = vrot.slane %v472_v29, 3  ;;  %v478_v37 = vor.u32 %v477_v27, %v476_v26  ;;  %v238_v45 = vor.u32 %v236_v22, %v234_v25 }
  0x18   : > { %1012 = vmatpush3.bf16.msra.mxu0 %v1073_v9  ;;  %973 = vmatprep.subr.bf16.mxu1 %v1074_v10  ;;  %v230_v32 = vor.u32 %v229_v24, %v225_v19  ;;  %v242_v44 = vrot.slane %v240_v38, 1  ;;  %v483_v46 = vrot.slane %v481_v40, 2  ;;  %v486_v47 = vrot.slane %v484_v41, 3 }
  0x19   : > { %1013 = vmatprep.subr.bf16.mxu0 %v1075_v13  ;;  %v475_v43 = vor.u32 %v474_v36, %v471_v35  ;;  %v614_v62 = vrot.slane %v902_v58, 3  ;;  %v617_v8 = vrot.slane %v1209_v33, 3 }
  0x1a   : > { %v235_v39 = vsel %vm223_vm0, %v230_v32, %v234_v25  ;;  %v487_v50 = vor.u32 %v486_v47, %v483_v46  ;;  %v243_v51 = vsel %vm223_vm0, %v238_v45, %v242_v44 }
  0x1b   : > { %974 = vmatpush3.bf16.msra.mxu1 %v1074_v10  ;;  %979 = vmatprep.mubr.bf16.mxu1 %v235_v39  ;;  %v479_v48 = vsel %vm467_vm1, %v475_v43, %v478_v37  ;;  %v616_v63 = vsel %vm613_vm2, %v614_v62, %v615_v59  ;;  %v618_v9 = vsel %vm613_vm2, %v615_v59, %v617_v8 }
  0x1c   : > { %1014 = vmatpush3.bf16.msra.mxu0 %v1075_v13  ;;  %975 = vmatprep.subr.bf16.mxu1 %v1076_v16  ;;  %v488_v52 = vsel %vm467_vm1, %v478_v37, %v487_v50 }
  0x1d   : > { %1015 = vmatprep.subr.bf16.mxu0 %v1077_v18  ;;  %1019 = vmatprep.mubr.bf16.mxu0 %v479_v48 }
  0x1f   : > { %976 = vmatpush3.bf16.msra.mxu1 %v1076_v16 }
  0x20   : > { %1016 = vmatpush3.bf16.msra.mxu0 %v1077_v18  ;;  %977 = vmatprep.subr.bf16.mxu1 %v1078_v31 }
  0x21   : > { %1017 = vmatprep.subr.bf16.mxu0 %v1079_v34 }
  0x23   : > { %978 = vmatpush3.bf16.msra.mxu1 %v1078_v31 }
  0x24   : > { %1018 = vmatpush3.bf16.msra.mxu0 %v1079_v34  ;;  %983 = vmatprep.subr.bf16.mxu1 %v1082_v42 }
  0x25   : > { %1023 = vmatprep.subr.bf16.mxu0 %v1084_v49 }
  0x26   : > { %980 = vmatmul.mubr.bf16.vlgmr.msra.gmra.mrb[0].mxu1 %v243_v51 }
  0x27   : > { %984 = vmatpush3.bf16.msra.mxu1 %v1082_v42  ;;  %1020 = vmatmul.mubr.bf16.vlgmr.msra.gmra.mrb[0].mxu0 %v488_v52 }
  0x28   : > { %1024 = vmatpush3.bf16.msra.mxu0 %v1084_v49  ;;  %985 = vmatprep.subr.bf16.mxu1 %v1087_v53 }
  0x29   : > { %1025 = vmatprep.subr.bf16.mxu0 %v1088_v54  ;;  %999 = vmatprep.mubr.bf16.mxu1 %v1187_v14 }
  0x2a   : > { %1039 = vmatprep.mubr.bf16.mxu0 %v616_v63 }
  0x2b   : > { %986 = vmatpush3.bf16.msra.mxu1 %v1087_v53 }
  0x2c   : > { %1026 = vmatpush3.bf16.msra.mxu0 %v1088_v54  ;;  %987 = vmatprep.subr.bf16.mxu1 %v1089_v55 }
  0x2d   : > { %1027 = vmatprep.subr.bf16.mxu0 %v1090_v56 }
  0x2f   : > { %988 = vmatpush3.bf16.msra.mxu1 %v1089_v55 }
  0x30   : > { %1028 = vmatpush3.bf16.msra.mxu0 %v1090_v56  ;;  %989 = vmatprep.subr.bf16.mxu1 %v1091_v60 }
  0x31   : > { %1029 = vmatprep.subr.bf16.mxu0 %v1092_v61 }
  0x33   : > { %990 = vmatpush3.bf16.msra.mxu1 %v1091_v60 }
  0x34   : > { %1030 = vmatpush3.bf16.msra.mxu0 %v1092_v61  ;;  %991 = vmatprep.subr.bf16.mxu1 %v1093_v0 }
  0x35   : > { %1031 = vmatprep.subr.bf16.mxu0 %v1094_v1 }
  0x37   : > { %992 = vmatpush3.bf16.msra.mxu1 %v1093_v0 }
  0x38   : > { %1032 = vmatpush3.bf16.msra.mxu0 %v1094_v1  ;;  %993 = vmatprep.subr.bf16.mxu1 %v1095_v2 }
  0x39   : > { %1033 = vmatprep.subr.bf16.mxu0 %v1096_v3 }
  0x3b   : > { %994 = vmatpush3.bf16.msra.mxu1 %v1095_v2 }
  0x3c   : > { %1034 = vmatpush3.bf16.msra.mxu0 %v1096_v3  ;;  %995 = vmatprep.subr.bf16.mxu1 %v1097_v4 }
  0x3d   : > { %1035 = vmatprep.subr.bf16.mxu0 %v1098_v5 }
  0x3f   : > { %996 = vmatpush3.bf16.msra.mxu1 %v1097_v4 }
  0x40   : > { %1036 = vmatpush3.bf16.msra.mxu0 %v1098_v5  ;;  %997 = vmatprep.subr.bf16.mxu1 %v1099_v6 }
  0x41   : > { %1037 = vmatprep.subr.bf16.mxu0 %v1100_v7 }
  0x43   : > { %998 = vmatpush3.bf16.msra.mxu1 %v1099_v6 }
  0x44   : > { %1038 = vmatpush3.bf16.msra.mxu0 %v1100_v7 }
  0x46   : > { %1000 = vmatmul.mubr.bf16.vlgmr.msra.gmra.mrb[0].mxu1 %v1190_v15 }
  0x47   : > { %1040 = vmatmul.mubr.bf16.vlgmr.msra.gmra.mrb[0].mxu0 %v618_v9 }
 0x119   : > { %v1001_v10 = vpop.f32.mrb[0].mxu1 }
 0x11a   : > { %v1041_v11 = vpop.f32.mrb[0].mxu0  ;;  %v427_v13 = vpop.f32.mrb[1].mxu1 }
 0x11b   : > { %v1043_v14 = vadd.f32 %v1041_v11, %v1001_v10  ;;  %v703_v16 = vpop.f32.mrb[1].mxu0  ;;  %v1002_v17 = vpop.f32.mrb[2].mxu1 }
 0x11c   : > { %v1044_v18 = vadd.f32 %v703_v16, %v427_v13  ;;  %v1042_v19 = vpop.f32.mrb[2].mxu0  ;;  %v430_v20 = vpop.f32.mrb[3].mxu1 }
 0x11d   : > { %v731_v21 = vadd.f32 %v1043_v14, %v911_v12  ;;  %v1045_v22 = vadd.f32 %v1042_v19, %v1002_v17  ;;  %v706_v23 = vpop.f32.mrb[3].mxu0 }
 0x11e   : > { %v729_v24 = vadd.f32 %v1044_v18, %v911_v12  ;;  %v1046_v15 = vadd.f32 %v706_v23, %v430_v20 }
 0x11f   : > { %v735_v25 = vmul.f32 0.2, %v731_v21  ;;  %v732_v26 = vadd.f32 %v1045_v22, %v911_v12 }
 0x120   : > { %v733_v27 = vmul.f32 0.2, %v729_v24  ;;  %v730_v28 = vadd.f32 %v1046_v15, %v911_v12 }
 0x121   : > { %v739_v29 = vmax.f32 %v731_v21, %v735_v25  ;;  %v736_v30 = vmul.f32 0.2, %v732_v26 }
 0x122   : > { %v737_v31 = vmax.f32 %v729_v24, %v733_v27  ;;  %v734_v32 = vmul.f32 0.2, %v730_v28 }
 0x123   : > { %v921_v33 = vpack.c.bf16 %v739_v29, %v739_v29  ;;  %v740_v34 = vmax.f32 %v732_v26, %v736_v30 }
 0x124   : > { %v919_v35 = vpack.c.bf16 %v737_v31, %v737_v31  ;;  %v738_v36 = vmax.f32 %v730_v28, %v734_v32 }
 0x125   : > { %760 = vst.msk [vmem:[%s170_s11 + $0x8] sm:$0xf] %vm757_vm3, %v921_v33  ;;  %v922_v37 = vpack.c.bf16 %v740_v34, %v740_v34 }
 0x126   : > { %758 = vst.msk [vmem:[%s170_s11] sm:$0xf] %vm757_vm3, %v919_v35  ;;  %v920_v38 = vpack.c.bf16 %v738_v36, %v738_v36 }
 0x127   : > { %761 = vst.msk [vmem:[%s170_s11 + $0xc] sm:$0xf] %vm757_vm3, %v922_v37 }
 0x128   : > { %759 = vst.msk [vmem:[%s170_s11 + $0x4] sm:$0xf] %vm757_vm3, %v920_v38 }
 0x129 PF: > { %s13_s12 = sadd.s32 1, %s1108_s12  }
 0x12a   : > { %p10_p4 = scmp.ge.s32.totalorder %s13_s12, 4  }
 0x12c   :  { %12 = sbr.rel (!%p10_p4) target bundleno = 1 (0x1), region = 65 }

// kernel: discriminator_forward.9
= control target key start
LH: loop header
LB: loop body
LE: loop exit
PB: predicated region body
PF: predicated region fallthrough
CT: control target
= control target key end

     0   :  { %s920_s14 = smov 0   ;;  %s1570_s0 = inlined_call_operand.vmem [shape: bf16[2,64,64], index: 0, kind: input, shape index: {}]   ;;  %s1571_s1 = inlined_call_operand.vmem [shape: bf16[16,1,64], index: 1, kind: input, shape index: {}]   ;;  %s1572_s2 = inlined_call_operand.<no memory space> [shape: f32[1,1], index: 2, kind: input, shape index: {}]   ;;  %s1573_s3 = inlined_call_operand.vmem [shape: f32[2,32,1], index: 3, kind: output, shape index: {}]  }
   0x1   :  { %v8_v0 = vstv %s1572_s2 }
   0x2   :  { %9 = vst [vmem:[#allocation2] sm:$0x1] %v8_v0 }
   0x3 LB: > { %s827_s15 = sadd.s32 4294967295, %s895_s14   ;;  %p831_p0 = scmp.ge.s32.totalorder %s895_s14, 1  ;;  %s895_s14 = sphi %s920_s14, %s15_s14  }
   0x4   : > { %p139_p1 = scmp.lt.s32.totalorder %s895_s14, 3 }
   0x6   : > { %p140_p2 = pnand %p831_p0, %p139_p1 }
   0x8   : > { %143 = sbr.rel (%p140_p2) target bundleno = 294 (0x126), region = 32 }
   0xf   : > { %p163_p3 = scmp.lt.s32.totalorder %s827_s15, 1  ;;  %v181_v1 = vld [vmem:[%s1571_s1] sm:$0x1]  ;;  %v183_v2 = vlaneseq  ;;  %v836_v3 = vld [vmem:[%s1571_s1 + $0x1] sm:$0x1]  ;;  %vm210_vm0 = vcmask 1046528  }
  0x10   : > { %v182_v4 = vunpack.c.l.bf16 %v181_v1  ;;  %v837_v5 = vld [vmem:[%s1571_s1 + $0x2] sm:$0x1]  ;;  %v838_v6 = vld [vmem:[%s1571_s1 + $0x3] sm:$0x1]  ;;  %v195_v8 = vunpack.c.l.bf16 %v836_v3  ;;  %v839_v11 = vld [vmem:[%s1571_s1 + $0x4] sm:$0x1] }
  0x11   : > { %s1724_s15 = smov (!%p163_p3, %s827_s15), 1  ;;  %v184_v7 = vshrl.u32 %v183_v2, 7  ;;  %v232_v9 = vunpack.c.l.bf16 %v837_v5  ;;  %v269_v10 = vunpack.c.l.bf16 %v838_v6  ;;  %v308_v12 = vunpack.c.l.bf16 %v839_v11  ;;  %v840_v13 = vld [vmem:[%s1571_s1 + $0x5] sm:$0x1]  ;;  %v841_v14 = vld [vmem:[%s1571_s1 + $0x6] sm:$0x1] }
  0x12   : > { %s854_s29 = sshll.u32 %s1724_s15, 5  ;;  %v345_v16 = vunpack.c.l.bf16 %v840_v13  ;;  %v380_v17 = vunpack.c.l.bf16 %v841_v14  ;;  %v842_v18 = vld [vmem:[%s1571_s1 + $0x7] sm:$0x1]  ;;  %v843_v19 = vld [vmem:[%s1571_s1 + $0x8] sm:$0x1]  ;;  %vm247_vm1 = vcmask 1045504  }
  0x13   : > { %v952_v15 = vsub.s32 0, %v184_v7  ;;  %s965_s9 = scalar_lea.vmem %s1570_s0, %s854_s29  ;;  %vm284_vm2 = vcmask 1044480   ;;  %v397_v20 = vunpack.c.l.bf16 %v842_v18  ;;  %v435_v21 = vunpack.c.l.bf16 %v843_v19  ;;  %v844_v59 = vld [vmem:[%s1571_s1 + $0x9] sm:$0x1]  ;;  %v845_v60 = vld [vmem:[%s1571_s1 + $0xa] sm:$0x1]  ;;  %s1557_s27 = scalar_lea.vmem %s1573_s3, %s854_s29 }
  0x14   : > { %v864_v22 = vld [vmem:[%s965_s9 + $0x8] sm:$0xff]   ;;  %vm323_vm3 = vcmask 1041408   ;;  %v981_v27 = vld [vmem:[%s965_s9 + $0x10] sm:$0xff]   ;;  %vm360_vm4 = vcmask 1040384   ;;  %vm450_vm5 = vcmask 1043456   ;;  %vm487_vm6 = vcmask 1042432  }
  0x15   : > { %v969_v23 = vrot.slane %v182_v4, %v952_v15  ;;  %v972_v24 = vrot.slane %v195_v8, %v952_v15  ;;  %v975_v25 = vrot.slane %v232_v9, %v952_v15  ;;  %v978_v26 = vrot.slane %v269_v10, %v952_v15  ;;  %v846_v5 = vld [vmem:[%s1571_s1 + $0xb] sm:$0x1]  ;;  %v847_v10 = vld [vmem:[%s1571_s1 + $0xc] sm:$0x1] }
  0x16   : > { %v983_v28 = vunpack.c.l.bf16 %v864_v22  ;;  %v985_v29 = vunpack.c.h.bf16 %v864_v22  ;;  %v988_v30 = vrot.slane %v308_v12, %v952_v15  ;;  %v991_v31 = vunpack.c.l.bf16 %v981_v27 }
  0x17   : > { %v994_v32 = vrot.slane %v345_v16, %v952_v15  ;;  %v997_v33 = vrot.slane %v380_v17, %v952_v15  ;;  %v1000_v34 = vrot.slane %v397_v20, %v952_v15  ;;  %v1003_v35 = vrot.slane %v435_v21, %v952_v15  ;;  %v848_v20 = vld [vmem:[%s1571_s1 + $0xd] sm:$0x1] }
  0x18   : > { %1626 = vst [vmem:[#allocation3_spill] sm:$0xff] %v983_v28  ;;  %v189_v36 = vmul.f32 %v983_v28, %v969_v23  ;;  %v1009_v37 = vmul.f32 %v983_v28, %v972_v24  ;;  %v1013_v38 = vmul.f32 %v985_v29, %v972_v24  ;;  %v1017_v39 = vmul.f32 %v983_v28, %v975_v25 }
  0x19   : > { %v1021_v40 = vmul.f32 %v985_v29, %v975_v25  ;;  %v1025_v41 = vmul.f32 %v983_v28, %v978_v26  ;;  %v1029_v42 = vmul.f32 %v985_v29, %v978_v26  ;;  %v1033_v43 = vmul.f32 %v983_v28, %v988_v30 }
  0x1a   : > { %v1583_v44 = vrot.slane %v1009_v37, 1  ;;  %v1595_v45 = vrot.slane %v1013_v38, 1  ;;  %v1580_v46 = vrot.slane %v1017_v39, 2  ;;  %v1040_v47 = vmul.f32 %v985_v29, %v988_v30 }
  0x1b   : > { %v1594_v48 = vrot.slane %v1021_v40, 2  ;;  %v1577_v49 = vrot.slane %v1025_v41, 3  ;;  %v1589_v50 = vrot.slane %v1029_v42, 3  ;;  %v1576_v51 = vrot.slane %v1033_v43, 6 }
  0x1c   : > { %v217_v52 = vsel %vm210_vm0, %v1583_v44, %v1595_v45  ;;  %v1586_v53 = vrot.slane %v1040_v47, 6  ;;  %v1054_v54 = vmul.f32 %v983_v28, %v994_v32  ;;  %v1058_v55 = vmul.f32 %v985_v29, %v994_v32 }
  0x1d   : > { %v226_v56 = vadd.f32 %v217_v52, %v189_v36  ;;  %v254_v57 = vsel %vm247_vm1, %v1580_v46, %v1594_v48  ;;  %v291_v58 = vsel %vm284_vm2, %v1577_v49, %v1589_v50  ;;  %v387_v63 = vmul.f32 %v985_v29, %v997_v33 }
  0x1e   : > { %1627 = vst [vmem:[#allocation4_spill] sm:$0xff] %v1054_v54  ;;  %v1575_v61 = vrot.slane %v1054_v54, 7  ;;  %v1585_v62 = vrot.slane %v1058_v55, 7  ;;  %v1082_v0 = vmul.f32 %v985_v29, %v1000_v34  ;;  %v1086_v2 = vmul.f32 %v1000_v34, %v991_v31 }
  0x1f   : > { %v263_v1 = vadd.f32 %v254_v57, %v226_v56  ;;  %v1090_v3 = vmul.f32 %v985_v29, %v1003_v35  ;;  %v1094_v4 = vmul.f32 %v1003_v35, %v991_v31  ;;  %v330_v6 = vsel %vm323_vm3, %v1576_v51, %v1586_v53  ;;  %v857_v51 = vld [vmem:[%s965_s9] sm:$0xff]  }
  0x20   : > { %1628 = vst [vmem:[#allocation5_spill] sm:$0xff] %v1082_v0  ;;  %v1574_v7 = vrot.slane %v1082_v0, 1  ;;  %v472_v8 = vunpack.c.l.bf16 %v844_v59  ;;  %v509_v9 = vunpack.c.l.bf16 %v845_v60  ;;  %v367_v12 = vsel %vm360_vm4, %v1575_v61, %v1585_v62  ;;  %v850_v61 = vld [vmem:[%s1571_s1 + $0xf] sm:$0x1] }
  0x21   : > { %1629 = vst [vmem:[#allocation6_spill] sm:$0xff] %v1090_v3  ;;  %v300_v11 = vadd.f32 %v291_v58, %v263_v1  ;;  %v1584_v13 = vrot.slane %v1086_v2, 1  ;;  %v1578_v14 = vrot.slane %v1090_v3, 4  ;;  %v1579_v16 = vrot.slane %v1094_v4, 4 }
  0x22   : > { %v1117_v17 = vrot.slane %v472_v8, %v952_v15  ;;  %v1120_v18 = vrot.slane %v509_v9, %v952_v15  ;;  %v545_v19 = vunpack.c.l.bf16 %v846_v5  ;;  %v1131_v36 = vunpack.c.h.bf16 %v981_v27 }
  0x23   : > { %v339_v21 = vadd.f32 %v330_v6, %v300_v11  ;;  %v418_v22 = vsel %vm210_vm0, %v1574_v7, %v1584_v13  ;;  %v583_v52 = vunpack.c.l.bf16 %v847_v10  ;;  %v619_v5 = vunpack.c.l.bf16 %v848_v20 }
  0x24   : > { %v1135_v56 = vmul.f32 %v985_v29, %v1117_v17  ;;  %v1139_v57 = vmul.f32 %v1117_v17, %v991_v31  ;;  %v1143_v58 = vmul.f32 %v985_v29, %v1120_v18  ;;  %v1147_v59 = vmul.f32 %v1120_v18, %v991_v31 }
  0x25   : > { %v376_v60 = vadd.f32 %v367_v12, %v339_v21  ;;  %v1150_v27 = vrot.slane %v545_v19, %v952_v15  ;;  %v1153_v1 = vrot.slane %v583_v52, %v952_v15  ;;  %v849_v21 = vld [vmem:[%s1571_s1 + $0xe] sm:$0x1]  ;;  %v1189_v7 = vrot.slane %v619_v5, %v952_v15 }
  0x26   : > { %1630 = vst [vmem:[#allocation7_spill] sm:$0xff] %v1135_v56  ;;  %1631 = vst [vmem:[#allocation8_spill] sm:$0xff] %v1143_v58  ;;  %v1581_v6 = vrot.slane %v1135_v56, 5  ;;  %v1582_v8 = vrot.slane %v1139_v57, 5  ;;  %v1587_v9 = vrot.slane %v1143_v58, 6  ;;  %v1588_v10 = vrot.slane %v1147_v59, 6 }
  0x27   : > { %v391_v11 = vadd.f32 %v387_v63, %v376_v60  ;;  %v1161_v12 = vmul.f32 %v985_v29, %v1150_v27  ;;  %v1165_v19 = vmul.f32 %v1150_v27, %v991_v31  ;;  %v1169_v20 = vmul.f32 %v1153_v1, %v991_v31 }
  0x28   : > { %v457_v63 = vsel %vm450_vm5, %v1578_v14, %v1579_v16  ;;  %v494_v52 = vsel %vm487_vm6, %v1581_v6, %v1582_v8  ;;  %v1186_v60 = vmul.f32 %v1153_v1, %v1131_v36  ;;  %v1201_v8 = vmul.f32 %v1189_v7, %v991_v31 }
  0x29   : > { %1632 = vst [vmem:[#allocation9_spill] sm:$0xff] %v1161_v12  ;;  %1633 = vst [vmem:[#allocation10_spill] sm:$0xff] %v1165_v19  ;;  %v427_v49 = vadd.f32 %v418_v22, %v391_v11  ;;  %v1590_v14 = vrot.slane %v1161_v12, 7  ;;  %v1591_v16 = vrot.slane %v1165_v19, 7  ;;  %v1592_v46 = vrot.slane %v1169_v20, 2 }
  0x2a   : > { %1634 = vst [vmem:[#allocation11_spill] sm:$0xff] %v1169_v20  ;;  %v1593_v6 = vrot.slane %v1186_v60, 2  ;;  %1635 = vst [vmem:[#allocation12_spill] sm:$0xff] %v1201_v8  ;;  %v1205_v5 = vmul.f32 %v1189_v7, %v1131_v36  ;;  %v655_v44 = vunpack.c.l.bf16 %v849_v21  ;;  %v530_v22 = vsel %vm323_vm3, %v1587_v9, %v1588_v10 }
  0x2b   : > { %v466_v13 = vadd.f32 %v457_v63, %v427_v49  ;;  %v691_v11 = vunpack.c.l.bf16 %v850_v61  ;;  %v858_v62 = vunpack.c.l.bf16 %v857_v51  ;;  %v566_v53 = vsel %vm360_vm4, %v1590_v14, %v1591_v16  ;;  %v228_v14 = vld [vmem:[%s965_s9] sm:$0xe] }
  0x2c   : > { %v604_v49 = vsel %vm247_vm1, %v1592_v46, %v1593_v6  ;;  %v1599_v21 = vrot.slane %v1201_v8, 3  ;;  %v1224_v63 = vrot.slane %v655_v44, %v952_v15  ;;  %v1600_v61 = vrot.slane %v1205_v5, 3 }
  0x2d   : > { %v503_v9 = vadd.f32 %v494_v52, %v466_v13  ;;  %v1228_v10 = vrot.slane %v691_v11, %v952_v15  ;;  %v1230_v50 = vunpack.c.h.bf16 %v857_v51  ;;  %v187_v44 = vmul.f32 %v858_v62, %v969_v23 }
  0x2e   : > { %1636 = vst [vmem:[#allocation13_spill] sm:$0xff] %v1224_v63  ;;  %v1235_v16 = vmul.f32 %v1224_v63, %v991_v31  ;;  %v1239_v46 = vmul.f32 %v1224_v63, %v1131_v36  ;;  %v200_v13 = vmul.f32 %v858_v62, %v972_v24  ;;  %vm723_vm7 = vcmask 523264  }
  0x2f   : > { %v539_v52 = vadd.f32 %v530_v22, %v503_v9  ;;  %v1245_v15 = vmul.f32 %v1228_v10, %v991_v31  ;;  %v1249_v51 = vmul.f32 %v1228_v10, %v1131_v36  ;;  %v1253_v11 = vmul.f32 %v1230_v50, %v972_v24 }
  0x30   : > { %1637 = vst [vmem:[#allocation14_spill] sm:$0xff] %v1235_v16  ;;  %1638 = vst [vmem:[#allocation15_spill] sm:$0xff] %v1239_v46  ;;  %v211_v62 = vrot.slane %v200_v13, 1  ;;  %v229_v9 = vunpack.c.l.bf16 %v228_v14  ;;  %v640_v45 = vsel %vm284_vm2, %v1599_v21, %v1600_v61  ;;  %v1268_v48 = vmul.f32 %v1230_v50, %v975_v25  ;;  %v302_v14 = vld [vmem:[%s965_s9] sm:$0x8] }
  0x31   : > { %1639 = vst [vmem:[#allocation16_spill] sm:$0xff] %v1245_v15  ;;  %1640 = vst [vmem:[#allocation17_spill] sm:$0xff] %v1249_v51  ;;  %v575_v22 = vadd.f32 %v566_v53, %v539_v52  ;;  %v1605_v12 = vrot.slane %v1253_v11, 1  ;;  %v1641_v52 = vrot.slane %v1239_v46, 4  ;;  %v1642_v21 = vrot.slane %v1235_v16, 4 }
  0x32   : > { %v237_v6 = vmul.f32 %v975_v25, %v229_v9  ;;  %v274_v53 = vmul.f32 %v978_v26, %v229_v9  ;;  %v1282_v58 = vmul.f32 %v1230_v50, %v978_v26  ;;  %v1606_v9 = vrot.slane %v1268_v48, 2 }
  0x33   : > { %v613_v13 = vadd.f32 %v604_v49, %v575_v22  ;;  %v676_v61 = vsel %vm450_vm5, %v1642_v21, %v1641_v52  ;;  %v213_v20 = vsel %vm210_vm0, %v211_v62, %v1605_v12  ;;  %v304_v16 = vunpack.c.l.bf16 %v302_v14 }
  0x34   : > { %v224_v8 = vadd.f32 %v213_v20, %v187_v44  ;;  %v248_v56 = vrot.slane %v237_v6, 2  ;;  %v285_v49 = vrot.slane %v274_v53, 3  ;;  %v1609_v46 = vrot.slane %v1282_v58, 3 }
  0x35   : > { %v649_v22 = vadd.f32 %v640_v45, %v613_v13  ;;  %v1288_v21 = vmul.f32 %v1230_v50, %v988_v30  ;;  %v1643_v62 = vrot.slane %v1249_v51, 5  ;;  %v1644_v52 = vrot.slane %v1245_v15, 5  ;;  %v505_v51 = vld [vmem:[%s965_s9 + $0x4] sm:$0x8] }
  0x36   : > { %v250_v6 = vsel %vm247_vm1, %v248_v56, %v1606_v9  ;;  %v1300_v45 = vmul.f32 %v1230_v50, %v994_v32  ;;  %v402_v44 = vmul.f32 %v1230_v50, %v1000_v34  ;;  %v287_v13 = vsel %vm284_vm2, %v285_v49, %v1609_v46 }
  0x37   : > { %v712_v20 = vsel %vm487_vm6, %v1644_v52, %v1643_v62  ;;  %v685_v53 = vadd.f32 %v676_v61, %v649_v22  ;;  %v261_v14 = vadd.f32 %v250_v6, %v224_v8  ;;  %v313_v12 = vmul.f32 %v988_v30, %v304_v16  ;;  %v429_v62 = vld [vmem:[%s965_s9 + $0x4] sm:$0xc] }
  0x38   : > { %1645 = vst [vmem:[#allocation18_spill] sm:$0xff] %v1300_v45  ;;  %v350_v56 = vmul.f32 %v994_v32, %v304_v16  ;;  %v1314_v15 = vmul.f32 %v983_v28, %v1000_v34  ;;  %v412_v6 = vrot.slane %v402_v44, 1  ;;  %v431_v3 = vunpack.c.l.bf16 %v429_v62 }
  0x39   : > { %v721_v61 = vadd.f32 %v712_v20, %v685_v53  ;;  %v298_v8 = vadd.f32 %v287_v13, %v261_v14  ;;  %v324_v22 = vrot.slane %v313_v12, 6  ;;  %v1320_v52 = vmul.f32 %v983_v28, %v1003_v35 }
  0x3a   : > { %1646 = vst [vmem:[#allocation19_spill] sm:$0xff] %v1314_v15  ;;  %v361_v49 = vrot.slane %v350_v56, 7  ;;  %v1613_v46 = vrot.slane %v1314_v15, 1  ;;  %v1648_v9 = vrot.slane %v1288_v21, 6  ;;  %v1328_v20 = vmul.f32 %v983_v28, %v1117_v17  ;;  %v577_v56 = vld [vmem:[%s965_s9 + $0x8] sm:$0xe] }
  0x3b   : > { %1647 = vst [vmem:[#allocation20_spill] sm:$0xff] %v1320_v52  ;;  %v730_v16 = vsel %vm723_vm7, %v721_v61, 0.0  ;;  %v506_v12 = vunpack.c.l.bf16 %v505_v51  ;;  %v1650_v53 = vrot.slane %v1300_v45, 7  ;;  %v385_v13 = vmul.f32 %v1230_v50, %v997_v33 }
  0x3c   : > { %v326_v0 = vsel %vm323_vm3, %v324_v22, %v1648_v9  ;;  %1649 = vst [vmem:[#allocation21_spill] sm:$0xff] %v1328_v20  ;;  %731 = vadd.xlane.f32.xlu1 %v730_v16  ;;  %v440_v62 = vmul.f32 %v1003_v35, %v431_v3  ;;  %v414_v9 = vsel %vm210_vm0, %v412_v6, %v1613_v46  ;;  %v579_v46 = vunpack.c.l.bf16 %v577_v56 }
  0x3d   : > { %v337_v44 = vadd.f32 %v326_v0, %v298_v8  ;;  %v363_v14 = vsel %vm360_vm4, %v361_v49, %v1650_v53  ;;  %v477_v51 = vmul.f32 %v1117_v17, %v431_v3  ;;  %v514_v0 = vmul.f32 %v1120_v18, %v506_v12 }
  0x3e   : > { %v451_v22 = vrot.slane %v440_v62, 4  ;;  %v1345_v49 = vmul.f32 %v983_v28, %v1120_v18  ;;  %v550_v16 = vmul.f32 %v1150_v27, %v506_v12  ;;  %v1351_v6 = vmul.f32 %v983_v28, %v1150_v27  ;;  %v651_v62 = vld [vmem:[%s965_s9 + $0x8] sm:$0xc] }
  0x3f   : > { %v374_v8 = vadd.f32 %v363_v14, %v337_v44  ;;  %v488_v53 = vrot.slane %v477_v51, 5  ;;  %v1653_v3 = vrot.slane %v1320_v52, 4  ;;  %v524_v14 = vrot.slane %v514_v0, 6 }
  0x40   : > { %1651 = vst [vmem:[#allocation22_spill] sm:$0xff] %v1345_v49  ;;  %1652 = vst [vmem:[#allocation23_spill] sm:$0xff] %v1351_v6  ;;  %v560_v45 = vrot.slane %v550_v16, 7  ;;  %v588_v12 = vmul.f32 %v1153_v1, %v579_v46  ;;  %v1361_v51 = vmul.f32 %v985_v29, %v1153_v1  ;;  %v624_v56 = vmul.f32 %v1189_v7, %v579_v46  ;;  %v191_v46 = vld [vmem:[%s965_s9 + $0x10] sm:$0x1] }
  0x41   : > { %v389_v61 = vadd.f32 %v385_v13, %v374_v8  ;;  %v453_v44 = vsel %vm450_vm5, %v451_v22, %v1653_v3  ;;  %v1367_v0 = vmul.f32 %v985_v29, %v1189_v7  ;;  %v1656_v8 = vrot.slane %v1328_v20, 5 }
  0x42   : > { %1654 = vst [vmem:[#allocation24_spill] sm:$0xff] %v1361_v51  ;;  %v598_v16 = vrot.slane %v588_v12, 2  ;;  %v1624_v3 = vrot.slane %v1361_v51, 2  ;;  %v652_v19 = vunpack.c.l.bf16 %v651_v62  ;;  %v1376_v13 = vmul.f32 %v985_v29, %v1224_v63  ;;  %v303_v62 = vld [vmem:[%s965_s9 + $0x10] sm:$0x7] }
  0x43   : > { %v425_v15 = vadd.f32 %v414_v9, %v389_v61  ;;  %1655 = vst [vmem:[#allocation25_spill] sm:$0xff] %v1367_v0  ;;  %v490_v22 = vsel %vm487_vm6, %v488_v53, %v1656_v8  ;;  %v634_v9 = vrot.slane %v624_v56, 3  ;;  %v1657_v28 = vrot.slane %v1345_v49, 6  ;;  %v265_v8 = vld [vmem:[%s965_s9 + $0x10] sm:$0x3] }
  0x44   : > { %v660_v53 = vmul.f32 %v1224_v63, %v652_v19  ;;  %v696_v12 = vmul.f32 %v1228_v10, %v652_v19  ;;  %v1391_v61 = vmul.f32 %v985_v29, %v1228_v10  ;;  %v671_v19 = vrot.slane %v1376_v13, 4 }
  0x45   : > { %v464_v52 = vadd.f32 %v453_v44, %v425_v15  ;;  %v526_v54 = vsel %vm323_vm3, %v524_v14, %v1657_v28  ;;  %v1658_v44 = vrot.slane %v1351_v6, 7  ;;  %v600_v28 = vsel %vm247_vm1, %v598_v16, %v1624_v3 }
  0x46   : > { %v1659_v14 = vrot.slane %v1367_v0, 3  ;;  %v670_v6 = vrot.slane %v660_v53, 4  ;;  %v266_v20 = vunpack.c.l.bf16 %v265_v8  ;;  %v706_v63 = vrot.slane %v696_v12, 5  ;;  %v430_v53 = vld [vmem:[%s965_s9 + $0x14] sm:$0x3] }
  0x47   : > { %v501_v15 = vadd.f32 %v490_v22, %v464_v52  ;;  %v562_v56 = vsel %vm360_vm4, %v560_v45, %v1658_v44  ;;  %v192_v52 = vunpack.c.l.bf16 %v191_v46  ;;  %v305_v45 = vunpack.c.l.bf16 %v303_v62  ;;  %v393_v44 = vld [vmem:[%s965_s9 + $0x14] sm:$0x1] }
  0x48   : > { %v636_v49 = vsel %vm284_vm2, %v634_v9, %v1659_v14  ;;  %v190_v51 = vmul.f32 %v985_v29, %v969_v23  ;;  %v707_v9 = vrot.slane %v1391_v61, 5  ;;  %v278_v46 = vmul.f32 %v978_v26, %v266_v20 }
  0x49   : > { %v537_v22 = vadd.f32 %v526_v54, %v501_v15  ;;  %v204_v16 = vmul.f32 %v972_v24, %v192_v52  ;;  %v241_v3 = vmul.f32 %v975_v25, %v192_v52  ;;  %v317_v54 = vmul.f32 %v988_v30, %v305_v45 }
  0x4a   : > { %v354_v62 = vmul.f32 %v994_v32, %v991_v31  ;;  %v394_v29 = vunpack.c.l.bf16 %v393_v44  ;;  %v672_v24 = vsel %vm450_vm5, %v670_v6, %v671_v19  ;;  %v292_v25 = vrot.slane %v278_v46, 3  ;;  %v615_v32 = vld [vmem:[%s965_s9 + $0x18] sm:$0x3] }
  0x4b   : > { %v573_v0 = vadd.f32 %v562_v56, %v537_v22  ;;  %v218_v8 = vrot.slane %v204_v16, 1  ;;  %v255_v12 = vrot.slane %v241_v3, 2  ;;  %v468_v56 = vld [vmem:[%s965_s9 + $0x14] sm:$0x7]  ;;  %v1660_v14 = vrot.slane %v1013_v38, 1 }
  0x4c   : > { %v1661_v30 = vrot.slane %v1021_v40, 2  ;;  %v331_v3 = vrot.slane %v317_v54, 6  ;;  %v432_v52 = vunpack.c.l.bf16 %v430_v53  ;;  %v578_v22 = vld [vmem:[%s965_s9 + $0x18] sm:$0x1]  ;;  %v708_v6 = vsel %vm487_vm6, %v706_v63, %v707_v9 }
  0x4d   : > { %v611_v15 = vadd.f32 %v600_v28, %v573_v0  ;;  %v219_v26 = vsel %vm210_vm0, %v1660_v14, %v218_v8  ;;  %v406_v28 = vmul.f32 %v1000_v34, %v394_v29  ;;  %v1662_v38 = vrot.slane %v1029_v42, 3 }
  0x4e   : > { %v256_v20 = vsel %vm247_vm1, %v1661_v30, %v255_v12  ;;  %v227_v0 = vadd.f32 %v219_v26, %v190_v51  ;;  %v368_v16 = vrot.slane %v354_v62, 7  ;;  %v469_v40 = vunpack.c.l.bf16 %v468_v56 }
  0x4f   : > { %v647_v45 = vadd.f32 %v636_v49, %v611_v15  ;;  %v293_v44 = vsel %vm284_vm2, %v1662_v38, %v292_v25  ;;  %v580_v54 = vunpack.c.l.bf16 %v578_v22  ;;  %v616_v53 = vunpack.c.l.bf16 %v615_v32 }
  0x50   : > { %v264_v8 = vadd.f32 %v256_v20, %v227_v0  ;;  %v1663_v12 = vrot.slane %v1040_v47, 6  ;;  %v444_v34 = vmul.f32 %v1003_v35, %v432_v52  ;;  %v419_v15 = vrot.slane %v406_v28, 1 }
  0x51   : > { %v683_v46 = vadd.f32 %v672_v24, %v647_v45  ;;  %v592_v63 = vmul.f32 %v1153_v1, %v580_v54  ;;  %v1664_v42 = vrot.slane %v1058_v55, 7  ;;  %v481_v24 = vmul.f32 %v1117_v17, %v469_v40 }
  0x52   : > { %v332_v49 = vsel %vm323_vm3, %v1663_v12, %v331_v3  ;;  %v301_v29 = vadd.f32 %v293_v44, %v264_v8  ;;  %v628_v25 = vmul.f32 %v1189_v7, %v616_v53  ;;  %v388_v14 = vmul.f32 %v997_v33, %v991_v31 }
  0x53   : > { %v719_v51 = vadd.f32 %v708_v6, %v683_v46  ;;  %v369_v62 = vsel %vm360_vm4, %v1664_v42, %v368_v16  ;;  %v605_v35 = vrot.slane %v592_v63, 2  ;;  %v458_v26 = vrot.slane %v444_v34, 4  ;;  %v687_v6 = vld [vmem:[%s965_s9 + $0x18] sm:$0x7] }
  0x54   : > { %v340_v47 = vadd.f32 %v332_v49, %v301_v29  ;;  %v518_v1 = vmul.f32 %v1120_v18, %v469_v40  ;;  %v554_v55 = vmul.f32 %v1150_v27, %v1131_v36  ;;  %v641_v30 = vrot.slane %v628_v25, 3  ;;  %v1682_v63 = vld [vmem:[#allocation18_spill] sm:$0xff] }
  0x55   : > { %v724_v56 = vsel %vm723_vm7, %v719_v51, 0.0  ;;  %v1665_v17 = vrot.slane %v1086_v2, 1  ;;  %v1666_v3 = vrot.slane %v1186_v60, 2  ;;  %v188_v31 = vmul.f32 %v1230_v50, %v969_v23  ;;  %v1679_v51 = vld [vmem:[#allocation13_spill] sm:$0xff] }
  0x56   : > { %725 = vadd.xlane.f32.xlu0 %v724_v56  ;;  %v377_v20 = vadd.f32 %v369_v62, %v340_v47  ;;  %v495_v22 = vrot.slane %v481_v24, 5  ;;  %v1667_v32 = vrot.slane %v1205_v5, 3  ;;  %v1668_v36 = vrot.slane %v1009_v37, 1  ;;  %v1685_v56 = vld [vmem:[#allocation10_spill] sm:$0xff] }
  0x57   : > { %v420_v7 = vsel %vm210_vm0, %v1665_v17, %v419_v15  ;;  %v606_v52 = vsel %vm247_vm1, %v1666_v3, %v605_v35  ;;  %v1669_v27 = vrot.slane %v1253_v11, 1  ;;  %v1670_v45 = vrot.slane %v1017_v39, 2  ;;  %v1680_v15 = vld [vmem:[#allocation4_spill] sm:$0xff] }
  0x58   : > { %v642_v18 = vsel %vm284_vm2, %v1667_v32, %v641_v30  ;;  %v1671_v60 = vrot.slane %v1268_v48, 2  ;;  %v392_v28 = vadd.f32 %v388_v14, %v377_v20  ;;  %v1672_v50 = vrot.slane %v1094_v4, 4  ;;  %v1689_v30 = vld [vmem:[#allocation19_spill] sm:$0xff]  ;;  %v1693_v32 = vld [vmem:[#allocation20_spill] sm:$0xff] }
  0x59   : > { %v215_v2 = vsel %vm210_vm0, %v1669_v27, %v1668_v36  ;;  %v531_v38 = vrot.slane %v518_v1, 6  ;;  %v1673_v37 = vrot.slane %v1025_v41, 3  ;;  %v1674_v11 = vrot.slane %v1282_v58, 3  ;;  %v1687_v1 = vld [vmem:[#allocation5_spill] sm:$0xff] }
  0x5a   : > { %v252_v0 = vsel %vm247_vm1, %v1671_v60, %v1670_v45  ;;  %v225_v23 = vadd.f32 %v215_v2, %v188_v31  ;;  %v459_v5 = vsel %vm450_vm5, %v1672_v50, %v458_v26  ;;  %v428_v16 = vadd.f32 %v420_v7, %v392_v28  ;;  %v1695_v45 = vld [vmem:[#allocation15_spill] sm:$0xff] }
  0x5b   : > { %v289_v44 = vsel %vm284_vm2, %v1674_v11, %v1673_v37  ;;  %v1675_v48 = vrot.slane %v1139_v57, 5  ;;  %v567_v46 = vrot.slane %v554_v55, 7  ;;  %v688_v8 = vunpack.c.l.bf16 %v687_v6  ;;  %v1697_v28 = vld [vmem:[#allocation7_spill] sm:$0xff]  ;;  %v1701_v11 = vld [vmem:[#allocation17_spill] sm:$0xff] }
  0x5c   : > { %v262_v39 = vadd.f32 %v252_v0, %v225_v23  ;;  %v1676_v54 = vrot.slane %v1033_v43, 6  ;;  %v1677_v4 = vrot.slane %v1288_v21, 6  ;;  %v467_v49 = vadd.f32 %v459_v5, %v428_v16  ;;  %v1684_v21 = vld [vmem:[#allocation3_spill] sm:$0xff]  ;;  %v1699_v23 = vld [vmem:[#allocation21_spill] sm:$0xff] }
  0x5d   : > { %v496_v40 = vsel %vm487_vm6, %v1675_v48, %v495_v22  ;;  %v1678_v58 = vrot.slane %v1147_v59, 6  ;;  %v664_v29 = vmul.f32 %v1679_v51, %v616_v53  ;;  %v1681_v57 = vrot.slane %v1680_v15, 7  ;;  %v1691_v22 = vld [vmem:[#allocation6_spill] sm:$0xff]  ;;  %v1711_v51 = vld [vmem:[#allocation11_spill] sm:$0xff]  ;;  %v1713_v15 = vld [vmem:[#allocation24_spill] sm:$0xff] }
  0x5e   : > { %v328_v12 = vsel %vm323_vm3, %v1677_v4, %v1676_v54  ;;  %v299_v41 = vadd.f32 %v289_v44, %v262_v39  ;;  %v1683_v42 = vrot.slane %v1682_v63, 7  ;;  %v504_v24 = vadd.f32 %v496_v40, %v467_v49  ;;  %v1703_v39 = vld [vmem:[#allocation8_spill] sm:$0xff]  ;;  %v1707_v4 = vld [vmem:[#allocation9_spill] sm:$0xff]  ;;  %v1709_v49 = vld [vmem:[#allocation23_spill] sm:$0xff] }
  0x5f   : > { %v532_v34 = vsel %vm323_vm3, %v1678_v58, %v531_v38  ;;  %v386_v25 = vmul.f32 %v1684_v21, %v997_v33  ;;  %v1686_v47 = vrot.slane %v1685_v56, 7  ;;  %v700_v59 = vmul.f32 %v1228_v10, %v688_v8  ;;  %v1717_v21 = vld [vmem:[#allocation25_spill] sm:$0xff] }
  0x60   : > { %v365_v62 = vsel %vm360_vm4, %v1683_v42, %v1681_v57  ;;  %v338_v43 = vadd.f32 %v328_v12, %v299_v41  ;;  %v540_v35 = vadd.f32 %v532_v34, %v504_v24  ;;  %v677_v53 = vrot.slane %v664_v29, 4  ;;  %v1715_v24 = vld [vmem:[#allocation12_spill] sm:$0xff] }
  0x61   : > { %v568_v14 = vsel %vm360_vm4, %v1686_v47, %v567_v46  ;;  %v1688_v55 = vrot.slane %v1687_v1, 1  ;;  %v1690_v20 = vrot.slane %v1689_v30, 1  ;;  %v713_v31 = vrot.slane %v700_v59, 5 }
  0x62   : > { %v375_v26 = vadd.f32 %v365_v62, %v338_v43  ;;  %v576_v7 = vadd.f32 %v568_v14, %v540_v35  ;;  %v1692_v33 = vrot.slane %v1691_v22, 4  ;;  %v1694_v36 = vrot.slane %v1693_v32, 4  ;;  %v1719_v14 = vld [vmem:[#allocation14_spill] sm:$0xff] }
  0x63   : > { %v416_v17 = vsel %vm210_vm0, %v1690_v20, %v1688_v55  ;;  %v1696_v60 = vrot.slane %v1695_v45, 4  ;;  %v1698_v6 = vrot.slane %v1697_v28, 5  ;;  %v1700_v50 = vrot.slane %v1699_v23, 5 }
  0x64   : > { %v390_v3 = vadd.f32 %v386_v25, %v375_v26  ;;  %v455_v27 = vsel %vm450_vm5, %v1694_v36, %v1692_v33  ;;  %v614_v2 = vadd.f32 %v606_v52, %v576_v7  ;;  %v1702_v44 = vrot.slane %v1701_v11, 5  ;;  %v1705_v52 = vld [vmem:[#allocation22_spill] sm:$0xff] }
  0x65   : > { %v678_v0 = vsel %vm450_vm5, %v1696_v60, %v677_v53  ;;  %v492_v5 = vsel %vm487_vm6, %v1700_v50, %v1698_v6  ;;  %v1704_v48 = vrot.slane %v1703_v39, 6  ;;  %v1706_v40 = vrot.slane %v1705_v52, 6  ;;  %v1721_v53 = vld [vmem:[#allocation16_spill] sm:$0xff]  ;;  %v851_v7 = vld [vmem:[#allocation2] ss:$0 sm:$0xff] }
  0x66   : > { %v426_v10 = vadd.f32 %v416_v17, %v390_v3  ;;  %v650_v38 = vadd.f32 %v642_v18, %v614_v2  ;;  %v714_v16 = vsel %vm487_vm6, %v1702_v44, %v713_v31  ;;  %v1708_v12 = vrot.slane %v1707_v4, 7 }
  0x67   : > { %v528_v46 = vsel %vm323_vm3, %v1706_v40, %v1704_v48  ;;  %v1710_v41 = vrot.slane %v1709_v49, 7  ;;  %v1712_v29 = vrot.slane %v1711_v51, 2  ;;  %v1714_v57 = vrot.slane %v1713_v15, 2 }
  0x68   : > { %v465_v37 = vadd.f32 %v455_v27, %v426_v10  ;;  %v686_v8 = vadd.f32 %v678_v0, %v650_v38  ;;  %v1716_v43 = vrot.slane %v1715_v24, 3  ;;  %v1718_v25 = vrot.slane %v1717_v21, 3 }
  0x69   : > { %v564_v58 = vsel %vm360_vm4, %v1710_v41, %v1708_v12  ;;  %v602_v63 = vsel %vm247_vm1, %v1714_v57, %v1712_v29  ;;  %v1720_v59 = vrot.slane %v1719_v14, 4  ;;  %v1722_v1 = vrot.slane %v1721_v53, 5 }
  0x6a   : > { %v502_v54 = vadd.f32 %v492_v5, %v465_v37  ;;  %v722_v18 = vadd.f32 %v714_v16, %v686_v8  ;;  %v638_v56 = vsel %vm284_vm2, %v1718_v25, %v1716_v43  ;;  %vm767_vm8 = vcmask 7168  }
  0x6b   : > { %v674_v35 = vsel %vm450_vm5, %v671_v19, %v1720_v59  ;;  %v710_v55 = vsel %vm487_vm6, %v707_v9, %v1722_v1 }
  0x6c   : > { %v538_v34 = vadd.f32 %v528_v46, %v502_v54  ;;  %v733_v42 = vsel %vm723_vm7, %v722_v18, 0.0 }
  0x6d   : > { %734 = vadd.xlane.f32.xlu1 %v733_v42 }
  0x6e   : > { %v574_v62 = vadd.f32 %v564_v58, %v538_v34 }
  0x70   : > { %v612_v47 = vadd.f32 %v602_v63, %v574_v62 }
  0x72   : > { %v648_v26 = vadd.f32 %v638_v56, %v612_v47 }
  0x74   : > { %v684_v30 = vadd.f32 %v674_v35, %v648_v26 }
  0x76   : > { %v720_v20 = vadd.f32 %v710_v55, %v684_v30 }
  0x78   : > { %v727_v17 = vsel %vm723_vm7, %v720_v20, 0.0 }
  0x79   : > { %728 = vadd.xlane.f32.xlu0 %v727_v17 }
  0xc9   : > { %v732_v3 = vpop.xlane.xlu1 %731 }
  0xca   : > { %v745_v31 = vadd.f32 %v851_v7, %v732_v3 }
  0xcc   : > { %v749_v22 = vsub.f32 0.0, %v745_v31 }
  0xce   : > { %v755_v13 = vmul.f32 1.442695, %v749_v22 }
  0xd0   : > { %873 = vpow2.f32 %v755_v13 }
  0xda   : > { %v874_v19 = vpop.eup %873 }
  0xdb   : > { %v761_v33 = vadd.f32 1.0, %v874_v19 }
  0xdd   : > { %875 = vrcp.f32 %v761_v33 }
  0xe3   : > { %v726_v32 = vpop.xlane.xlu0 %725 }
  0xe4   : > { %v743_v36 = vadd.f32 %v851_v7, %v726_v32 }
  0xe6   : > { %v747_v61 = vsub.f32 0.0, %v743_v36 }
  0xe7   : > { %v876_v9 = vpop.eup %875 }
  0xe8   : > { %v751_v27 = vmul.f32 1.442695, %v747_v61  ;;  %770 = vst.msk [vmem:[%s1557_s27 + $0x10] sm:$0xff] %vm767_vm8, %v876_v9 }
  0xea   : > { %877 = vpow2.f32 %v751_v27 }
  0xf4   : > { %v878_v2 = vpop.eup %877 }
  0xf5   : > { %v759_v10 = vadd.f32 1.0, %v878_v2 }
  0xf7   : > { %879 = vrcp.f32 %v759_v10 }
  0xfa   : > { %v735_v45 = vpop.xlane.xlu1 %734 }
  0xfb   : > { %v746_v60 = vadd.f32 %v851_v7, %v735_v45 }
  0xfd   : > { %v750_v0 = vsub.f32 0.0, %v746_v60 }
  0xff   : > { %v757_v28 = vmul.f32 1.442695, %v750_v0 }
 0x101   : > { %v880_v6 = vpop.eup %879  ;;  %881 = vpow2.f32 %v757_v28 }
 0x102   : > { %768 = vst.msk [vmem:[%s1557_s27] sm:$0xff] %vm767_vm8, %v880_v6 }
 0x106   : > { %v729_v23 = vpop.xlane.xlu0 %728 }
 0x107   : > { %v744_v50 = vadd.f32 %v851_v7, %v729_v23 }
 0x109   : > { %v748_v5 = vsub.f32 0.0, %v744_v50 }
 0x10b   : > { %v753_v38 = vmul.f32 1.442695, %v748_v5  ;;  %v882_v37 = vpop.eup %881 }
 0x10c   : > { %v762_v11 = vadd.f32 1.0, %v882_v37 }
 0x10d   : > { %883 = vpow2.f32 %v753_v38 }
 0x10e   : > { %885 = vrcp.f32 %v762_v11 }
 0x117   : > { %v884_v44 = vpop.eup %883 }
 0x118   : > { %v760_v16 = vadd.f32 1.0, %v884_v44  ;;  %v886_v39 = vpop.eup %885 }
 0x119   : > { %771 = vst.msk [vmem:[%s1557_s27 + $0x18] sm:$0xff] %vm767_vm8, %v886_v39 }
 0x11a   : > { %887 = vrcp.f32 %v760_v16 }
 0x124   : > { %v888_v48 = vpop.eup %887 }
 0x125   : > { %769 = vst.msk [vmem:[%s1557_s27 + $0x8] sm:$0xff] %vm767_vm8, %v888_v48 }
 0x126 PF: > { %s15_s14 = sadd.s32 1, %s895_s14  }
 0x127   : > { %p12_p4 = scmp.ge.s32.totalorder %s15_s14, 4  }
 0x129   :  { %14 = sbr.rel (!%p12_p4) target bundleno = 3 (0x3), region = 77 }

</bundles_post_ra>
